<compile_context>
chip_gen: v7x
topology: tpu7x:2x2x1
jax: 0.10.0
libtpu: 0.0.40
codegen_flags: <defaults>
</compile_context>

<pallas_src>
import functools

import jax
import jax.numpy as jnp
import numpy as np
from jax import lax
from jax.experimental import pallas as pl
from jax.experimental.pallas import tpu as pltpu


# ----------------------------------------------------------------------------
# Fused Pallas kernel: stacked LSTM + Linear head
# ----------------------------------------------------------------------------
def _fused_lstm_kernel(*refs, num_layers, seq_len, batch, hp):
    """Fused stacked-LSTM + Linear forward.

    refs layout:
      [0]                      x_ref      (T, B, Din)        time-major input
      [1 .. 3*L]               per layer: wih (Din_l, 4*HP), whh (HP, 4*HP), b (1, 4*HP)
      [1+3L]                   h0_ref     (L, B, HP)
      [2+3L]                   c0_ref     (L, B, HP)
      [3+3L]                   wlin_ref   (HP, O)
      [4+3L]                   blin_ref   (1, O)
      [5+3L]                   out_ref    (B, O)
      [6+3L]                   acts_scr   (T, B, HP)          inter-layer activations
      [7+3L]                   proj_scr   (T, B, 4*HP)        hoisted input projection
    Per-gate blocks are padded to HP=128 lanes; padded weight rows/cols are zero so
    padding lanes never influence real lanes.
    """
    x_ref = refs[0]
    layer_refs = refs[1:1 + 3 * num_layers]
    (h0_ref, c0_ref, wlin_ref, blin_ref,
     out_ref, acts_scr, proj_scr) = refs[1 + 3 * num_layers:]

    h_last = None
    for l in range(num_layers):
        wih_ref = layer_refs[3 * l]
        whh_ref = layer_refs[3 * l + 1]
        b_ref = layer_refs[3 * l + 2]

        # ---- Hoisted input projection (+ bias) for every timestep: one big matmul.
        if l == 0:
            xin = x_ref[...].reshape(seq_len * batch, x_ref.shape[-1])   # (T*B, Din)
        else:
            xin = acts_scr[...].reshape(seq_len * batch, hp)             # (T*B, HP)
        proj = jnp.dot(xin, wih_ref[...],
                       preferred_element_type=jnp.float32) + b_ref[...]  # (T*B, 4*HP)
        proj_scr[...] = proj.reshape(seq_len, batch, 4 * hp)

        # Loop-invariant loads hoisted out of the recurrence.
        whh = whh_ref[...]                                               # (HP, 4*HP)
        store_acts = l < num_layers - 1   # top layer: skip per-step stores entirely

        def step(t, carry, whh=whh, store_acts=store_acts):
            h, c = carry                                                  # (B, HP) each
            gates = proj_scr[t] + jnp.dot(h, whh,
                                          preferred_element_type=jnp.float32)
            # Lane-aligned, full-vreg gate slices (each gate block is 128 lanes wide).
            i = jax.nn.sigmoid(gates[:, 0 * hp:1 * hp])
            f = jax.nn.sigmoid(gates[:, 1 * hp:2 * hp])
            g = jnp.tanh(gates[:, 2 * hp:3 * hp])
            o = jax.nn.sigmoid(gates[:, 3 * hp:4 * hp])
            c_new = f * c + i * g
            h_new = o * jnp.tanh(c_new)
            if store_acts:
                acts_scr[t] = h_new      # lane-dense (last dim = HP = 128) VMEM store
            return (h_new, c_new)

        h_last, _ = lax.fori_loop(0, seq_len, step,
                                  (h0_ref[l], c0_ref[l]), unroll=True)

    # ---- Fused Linear head on the last timestep of the top layer.
    out_ref[...] = (jnp.dot(h_last, wlin_ref[...],
                            preferred_element_type=jnp.float32)
                    + blin_ref[...]).astype(out_ref.dtype)


# ----------------------------------------------------------------------------
# Wrapper
# ----------------------------------------------------------------------------
_VMEM_SPEC = pl.BlockSpec(memory_space=pltpu.MemorySpace.VMEM)


def lstm_model_forward(packed, x_btd, h0, c0, *, num_layers, hidden_size,
                       hidden_pad, output_size):
    """Mirrors LSTM.forward: stacked LSTM -> Linear -> last timestep.

    x_btd: (B, T, input_size) batch-first, like the PyTorch module.
    h0, c0: (num_layers, B, hidden_size).
    returns: (B, output_size)
    """
    B, T, _ = x_btd.shape
    HP = hidden_pad
    # Tiny layout plumbing done once outside the kernel (negligible at these sizes).
    x_tbd = jnp.transpose(x_btd, (1, 0, 2))                      # (T, B, Din)
    pad = ((0, 0), (0, 0), (0, HP - hidden_size))
    h0p = jnp.pad(h0, pad)                                       # (L, B, HP)
    c0p = jnp.pad(c0, pad)

    args = [x_tbd]
    for l in range(num_layers):
        args += [packed[f"wih_{l}"], packed[f"whh_{l}"], packed[f"b_{l}"]]
    args += [h0p, c0p, packed["w_lin"], packed["b_lin"]]

    kernel = functools.partial(_fused_lstm_kernel, num_layers=num_layers,
                               seq_len=T, batch=B, hp=HP)
    return pl.pallas_call(
        kernel,
        out_shape=jax.ShapeDtypeStruct((B, output_size), jnp.float32),
        in_specs=[_VMEM_SPEC] * len(args),
        out_specs=_VMEM_SPEC,
        scratch_shapes=[
            pltpu.VMEM((T, B, HP), jnp.float32),        # inter-layer activations
            pltpu.VMEM((T, B, 4 * HP), jnp.float32),    # hoisted input projection
        ],
    )(*args)


# ----------------------------------------------------------------------------
# Parameters: raw PyTorch layout + packing into the padded kernel layout
# ----------------------------------------------------------------------------
def make_params(key, input_size, hidden_size, num_layers, output_size):
    """Raw parameters in native PyTorch layout (W_ih: (4H, Din), W_hh: (4H, H), ...)."""
    raw = {}
    bound = 1.0 / np.sqrt(hidden_size)
    for l in range(num_layers):
        din = input_size if l == 0 else hidden_size
        key, k1, k2, k3, k4 = jax.random.split(key, 5)
        raw[f"weight_ih_l{l}"] = jax.random.uniform(
            k1, (4 * hidden_size, din), jnp.float32, -bound, bound)
        raw[f"weight_hh_l{l}"] = jax.random.uniform(
            k2, (4 * hidden_size, hidden_size), jnp.float32, -bound, bound)
        raw[f"bias_ih_l{l}"] = jax.random.uniform(
            k3, (4 * hidden_size,), jnp.float32, -bound, bound)
        raw[f"bias_hh_l{l}"] = jax.random.uniform(
            k4, (4 * hidden_size,), jnp.float32, -bound, bound)
    key, k1, k2 = jax.random.split(key, 3)
    raw["weight_lin"] = jax.random.uniform(
        k1, (output_size, hidden_size), jnp.float32, -bound, bound)
    raw["bias_lin"] = jax.random.uniform(
        k2, (output_size,), jnp.float32, -bound, bound)
    return raw


def pack_params(raw, input_size, hidden_size, num_layers, hp):
    """Transpose + pad weights so each gate occupies a full 128-lane block.

    Padded rows/columns are zero, so padding lanes never contaminate real lanes.
    """
    H = hidden_size
    packed = {}
    for l in range(num_layers):
        din_p = input_size if l == 0 else hp
        din = input_size if l == 0 else hidden_size
        wih = raw[f"weight_ih_l{l}"]                      # (4H, din)
        whh = raw[f"weight_hh_l{l}"]                      # (4H, H)
        bias = raw[f"bias_ih_l{l}"] + raw[f"bias_hh_l{l}"]  # (4H,)
        wih_p = jnp.zeros((din_p, 4 * hp), jnp.float32)
        whh_p = jnp.zeros((hp, 4 * hp), jnp.float32)
        b_p = jnp.zeros((1, 4 * hp), jnp.float32)
        for g in range(4):
            wih_p = wih_p.at[:din, g * hp:g * hp + H].set(wih[g * H:(g + 1) * H, :].T)
            whh_p = whh_p.at[:H, g * hp:g * hp + H].set(whh[g * H:(g + 1) * H, :].T)
            b_p = b_p.at[0, g * hp:g * hp + H].set(bias[g * H:(g + 1) * H])
        packed[f"wih_{l}"] = wih_p
        packed[f"whh_{l}"] = whh_p
        packed[f"b_{l}"] = b_p
    wlin = raw["weight_lin"]                              # (O, H)
    wlin_p = jnp.zeros((hp, wlin.shape[0]), jnp.float32).at[:H, :].set(wlin.T)
    packed["w_lin"] = wlin_p
    packed["b_lin"] = raw["bias_lin"][None, :]            # (1, O)
    return packed


# ----------------------------------------------------------------------------
# Pure-JAX reference (PyTorch semantics, unpadded weights)
# ----------------------------------------------------------------------------
def reference_forward(raw, x_btd, h0, c0, *, num_layers, hidden_size):
    H = hidden_size
    out = x_btd
    for l in range(num_layers):
        wih = raw[f"weight_ih_l{l}"]
        whh = raw[f"weight_hh_l{l}"]
        b = raw[f"bias_ih_l{l}"] + raw[f"bias_hh_l{l}"]
        h, c = h0[l], c0[l]
        hs = []
        for t in range(out.shape[1]):
            gates = out[:, t, :] @ wih.T + h @ whh.T + b
            i = jax.nn.sigmoid(gates[:, 0 * H:1 * H])
            f = jax.nn.sigmoid(gates[:, 1 * H:2 * H])
            g = jnp.tanh(gates[:, 2 * H:3 * H])
            o = jax.nn.sigmoid(gates[:, 3 * H:4 * H])
            c = f * c + i * g
            h = o * jnp.tanh(c)
            hs.append(h)
        out = jnp.stack(hs, axis=1)                       # (B, T, H)
    return out[:, -1, :] @ raw["weight_lin"].T + raw["bias_lin"]


# ----------------------------------------------------------------------------
if __name__ == "__main__":
    input_size = 4
    hidden_size = 32
    num_layers = 2
    output_size = 1
    batch_size = 4
    seq_len = 8
    HP = 128   # per-gate padded hidden width (one full lane tile)

    root = jax.random.PRNGKey(0)
    k_params, k_x, k_h0, k_c0 = jax.random.split(root, 4)

    raw = make_params(k_params, input_size, hidden_size, num_layers, output_size)
    packed = pack_params(raw, input_size, hidden_size, num_layers, HP)

    x = jax.random.normal(k_x, (batch_size, seq_len, input_size), jnp.float32)
    h0 = jax.random.normal(k_h0, (num_layers, batch_size, hidden_size), jnp.float32)
    c0 = jax.random.normal(k_c0, (num_layers, batch_size, hidden_size), jnp.float32)

    fwd = jax.jit(functools.partial(lstm_model_forward,
                                    num_layers=num_layers,
                                    hidden_size=hidden_size,
                                    hidden_pad=HP,
                                    output_size=output_size))
    pred = jax.block_until_ready(fwd(packed, x, h0, c0))

    ref = reference_forward(raw, x, h0, c0,
                            num_layers=num_layers, hidden_size=hidden_size)
    np.testing.assert_allclose(np.asarray(pred), np.asarray(ref),
                               rtol=1e-4, atol=1e-4)
    assert pred.shape == (batch_size, output_size)
    print("KERNEL_OK")
</pallas_src>

<mosaic_0001>
module attributes {stable_mosaic.version = 11 : i64} {
  func.func @_fused_lstm_kernel(%arg0: memref<8x4x4xf32, #tpu.memory_space<vmem>>, %arg1: memref<4x512xf32, #tpu.memory_space<vmem>>, %arg2: memref<128x512xf32, #tpu.memory_space<vmem>>, %arg3: memref<1x512xf32, #tpu.memory_space<vmem>>, %arg4: memref<128x512xf32, #tpu.memory_space<vmem>>, %arg5: memref<128x512xf32, #tpu.memory_space<vmem>>, %arg6: memref<1x512xf32, #tpu.memory_space<vmem>>, %arg7: memref<2x4x128xf32, #tpu.memory_space<vmem>>, %arg8: memref<2x4x128xf32, #tpu.memory_space<vmem>>, %arg9: memref<128x1xf32, #tpu.memory_space<vmem>>, %arg10: memref<1x1xf32, #tpu.memory_space<vmem>>, %arg11: memref<4x1xf32, #tpu.memory_space<vmem>>, %arg12: memref<8x4x128xf32, #tpu.memory_space<vmem>>, %arg13: memref<8x4x512xf32, #tpu.memory_space<vmem>>) attributes {dimension_semantics = [], scalar_prefetch = 0 : i64, scratch_operands = 2 : i64, tpu.core_type = #tpu.core_type<tc>} {
    %c0 = arith.constant 0 : index
    %c0_0 = arith.constant 0 : index
    %c0_1 = arith.constant 0 : index
    %0 = vector.load %arg0[%c0, %c0_0, %c0_1] : memref<8x4x4xf32, #tpu.memory_space<vmem>>, vector<8x4x4xf32>
    %1 = vector.shape_cast %0 : vector<8x4x4xf32> to vector<32x4xf32>
    %c0_2 = arith.constant 0 : index
    %c0_3 = arith.constant 0 : index
    %2 = vector.load %arg1[%c0_2, %c0_3] : memref<4x512xf32, #tpu.memory_space<vmem>>, vector<4x512xf32>
    %cst = arith.constant dense<0.000000e+00> : vector<32x512xf32>
    %3 = tpu.matmul %1, %2, %cst {dimension_numbers = #tpu.dot_dimension_numbers<[1], [0], [0], [1], [0, 0, 1, 1], [], []>} : vector<32x4xf32>, vector<4x512xf32>, vector<32x512xf32> -> vector<32x512xf32>
    %c0_4 = arith.constant 0 : index
    %c0_5 = arith.constant 0 : index
    %4 = vector.load %arg3[%c0_4, %c0_5] : memref<1x512xf32, #tpu.memory_space<vmem>>, vector<1x512xf32>
    %5 = vector.broadcast %4 : vector<1x512xf32> to vector<32x512xf32>
    %6 = arith.addf %3, %5 : vector<32x512xf32>
    %7 = vector.shape_cast %6 : vector<32x512xf32> to vector<8x4x512xf32>
    %c0_6 = arith.constant 0 : index
    %c0_7 = arith.constant 0 : index
    %c0_8 = arith.constant 0 : index
    %8 = vector.load %arg13[%c0_6, %c0_7, %c0_8] : memref<8x4x512xf32, #tpu.memory_space<vmem>>, vector<8x4x512xf32>
    tpu.vector_store %arg13[%c0_6, %c0_7, %c0_8], %7 {strides = array<i32>} : memref<8x4x512xf32, #tpu.memory_space<vmem>>, vector<8x4x512xf32>,
    %c0_9 = arith.constant 0 : index
    %c0_10 = arith.constant 0 : index
    %9 = vector.load %arg2[%c0_9, %c0_10] : memref<128x512xf32, #tpu.memory_space<vmem>>, vector<128x512xf32>
    %c0_11 = arith.constant 0 : index
    %c0_12 = arith.constant 0 : index
    %c0_13 = arith.constant 0 : index
    %10 = vector.load %arg7[%c0_11, %c0_12, %c0_13] : memref<2x4x128xf32, #tpu.memory_space<vmem>>, vector<1x4x128xf32>
    %11 = vector.shape_cast %10 : vector<1x4x128xf32> to vector<4x128xf32>
    %c0_14 = arith.constant 0 : index
    %c0_15 = arith.constant 0 : index
    %c0_16 = arith.constant 0 : index
    %12 = vector.load %arg8[%c0_14, %c0_15, %c0_16] : memref<2x4x128xf32, #tpu.memory_space<vmem>>, vector<1x4x128xf32>
    %13 = vector.shape_cast %12 : vector<1x4x128xf32> to vector<4x128xf32>
    %c0_i32 = arith.constant 0 : i32
    %14 = arith.index_cast %c0_i32 : i32 to index
    %c0_17 = arith.constant 0 : index
    %c0_18 = arith.constant 0 : index
    %15 = vector.load %arg13[%14, %c0_17, %c0_18] : memref<8x4x512xf32, #tpu.memory_space<vmem>>, vector<1x4x512xf32>
    %16 = vector.shape_cast %15 : vector<1x4x512xf32> to vector<4x512xf32>
    %cst_19 = arith.constant dense<0.000000e+00> : vector<4x512xf32>
    %17 = tpu.matmul %11, %9, %cst_19 {dimension_numbers = #tpu.dot_dimension_numbers<[1], [0], [0], [1], [0, 0, 1, 1], [], []>} : vector<4x128xf32>, vector<128x512xf32>, vector<4x512xf32> -> vector<4x512xf32>
    %18 = arith.addf %16, %17 : vector<4x512xf32>
    %19 = vector.extract_strided_slice %18 {offsets = [0, 0], sizes = [4, 128], strides = [1, 1]} : vector<4x512xf32> to vector<4x128xf32>
    %20 = arith.negf %19 : vector<4x128xf32>
    %21 = math.exp %20 : vector<4x128xf32>
    %cst_20 = arith.constant 1.000000e+00 : f32
    %22 = vector.broadcast %cst_20 : f32 to vector<4x128xf32>
    %23 = arith.addf %22, %21 : vector<4x128xf32>
    %24 = arith.divf %22, %23 : vector<4x128xf32>
    %25 = vector.extract_strided_slice %18 {offsets = [0, 128], sizes = [4, 128], strides = [1, 1]} : vector<4x512xf32> to vector<4x128xf32>
    %26 = arith.negf %25 : vector<4x128xf32>
    %27 = math.exp %26 : vector<4x128xf32>
    %cst_21 = arith.constant 1.000000e+00 : f32
    %28 = vector.broadcast %cst_21 : f32 to vector<4x128xf32>
    %29 = arith.addf %28, %27 : vector<4x128xf32>
    %30 = arith.divf %28, %29 : vector<4x128xf32>
    %31 = vector.extract_strided_slice %18 {offsets = [0, 256], sizes = [4, 128], strides = [1, 1]} : vector<4x512xf32> to vector<4x128xf32>
    %32 = math.tanh %31 : vector<4x128xf32>
    %33 = vector.extract_strided_slice %18 {offsets = [0, 384], sizes = [4, 128], strides = [1, 1]} : vector<4x512xf32> to vector<4x128xf32>
    %34 = arith.negf %33 : vector<4x128xf32>
    %35 = math.exp %34 : vector<4x128xf32>
    %cst_22 = arith.constant 1.000000e+00 : f32
    %36 = vector.broadcast %cst_22 : f32 to vector<4x128xf32>
    %37 = arith.addf %36, %35 : vector<4x128xf32>
    %38 = arith.divf %36, %37 : vector<4x128xf32>
    %39 = arith.mulf %30, %13 : vector<4x128xf32>
    %40 = arith.mulf %24, %32 : vector<4x128xf32>
    %41 = arith.addf %39, %40 : vector<4x128xf32>
    %42 = math.tanh %41 : vector<4x128xf32>
    %43 = arith.mulf %38, %42 : vector<4x128xf32>
    %44 = arith.index_cast %c0_i32 : i32 to index
    %c0_23 = arith.constant 0 : index
    %c0_24 = arith.constant 0 : index
    %45 = vector.load %arg12[%44, %c0_23, %c0_24] : memref<8x4x128xf32, #tpu.memory_space<vmem>>, vector<1x4x128xf32>
    %46 = vector.shape_cast %45 : vector<1x4x128xf32> to vector<4x128xf32>
    %47 = vector.shape_cast %43 : vector<4x128xf32> to vector<1x4x128xf32>
    tpu.vector_store %arg12[%44, %c0_23, %c0_24], %47 {strides = array<i32>} : memref<8x4x128xf32, #tpu.memory_space<vmem>>, vector<1x4x128xf32>,
    %c1_i32 = arith.constant 1 : i32
    %48 = arith.index_cast %c1_i32 : i32 to index
    %c0_25 = arith.constant 0 : index
    %c0_26 = arith.constant 0 : index
    %49 = vector.load %arg13[%48, %c0_25, %c0_26] : memref<8x4x512xf32, #tpu.memory_space<vmem>>, vector<1x4x512xf32>
    %50 = vector.shape_cast %49 : vector<1x4x512xf32> to vector<4x512xf32>
    %cst_27 = arith.constant dense<0.000000e+00> : vector<4x512xf32>
    %51 = tpu.matmul %43, %9, %cst_27 {dimension_numbers = #tpu.dot_dimension_numbers<[1], [0], [0], [1], [0, 0, 1, 1], [], []>} : vector<4x128xf32>, vector<128x512xf32>, vector<4x512xf32> -> vector<4x512xf32>
    %52 = arith.addf %50, %51 : vector<4x512xf32>
    %53 = vector.extract_strided_slice %52 {offsets = [0, 0], sizes = [4, 128], strides = [1, 1]} : vector<4x512xf32> to vector<4x128xf32>
    %54 = arith.negf %53 : vector<4x128xf32>
    %55 = math.exp %54 : vector<4x128xf32>
    %cst_28 = arith.constant 1.000000e+00 : f32
    %56 = vector.broadcast %cst_28 : f32 to vector<4x128xf32>
    %57 = arith.addf %56, %55 : vector<4x128xf32>
    %58 = arith.divf %56, %57 : vector<4x128xf32>
    %59 = vector.extract_strided_slice %52 {offsets = [0, 128], sizes = [4, 128], strides = [1, 1]} : vector<4x512xf32> to vector<4x128xf32>
    %60 = arith.negf %59 : vector<4x128xf32>
    %61 = math.exp %60 : vector<4x128xf32>
    %cst_29 = arith.constant 1.000000e+00 : f32
    %62 = vector.broadcast %cst_29 : f32 to vector<4x128xf32>
    %63 = arith.addf %62, %61 : vector<4x128xf32>
    %64 = arith.divf %62, %63 : vector<4x128xf32>
    %65 = vector.extract_strided_slice %52 {offsets = [0, 256], sizes = [4, 128], strides = [1, 1]} : vector<4x512xf32> to vector<4x128xf32>
    %66 = math.tanh %65 : vector<4x128xf32>
    %67 = vector.extract_strided_slice %52 {offsets = [0, 384], sizes = [4, 128], strides = [1, 1]} : vector<4x512xf32> to vector<4x128xf32>
    %68 = arith.negf %67 : vector<4x128xf32>
    %69 = math.exp %68 : vector<4x128xf32>
    %cst_30 = arith.constant 1.000000e+00 : f32
    %70 = vector.broadcast %cst_30 : f32 to vector<4x128xf32>
    %71 = arith.addf %70, %69 : vector<4x128xf32>
    %72 = arith.divf %70, %71 : vector<4x128xf32>
    %73 = arith.mulf %64, %41 : vector<4x128xf32>
    %74 = arith.mulf %58, %66 : vector<4x128xf32>
    %75 = arith.addf %73, %74 : vector<4x128xf32>
    %76 = math.tanh %75 : vector<4x128xf32>
    %77 = arith.mulf %72, %76 : vector<4x128xf32>
    %78 = arith.index_cast %c1_i32 : i32 to index
    %c0_31 = arith.constant 0 : index
    %c0_32 = arith.constant 0 : index
    %79 = vector.load %arg12[%78, %c0_31, %c0_32] : memref<8x4x128xf32, #tpu.memory_space<vmem>>, vector<1x4x128xf32>
    %80 = vector.shape_cast %79 : vector<1x4x128xf32> to vector<4x128xf32>
    %81 = vector.shape_cast %77 : vector<4x128xf32> to vector<1x4x128xf32>
    tpu.vector_store %arg12[%78, %c0_31, %c0_32], %81 {strides = array<i32>} : memref<8x4x128xf32, #tpu.memory_space<vmem>>, vector<1x4x128xf32>,
    %c2_i32 = arith.constant 2 : i32
    %82 = arith.index_cast %c2_i32 : i32 to index
    %c0_33 = arith.constant 0 : index
    %c0_34 = arith.constant 0 : index
    %83 = vector.load %arg13[%82, %c0_33, %c0_34] : memref<8x4x512xf32, #tpu.memory_space<vmem>>, vector<1x4x512xf32>
    %84 = vector.shape_cast %83 : vector<1x4x512xf32> to vector<4x512xf32>
    %cst_35 = arith.constant dense<0.000000e+00> : vector<4x512xf32>
    %85 = tpu.matmul %77, %9, %cst_35 {dimension_numbers = #tpu.dot_dimension_numbers<[1], [0], [0], [1], [0, 0, 1, 1], [], []>} : vector<4x128xf32>, vector<128x512xf32>, vector<4x512xf32> -> vector<4x512xf32>
    %86 = arith.addf %84, %85 : vector<4x512xf32>
    %87 = vector.extract_strided_slice %86 {offsets = [0, 0], sizes = [4, 128], strides = [1, 1]} : vector<4x512xf32> to vector<4x128xf32>
    %88 = arith.negf %87 : vector<4x128xf32>
    %89 = math.exp %88 : vector<4x128xf32>
    %cst_36 = arith.constant 1.000000e+00 : f32
    %90 = vector.broadcast %cst_36 : f32 to vector<4x128xf32>
    %91 = arith.addf %90, %89 : vector<4x128xf32>
    %92 = arith.divf %90, %91 : vector<4x128xf32>
    %93 = vector.extract_strided_slice %86 {offsets = [0, 128], sizes = [4, 128], strides = [1, 1]} : vector<4x512xf32> to vector<4x128xf32>
    %94 = arith.negf %93 : vector<4x128xf32>
    %95 = math.exp %94 : vector<4x128xf32>
    %cst_37 = arith.constant 1.000000e+00 : f32
    %96 = vector.broadcast %cst_37 : f32 to vector<4x128xf32>
    %97 = arith.addf %96, %95 : vector<4x128xf32>
    %98 = arith.divf %96, %97 : vector<4x128xf32>
    %99 = vector.extract_strided_slice %86 {offsets = [0, 256], sizes = [4, 128], strides = [1, 1]} : vector<4x512xf32> to vector<4x128xf32>
    %100 = math.tanh %99 : vector<4x128xf32>
    %101 = vector.extract_strided_slice %86 {offsets = [0, 384], sizes = [4, 128], strides = [1, 1]} : vector<4x512xf32> to vector<4x128xf32>
    %102 = arith.negf %101 : vector<4x128xf32>
    %103 = math.exp %102 : vector<4x128xf32>
    %cst_38 = arith.constant 1.000000e+00 : f32
    %104 = vector.broadcast %cst_38 : f32 to vector<4x128xf32>
    %105 = arith.addf %104, %103 : vector<4x128xf32>
    %106 = arith.divf %104, %105 : vector<4x128xf32>
    %107 = arith.mulf %98, %75 : vector<4x128xf32>
    %108 = arith.mulf %92, %100 : vector<4x128xf32>
    %109 = arith.addf %107, %108 : vector<4x128xf32>
    %110 = math.tanh %109 : vector<4x128xf32>
    %111 = arith.mulf %106, %110 : vector<4x128xf32>
    %112 = arith.index_cast %c2_i32 : i32 to index
    %c0_39 = arith.constant 0 : index
    %c0_40 = arith.constant 0 : index
    %113 = vector.load %arg12[%112, %c0_39, %c0_40] : memref<8x4x128xf32, #tpu.memory_space<vmem>>, vector<1x4x128xf32>
    %114 = vector.shape_cast %113 : vector<1x4x128xf32> to vector<4x128xf32>
    %115 = vector.shape_cast %111 : vector<4x128xf32> to vector<1x4x128xf32>
    tpu.vector_store %arg12[%112, %c0_39, %c0_40], %115 {strides = array<i32>} : memref<8x4x128xf32, #tpu.memory_space<vmem>>, vector<1x4x128xf32>,
    %c3_i32 = arith.constant 3 : i32
    %116 = arith.index_cast %c3_i32 : i32 to index
    %c0_41 = arith.constant 0 : index
    %c0_42 = arith.constant 0 : index
    %117 = vector.load %arg13[%116, %c0_41, %c0_42] : memref<8x4x512xf32, #tpu.memory_space<vmem>>, vector<1x4x512xf32>
    %118 = vector.shape_cast %117 : vector<1x4x512xf32> to vector<4x512xf32>
    %cst_43 = arith.constant dense<0.000000e+00> : vector<4x512xf32>
    %119 = tpu.matmul %111, %9, %cst_43 {dimension_numbers = #tpu.dot_dimension_numbers<[1], [0], [0], [1], [0, 0, 1, 1], [], []>} : vector<4x128xf32>, vector<128x512xf32>, vector<4x512xf32> -> vector<4x512xf32>
    %120 = arith.addf %118, %119 : vector<4x512xf32>
    %121 = vector.extract_strided_slice %120 {offsets = [0, 0], sizes = [4, 128], strides = [1, 1]} : vector<4x512xf32> to vector<4x128xf32>
    %122 = arith.negf %121 : vector<4x128xf32>
    %123 = math.exp %122 : vector<4x128xf32>
    %cst_44 = arith.constant 1.000000e+00 : f32
    %124 = vector.broadcast %cst_44 : f32 to vector<4x128xf32>
    %125 = arith.addf %124, %123 : vector<4x128xf32>
    %126 = arith.divf %124, %125 : vector<4x128xf32>
    %127 = vector.extract_strided_slice %120 {offsets = [0, 128], sizes = [4, 128], strides = [1, 1]} : vector<4x512xf32> to vector<4x128xf32>
    %128 = arith.negf %127 : vector<4x128xf32>
    %129 = math.exp %128 : vector<4x128xf32>
    %cst_45 = arith.constant 1.000000e+00 : f32
    %130 = vector.broadcast %cst_45 : f32 to vector<4x128xf32>
    %131 = arith.addf %130, %129 : vector<4x128xf32>
    %132 = arith.divf %130, %131 : vector<4x128xf32>
    %133 = vector.extract_strided_slice %120 {offsets = [0, 256], sizes = [4, 128], strides = [1, 1]} : vector<4x512xf32> to vector<4x128xf32>
    %134 = math.tanh %133 : vector<4x128xf32>
    %135 = vector.extract_strided_slice %120 {offsets = [0, 384], sizes = [4, 128], strides = [1, 1]} : vector<4x512xf32> to vector<4x128xf32>
    %136 = arith.negf %135 : vector<4x128xf32>
    %137 = math.exp %136 : vector<4x128xf32>
    %cst_46 = arith.constant 1.000000e+00 : f32
    %138 = vector.broadcast %cst_46 : f32 to vector<4x128xf32>
    %139 = arith.addf %138, %137 : vector<4x128xf32>
    %140 = arith.divf %138, %139 : vector<4x128xf32>
    %141 = arith.mulf %132, %109 : vector<4x128xf32>
    %142 = arith.mulf %126, %134 : vector<4x128xf32>
    %143 = arith.addf %141, %142 : vector<4x128xf32>
    %144 = math.tanh %143 : vector<4x128xf32>
    %145 = arith.mulf %140, %144 : vector<4x128xf32>
    %146 = arith.index_cast %c3_i32 : i32 to index
    %c0_47 = arith.constant 0 : index
    %c0_48 = arith.constant 0 : index
    %147 = vector.load %arg12[%146, %c0_47, %c0_48] : memref<8x4x128xf32, #tpu.memory_space<vmem>>, vector<1x4x128xf32>
    %148 = vector.shape_cast %147 : vector<1x4x128xf32> to vector<4x128xf32>
    %149 = vector.shape_cast %145 : vector<4x128xf32> to vector<1x4x128xf32>
    tpu.vector_store %arg12[%146, %c0_47, %c0_48], %149 {strides = array<i32>} : memref<8x4x128xf32, #tpu.memory_space<vmem>>, vector<1x4x128xf32>,
    %c4_i32 = arith.constant 4 : i32
    %150 = arith.index_cast %c4_i32 : i32 to index
    %c0_49 = arith.constant 0 : index
    %c0_50 = arith.constant 0 : index
    %151 = vector.load %arg13[%150, %c0_49, %c0_50] : memref<8x4x512xf32, #tpu.memory_space<vmem>>, vector<1x4x512xf32>
    %152 = vector.shape_cast %151 : vector<1x4x512xf32> to vector<4x512xf32>
    %cst_51 = arith.constant dense<0.000000e+00> : vector<4x512xf32>
    %153 = tpu.matmul %145, %9, %cst_51 {dimension_numbers = #tpu.dot_dimension_numbers<[1], [0], [0], [1], [0, 0, 1, 1], [], []>} : vector<4x128xf32>, vector<128x512xf32>, vector<4x512xf32> -> vector<4x512xf32>
    %154 = arith.addf %152, %153 : vector<4x512xf32>
    %155 = vector.extract_strided_slice %154 {offsets = [0, 0], sizes = [4, 128], strides = [1, 1]} : vector<4x512xf32> to vector<4x128xf32>
    %156 = arith.negf %155 : vector<4x128xf32>
    %157 = math.exp %156 : vector<4x128xf32>
    %cst_52 = arith.constant 1.000000e+00 : f32
    %158 = vector.broadcast %cst_52 : f32 to vector<4x128xf32>
    %159 = arith.addf %158, %157 : vector<4x128xf32>
    %160 = arith.divf %158, %159 : vector<4x128xf32>
    %161 = vector.extract_strided_slice %154 {offsets = [0, 128], sizes = [4, 128], strides = [1, 1]} : vector<4x512xf32> to vector<4x128xf32>
    %162 = arith.negf %161 : vector<4x128xf32>
    %163 = math.exp %162 : vector<4x128xf32>
    %cst_53 = arith.constant 1.000000e+00 : f32
    %164 = vector.broadcast %cst_53 : f32 to vector<4x128xf32>
    %165 = arith.addf %164, %163 : vector<4x128xf32>
    %166 = arith.divf %164, %165 : vector<4x128xf32>
    %167 = vector.extract_strided_slice %154 {offsets = [0, 256], sizes = [4, 128], strides = [1, 1]} : vector<4x512xf32> to vector<4x128xf32>
    %168 = math.tanh %167 : vector<4x128xf32>
    %169 = vector.extract_strided_slice %154 {offsets = [0, 384], sizes = [4, 128], strides = [1, 1]} : vector<4x512xf32> to vector<4x128xf32>
    %170 = arith.negf %169 : vector<4x128xf32>
    %171 = math.exp %170 : vector<4x128xf32>
    %cst_54 = arith.constant 1.000000e+00 : f32
    %172 = vector.broadcast %cst_54 : f32 to vector<4x128xf32>
    %173 = arith.addf %172, %171 : vector<4x128xf32>
    %174 = arith.divf %172, %173 : vector<4x128xf32>
    %175 = arith.mulf %166, %143 : vector<4x128xf32>
    %176 = arith.mulf %160, %168 : vector<4x128xf32>
    %177 = arith.addf %175, %176 : vector<4x128xf32>
    %178 = math.tanh %177 : vector<4x128xf32>
    %179 = arith.mulf %174, %178 : vector<4x128xf32>
    %180 = arith.index_cast %c4_i32 : i32 to index
    %c0_55 = arith.constant 0 : index
    %c0_56 = arith.constant 0 : index
    %181 = vector.load %arg12[%180, %c0_55, %c0_56] : memref<8x4x128xf32, #tpu.memory_space<vmem>>, vector<1x4x128xf32>
    %182 = vector.shape_cast %181 : vector<1x4x128xf32> to vector<4x128xf32>
    %183 = vector.shape_cast %179 : vector<4x128xf32> to vector<1x4x128xf32>
    tpu.vector_store %arg12[%180, %c0_55, %c0_56], %183 {strides = array<i32>} : memref<8x4x128xf32, #tpu.memory_space<vmem>>, vector<1x4x128xf32>,
    %c5_i32 = arith.constant 5 : i32
    %184 = arith.index_cast %c5_i32 : i32 to index
    %c0_57 = arith.constant 0 : index
    %c0_58 = arith.constant 0 : index
    %185 = vector.load %arg13[%184, %c0_57, %c0_58] : memref<8x4x512xf32, #tpu.memory_space<vmem>>, vector<1x4x512xf32>
    %186 = vector.shape_cast %185 : vector<1x4x512xf32> to vector<4x512xf32>
    %cst_59 = arith.constant dense<0.000000e+00> : vector<4x512xf32>
    %187 = tpu.matmul %179, %9, %cst_59 {dimension_numbers = #tpu.dot_dimension_numbers<[1], [0], [0], [1], [0, 0, 1, 1], [], []>} : vector<4x128xf32>, vector<128x512xf32>, vector<4x512xf32> -> vector<4x512xf32>
    %188 = arith.addf %186, %187 : vector<4x512xf32>
    %189 = vector.extract_strided_slice %188 {offsets = [0, 0], sizes = [4, 128], strides = [1, 1]} : vector<4x512xf32> to vector<4x128xf32>
    %190 = arith.negf %189 : vector<4x128xf32>
    %191 = math.exp %190 : vector<4x128xf32>
    %cst_60 = arith.constant 1.000000e+00 : f32
    %192 = vector.broadcast %cst_60 : f32 to vector<4x128xf32>
    %193 = arith.addf %192, %191 : vector<4x128xf32>
    %194 = arith.divf %192, %193 : vector<4x128xf32>
    %195 = vector.extract_strided_slice %188 {offsets = [0, 128], sizes = [4, 128], strides = [1, 1]} : vector<4x512xf32> to vector<4x128xf32>
    %196 = arith.negf %195 : vector<4x128xf32>
    %197 = math.exp %196 : vector<4x128xf32>
    %cst_61 = arith.constant 1.000000e+00 : f32
    %198 = vector.broadcast %cst_61 : f32 to vector<4x128xf32>
    %199 = arith.addf %198, %197 : vector<4x128xf32>
    %200 = arith.divf %198, %199 : vector<4x128xf32>
    %201 = vector.extract_strided_slice %188 {offsets = [0, 256], sizes = [4, 128], strides = [1, 1]} : vector<4x512xf32> to vector<4x128xf32>
    %202 = math.tanh %201 : vector<4x128xf32>
    %203 = vector.extract_strided_slice %188 {offsets = [0, 384], sizes = [4, 128], strides = [1, 1]} : vector<4x512xf32> to vector<4x128xf32>
    %204 = arith.negf %203 : vector<4x128xf32>
    %205 = math.exp %204 : vector<4x128xf32>
    %cst_62 = arith.constant 1.000000e+00 : f32
    %206 = vector.broadcast %cst_62 : f32 to vector<4x128xf32>
    %207 = arith.addf %206, %205 : vector<4x128xf32>
    %208 = arith.divf %206, %207 : vector<4x128xf32>
    %209 = arith.mulf %200, %177 : vector<4x128xf32>
    %210 = arith.mulf %194, %202 : vector<4x128xf32>
    %211 = arith.addf %209, %210 : vector<4x128xf32>
    %212 = math.tanh %211 : vector<4x128xf32>
    %213 = arith.mulf %208, %212 : vector<4x128xf32>
    %214 = arith.index_cast %c5_i32 : i32 to index
    %c0_63 = arith.constant 0 : index
    %c0_64 = arith.constant 0 : index
    %215 = vector.load %arg12[%214, %c0_63, %c0_64] : memref<8x4x128xf32, #tpu.memory_space<vmem>>, vector<1x4x128xf32>
    %216 = vector.shape_cast %215 : vector<1x4x128xf32> to vector<4x128xf32>
    %217 = vector.shape_cast %213 : vector<4x128xf32> to vector<1x4x128xf32>
    tpu.vector_store %arg12[%214, %c0_63, %c0_64], %217 {strides = array<i32>} : memref<8x4x128xf32, #tpu.memory_space<vmem>>, vector<1x4x128xf32>,
    %c6_i32 = arith.constant 6 : i32
    %218 = arith.index_cast %c6_i32 : i32 to index
    %c0_65 = arith.constant 0 : index
    %c0_66 = arith.constant 0 : index
    %219 = vector.load %arg13[%218, %c0_65, %c0_66] : memref<8x4x512xf32, #tpu.memory_space<vmem>>, vector<1x4x512xf32>
    %220 = vector.shape_cast %219 : vector<1x4x512xf32> to vector<4x512xf32>
    %cst_67 = arith.constant dense<0.000000e+00> : vector<4x512xf32>
    %221 = tpu.matmul %213, %9, %cst_67 {dimension_numbers = #tpu.dot_dimension_numbers<[1], [0], [0], [1], [0, 0, 1, 1], [], []>} : vector<4x128xf32>, vector<128x512xf32>, vector<4x512xf32> -> vector<4x512xf32>
    %222 = arith.addf %220, %221 : vector<4x512xf32>
    %223 = vector.extract_strided_slice %222 {offsets = [0, 0], sizes = [4, 128], strides = [1, 1]} : vector<4x512xf32> to vector<4x128xf32>
    %224 = arith.negf %223 : vector<4x128xf32>
    %225 = math.exp %224 : vector<4x128xf32>
    %cst_68 = arith.constant 1.000000e+00 : f32
    %226 = vector.broadcast %cst_68 : f32 to vector<4x128xf32>
    %227 = arith.addf %226, %225 : vector<4x128xf32>
    %228 = arith.divf %226, %227 : vector<4x128xf32>
    %229 = vector.extract_strided_slice %222 {offsets = [0, 128], sizes = [4, 128], strides = [1, 1]} : vector<4x512xf32> to vector<4x128xf32>
    %230 = arith.negf %229 : vector<4x128xf32>
    %231 = math.exp %230 : vector<4x128xf32>
    %cst_69 = arith.constant 1.000000e+00 : f32
    %232 = vector.broadcast %cst_69 : f32 to vector<4x128xf32>
    %233 = arith.addf %232, %231 : vector<4x128xf32>
    %234 = arith.divf %232, %233 : vector<4x128xf32>
    %235 = vector.extract_strided_slice %222 {offsets = [0, 256], sizes = [4, 128], strides = [1, 1]} : vector<4x512xf32> to vector<4x128xf32>
    %236 = math.tanh %235 : vector<4x128xf32>
    %237 = vector.extract_strided_slice %222 {offsets = [0, 384], sizes = [4, 128], strides = [1, 1]} : vector<4x512xf32> to vector<4x128xf32>
    %238 = arith.negf %237 : vector<4x128xf32>
    %239 = math.exp %238 : vector<4x128xf32>
    %cst_70 = arith.constant 1.000000e+00 : f32
    %240 = vector.broadcast %cst_70 : f32 to vector<4x128xf32>
    %241 = arith.addf %240, %239 : vector<4x128xf32>
    %242 = arith.divf %240, %241 : vector<4x128xf32>
    %243 = arith.mulf %234, %211 : vector<4x128xf32>
    %244 = arith.mulf %228, %236 : vector<4x128xf32>
    %245 = arith.addf %243, %244 : vector<4x128xf32>
    %246 = math.tanh %245 : vector<4x128xf32>
    %247 = arith.mulf %242, %246 : vector<4x128xf32>
    %248 = arith.index_cast %c6_i32 : i32 to index
    %c0_71 = arith.constant 0 : index
    %c0_72 = arith.constant 0 : index
    %249 = vector.load %arg12[%248, %c0_71, %c0_72] : memref<8x4x128xf32, #tpu.memory_space<vmem>>, vector<1x4x128xf32>
    %250 = vector.shape_cast %249 : vector<1x4x128xf32> to vector<4x128xf32>
    %251 = vector.shape_cast %247 : vector<4x128xf32> to vector<1x4x128xf32>
    tpu.vector_store %arg12[%248, %c0_71, %c0_72], %251 {strides = array<i32>} : memref<8x4x128xf32, #tpu.memory_space<vmem>>, vector<1x4x128xf32>,
    %c7_i32 = arith.constant 7 : i32
    %252 = arith.index_cast %c7_i32 : i32 to index
    %c0_73 = arith.constant 0 : index
    %c0_74 = arith.constant 0 : index
    %253 = vector.load %arg13[%252, %c0_73, %c0_74] : memref<8x4x512xf32, #tpu.memory_space<vmem>>, vector<1x4x512xf32>
    %254 = vector.shape_cast %253 : vector<1x4x512xf32> to vector<4x512xf32>
    %cst_75 = arith.constant dense<0.000000e+00> : vector<4x512xf32>
    %255 = tpu.matmul %247, %9, %cst_75 {dimension_numbers = #tpu.dot_dimension_numbers<[1], [0], [0], [1], [0, 0, 1, 1], [], []>} : vector<4x128xf32>, vector<128x512xf32>, vector<4x512xf32> -> vector<4x512xf32>
    %256 = arith.addf %254, %255 : vector<4x512xf32>
    %257 = vector.extract_strided_slice %256 {offsets = [0, 0], sizes = [4, 128], strides = [1, 1]} : vector<4x512xf32> to vector<4x128xf32>
    %258 = arith.negf %257 : vector<4x128xf32>
    %259 = math.exp %258 : vector<4x128xf32>
    %cst_76 = arith.constant 1.000000e+00 : f32
    %260 = vector.broadcast %cst_76 : f32 to vector<4x128xf32>
    %261 = arith.addf %260, %259 : vector<4x128xf32>
    %262 = arith.divf %260, %261 : vector<4x128xf32>
    %263 = vector.extract_strided_slice %256 {offsets = [0, 128], sizes = [4, 128], strides = [1, 1]} : vector<4x512xf32> to vector<4x128xf32>
    %264 = arith.negf %263 : vector<4x128xf32>
    %265 = math.exp %264 : vector<4x128xf32>
    %cst_77 = arith.constant 1.000000e+00 : f32
    %266 = vector.broadcast %cst_77 : f32 to vector<4x128xf32>
    %267 = arith.addf %266, %265 : vector<4x128xf32>
    %268 = arith.divf %266, %267 : vector<4x128xf32>
    %269 = vector.extract_strided_slice %256 {offsets = [0, 256], sizes = [4, 128], strides = [1, 1]} : vector<4x512xf32> to vector<4x128xf32>
    %270 = math.tanh %269 : vector<4x128xf32>
    %271 = vector.extract_strided_slice %256 {offsets = [0, 384], sizes = [4, 128], strides = [1, 1]} : vector<4x512xf32> to vector<4x128xf32>
    %272 = arith.negf %271 : vector<4x128xf32>
    %273 = math.exp %272 : vector<4x128xf32>
    %cst_78 = arith.constant 1.000000e+00 : f32
    %274 = vector.broadcast %cst_78 : f32 to vector<4x128xf32>
    %275 = arith.addf %274, %273 : vector<4x128xf32>
    %276 = arith.divf %274, %275 : vector<4x128xf32>
    %277 = arith.mulf %268, %245 : vector<4x128xf32>
    %278 = arith.mulf %262, %270 : vector<4x128xf32>
    %279 = arith.addf %277, %278 : vector<4x128xf32>
    %280 = math.tanh %279 : vector<4x128xf32>
    %281 = arith.mulf %276, %280 : vector<4x128xf32>
    %282 = arith.index_cast %c7_i32 : i32 to index
    %c0_79 = arith.constant 0 : index
    %c0_80 = arith.constant 0 : index
    %283 = vector.load %arg12[%282, %c0_79, %c0_80] : memref<8x4x128xf32, #tpu.memory_space<vmem>>, vector<1x4x128xf32>
    %284 = vector.shape_cast %283 : vector<1x4x128xf32> to vector<4x128xf32>
    %285 = vector.shape_cast %281 : vector<4x128xf32> to vector<1x4x128xf32>
    tpu.vector_store %arg12[%282, %c0_79, %c0_80], %285 {strides = array<i32>} : memref<8x4x128xf32, #tpu.memory_space<vmem>>, vector<1x4x128xf32>,
    %c8_i32 = arith.constant 8 : i32
    %c0_81 = arith.constant 0 : index
    %c0_82 = arith.constant 0 : index
    %c0_83 = arith.constant 0 : index
    %286 = vector.load %arg12[%c0_81, %c0_82, %c0_83] : memref<8x4x128xf32, #tpu.memory_space<vmem>>, vector<8x4x128xf32>
    %287 = vector.shape_cast %286 : vector<8x4x128xf32> to vector<32x128xf32>
    %c0_84 = arith.constant 0 : index
    %c0_85 = arith.constant 0 : index
    %288 = vector.load %arg4[%c0_84, %c0_85] : memref<128x512xf32, #tpu.memory_space<vmem>>, vector<128x512xf32>
    %cst_86 = arith.constant dense<0.000000e+00> : vector<32x512xf32>
    %289 = tpu.matmul %287, %288, %cst_86 {dimension_numbers = #tpu.dot_dimension_numbers<[1], [0], [0], [1], [0, 0, 1, 1], [], []>} : vector<32x128xf32>, vector<128x512xf32>, vector<32x512xf32> -> vector<32x512xf32>
    %c0_87 = arith.constant 0 : index
    %c0_88 = arith.constant 0 : index
    %290 = vector.load %arg6[%c0_87, %c0_88] : memref<1x512xf32, #tpu.memory_space<vmem>>, vector<1x512xf32>
    %291 = vector.broadcast %290 : vector<1x512xf32> to vector<32x512xf32>
    %292 = arith.addf %289, %291 : vector<32x512xf32>
    %293 = vector.shape_cast %292 : vector<32x512xf32> to vector<8x4x512xf32>
    %c0_89 = arith.constant 0 : index
    %c0_90 = arith.constant 0 : index
    %c0_91 = arith.constant 0 : index
    %294 = vector.load %arg13[%c0_89, %c0_90, %c0_91] : memref<8x4x512xf32, #tpu.memory_space<vmem>>, vector<8x4x512xf32>
    tpu.vector_store %arg13[%c0_89, %c0_90, %c0_91], %293 {strides = array<i32>} : memref<8x4x512xf32, #tpu.memory_space<vmem>>, vector<8x4x512xf32>,
    %c0_92 = arith.constant 0 : index
    %c0_93 = arith.constant 0 : index
    %295 = vector.load %arg5[%c0_92, %c0_93] : memref<128x512xf32, #tpu.memory_space<vmem>>, vector<128x512xf32>
    %c1 = arith.constant 1 : index
    %c0_94 = arith.constant 0 : index
    %c0_95 = arith.constant 0 : index
    %296 = vector.load %arg7[%c1, %c0_94, %c0_95] : memref<2x4x128xf32, #tpu.memory_space<vmem>>, vector<1x4x128xf32>
    %297 = vector.shape_cast %296 : vector<1x4x128xf32> to vector<4x128xf32>
    %c1_96 = arith.constant 1 : index
    %c0_97 = arith.constant 0 : index
    %c0_98 = arith.constant 0 : index
    %298 = vector.load %arg8[%c1_96, %c0_97, %c0_98] : memref<2x4x128xf32, #tpu.memory_space<vmem>>, vector<1x4x128xf32>
    %299 = vector.shape_cast %298 : vector<1x4x128xf32> to vector<4x128xf32>
    %c0_i32_99 = arith.constant 0 : i32
    %300 = arith.index_cast %c0_i32_99 : i32 to index
    %c0_100 = arith.constant 0 : index
    %c0_101 = arith.constant 0 : index
    %301 = vector.load %arg13[%300, %c0_100, %c0_101] : memref<8x4x512xf32, #tpu.memory_space<vmem>>, vector<1x4x512xf32>
    %302 = vector.shape_cast %301 : vector<1x4x512xf32> to vector<4x512xf32>
    %cst_102 = arith.constant dense<0.000000e+00> : vector<4x512xf32>
    %303 = tpu.matmul %297, %295, %cst_102 {dimension_numbers = #tpu.dot_dimension_numbers<[1], [0], [0], [1], [0, 0, 1, 1], [], []>} : vector<4x128xf32>, vector<128x512xf32>, vector<4x512xf32> -> vector<4x512xf32>
    %304 = arith.addf %302, %303 : vector<4x512xf32>
    %305 = vector.extract_strided_slice %304 {offsets = [0, 0], sizes = [4, 128], strides = [1, 1]} : vector<4x512xf32> to vector<4x128xf32>
    %306 = arith.negf %305 : vector<4x128xf32>
    %307 = math.exp %306 : vector<4x128xf32>
    %cst_103 = arith.constant 1.000000e+00 : f32
    %308 = vector.broadcast %cst_103 : f32 to vector<4x128xf32>
    %309 = arith.addf %308, %307 : vector<4x128xf32>
    %310 = arith.divf %308, %309 : vector<4x128xf32>
    %311 = vector.extract_strided_slice %304 {offsets = [0, 128], sizes = [4, 128], strides = [1, 1]} : vector<4x512xf32> to vector<4x128xf32>
    %312 = arith.negf %311 : vector<4x128xf32>
    %313 = math.exp %312 : vector<4x128xf32>
    %cst_104 = arith.constant 1.000000e+00 : f32
    %314 = vector.broadcast %cst_104 : f32 to vector<4x128xf32>
    %315 = arith.addf %314, %313 : vector<4x128xf32>
    %316 = arith.divf %314, %315 : vector<4x128xf32>
    %317 = vector.extract_strided_slice %304 {offsets = [0, 256], sizes = [4, 128], strides = [1, 1]} : vector<4x512xf32> to vector<4x128xf32>
    %318 = math.tanh %317 : vector<4x128xf32>
    %319 = vector.extract_strided_slice %304 {offsets = [0, 384], sizes = [4, 128], strides = [1, 1]} : vector<4x512xf32> to vector<4x128xf32>
    %320 = arith.negf %319 : vector<4x128xf32>
    %321 = math.exp %320 : vector<4x128xf32>
    %cst_105 = arith.constant 1.000000e+00 : f32
    %322 = vector.broadcast %cst_105 : f32 to vector<4x128xf32>
    %323 = arith.addf %322, %321 : vector<4x128xf32>
    %324 = arith.divf %322, %323 : vector<4x128xf32>
    %325 = arith.mulf %316, %299 : vector<4x128xf32>
    %326 = arith.mulf %310, %318 : vector<4x128xf32>
    %327 = arith.addf %325, %326 : vector<4x128xf32>
    %328 = math.tanh %327 : vector<4x128xf32>
    %329 = arith.mulf %324, %328 : vector<4x128xf32>
    %c1_i32_106 = arith.constant 1 : i32
    %330 = arith.index_cast %c1_i32_106 : i32 to index
    %c0_107 = arith.constant 0 : index
    %c0_108 = arith.constant 0 : index
    %331 = vector.load %arg13[%330, %c0_107, %c0_108] : memref<8x4x512xf32, #tpu.memory_space<vmem>>, vector<1x4x512xf32>
    %332 = vector.shape_cast %331 : vector<1x4x512xf32> to vector<4x512xf32>
    %cst_109 = arith.constant dense<0.000000e+00> : vector<4x512xf32>
    %333 = tpu.matmul %329, %295, %cst_109 {dimension_numbers = #tpu.dot_dimension_numbers<[1], [0], [0], [1], [0, 0, 1, 1], [], []>} : vector<4x128xf32>, vector<128x512xf32>, vector<4x512xf32> -> vector<4x512xf32>
    %334 = arith.addf %332, %333 : vector<4x512xf32>
    %335 = vector.extract_strided_slice %334 {offsets = [0, 0], sizes = [4, 128], strides = [1, 1]} : vector<4x512xf32> to vector<4x128xf32>
    %336 = arith.negf %335 : vector<4x128xf32>
    %337 = math.exp %336 : vector<4x128xf32>
    %cst_110 = arith.constant 1.000000e+00 : f32
    %338 = vector.broadcast %cst_110 : f32 to vector<4x128xf32>
    %339 = arith.addf %338, %337 : vector<4x128xf32>
    %340 = arith.divf %338, %339 : vector<4x128xf32>
    %341 = vector.extract_strided_slice %334 {offsets = [0, 128], sizes = [4, 128], strides = [1, 1]} : vector<4x512xf32> to vector<4x128xf32>
    %342 = arith.negf %341 : vector<4x128xf32>
    %343 = math.exp %342 : vector<4x128xf32>
    %cst_111 = arith.constant 1.000000e+00 : f32
    %344 = vector.broadcast %cst_111 : f32 to vector<4x128xf32>
    %345 = arith.addf %344, %343 : vector<4x128xf32>
    %346 = arith.divf %344, %345 : vector<4x128xf32>
    %347 = vector.extract_strided_slice %334 {offsets = [0, 256], sizes = [4, 128], strides = [1, 1]} : vector<4x512xf32> to vector<4x128xf32>
    %348 = math.tanh %347 : vector<4x128xf32>
    %349 = vector.extract_strided_slice %334 {offsets = [0, 384], sizes = [4, 128], strides = [1, 1]} : vector<4x512xf32> to vector<4x128xf32>
    %350 = arith.negf %349 : vector<4x128xf32>
    %351 = math.exp %350 : vector<4x128xf32>
    %cst_112 = arith.constant 1.000000e+00 : f32
    %352 = vector.broadcast %cst_112 : f32 to vector<4x128xf32>
    %353 = arith.addf %352, %351 : vector<4x128xf32>
    %354 = arith.divf %352, %353 : vector<4x128xf32>
    %355 = arith.mulf %346, %327 : vector<4x128xf32>
    %356 = arith.mulf %340, %348 : vector<4x128xf32>
    %357 = arith.addf %355, %356 : vector<4x128xf32>
    %358 = math.tanh %357 : vector<4x128xf32>
    %359 = arith.mulf %354, %358 : vector<4x128xf32>
    %c2_i32_113 = arith.constant 2 : i32
    %360 = arith.index_cast %c2_i32_113 : i32 to index
    %c0_114 = arith.constant 0 : index
    %c0_115 = arith.constant 0 : index
    %361 = vector.load %arg13[%360, %c0_114, %c0_115] : memref<8x4x512xf32, #tpu.memory_space<vmem>>, vector<1x4x512xf32>
    %362 = vector.shape_cast %361 : vector<1x4x512xf32> to vector<4x512xf32>
    %cst_116 = arith.constant dense<0.000000e+00> : vector<4x512xf32>
    %363 = tpu.matmul %359, %295, %cst_116 {dimension_numbers = #tpu.dot_dimension_numbers<[1], [0], [0], [1], [0, 0, 1, 1], [], []>} : vector<4x128xf32>, vector<128x512xf32>, vector<4x512xf32> -> vector<4x512xf32>
    %364 = arith.addf %362, %363 : vector<4x512xf32>
    %365 = vector.extract_strided_slice %364 {offsets = [0, 0], sizes = [4, 128], strides = [1, 1]} : vector<4x512xf32> to vector<4x128xf32>
    %366 = arith.negf %365 : vector<4x128xf32>
    %367 = math.exp %366 : vector<4x128xf32>
    %cst_117 = arith.constant 1.000000e+00 : f32
    %368 = vector.broadcast %cst_117 : f32 to vector<4x128xf32>
    %369 = arith.addf %368, %367 : vector<4x128xf32>
    %370 = arith.divf %368, %369 : vector<4x128xf32>
    %371 = vector.extract_strided_slice %364 {offsets = [0, 128], sizes = [4, 128], strides = [1, 1]} : vector<4x512xf32> to vector<4x128xf32>
    %372 = arith.negf %371 : vector<4x128xf32>
    %373 = math.exp %372 : vector<4x128xf32>
    %cst_118 = arith.constant 1.000000e+00 : f32
    %374 = vector.broadcast %cst_118 : f32 to vector<4x128xf32>
    %375 = arith.addf %374, %373 : vector<4x128xf32>
    %376 = arith.divf %374, %375 : vector<4x128xf32>
    %377 = vector.extract_strided_slice %364 {offsets = [0, 256], sizes = [4, 128], strides = [1, 1]} : vector<4x512xf32> to vector<4x128xf32>
    %378 = math.tanh %377 : vector<4x128xf32>
    %379 = vector.extract_strided_slice %364 {offsets = [0, 384], sizes = [4, 128], strides = [1, 1]} : vector<4x512xf32> to vector<4x128xf32>
    %380 = arith.negf %379 : vector<4x128xf32>
    %381 = math.exp %380 : vector<4x128xf32>
    %cst_119 = arith.constant 1.000000e+00 : f32
    %382 = vector.broadcast %cst_119 : f32 to vector<4x128xf32>
    %383 = arith.addf %382, %381 : vector<4x128xf32>
    %384 = arith.divf %382, %383 : vector<4x128xf32>
    %385 = arith.mulf %376, %357 : vector<4x128xf32>
    %386 = arith.mulf %370, %378 : vector<4x128xf32>
    %387 = arith.addf %385, %386 : vector<4x128xf32>
    %388 = math.tanh %387 : vector<4x128xf32>
    %389 = arith.mulf %384, %388 : vector<4x128xf32>
    %c3_i32_120 = arith.constant 3 : i32
    %390 = arith.index_cast %c3_i32_120 : i32 to index
    %c0_121 = arith.constant 0 : index
    %c0_122 = arith.constant 0 : index
    %391 = vector.load %arg13[%390, %c0_121, %c0_122] : memref<8x4x512xf32, #tpu.memory_space<vmem>>, vector<1x4x512xf32>
    %392 = vector.shape_cast %391 : vector<1x4x512xf32> to vector<4x512xf32>
    %cst_123 = arith.constant dense<0.000000e+00> : vector<4x512xf32>
    %393 = tpu.matmul %389, %295, %cst_123 {dimension_numbers = #tpu.dot_dimension_numbers<[1], [0], [0], [1], [0, 0, 1, 1], [], []>} : vector<4x128xf32>, vector<128x512xf32>, vector<4x512xf32> -> vector<4x512xf32>
    %394 = arith.addf %392, %393 : vector<4x512xf32>
    %395 = vector.extract_strided_slice %394 {offsets = [0, 0], sizes = [4, 128], strides = [1, 1]} : vector<4x512xf32> to vector<4x128xf32>
    %396 = arith.negf %395 : vector<4x128xf32>
    %397 = math.exp %396 : vector<4x128xf32>
    %cst_124 = arith.constant 1.000000e+00 : f32
    %398 = vector.broadcast %cst_124 : f32 to vector<4x128xf32>
    %399 = arith.addf %398, %397 : vector<4x128xf32>
    %400 = arith.divf %398, %399 : vector<4x128xf32>
    %401 = vector.extract_strided_slice %394 {offsets = [0, 128], sizes = [4, 128], strides = [1, 1]} : vector<4x512xf32> to vector<4x128xf32>
    %402 = arith.negf %401 : vector<4x128xf32>
    %403 = math.exp %402 : vector<4x128xf32>
    %cst_125 = arith.constant 1.000000e+00 : f32
    %404 = vector.broadcast %cst_125 : f32 to vector<4x128xf32>
    %405 = arith.addf %404, %403 : vector<4x128xf32>
    %406 = arith.divf %404, %405 : vector<4x128xf32>
    %407 = vector.extract_strided_slice %394 {offsets = [0, 256], sizes = [4, 128], strides = [1, 1]} : vector<4x512xf32> to vector<4x128xf32>
    %408 = math.tanh %407 : vector<4x128xf32>
    %409 = vector.extract_strided_slice %394 {offsets = [0, 384], sizes = [4, 128], strides = [1, 1]} : vector<4x512xf32> to vector<4x128xf32>
    %410 = arith.negf %409 : vector<4x128xf32>
    %411 = math.exp %410 : vector<4x128xf32>
    %cst_126 = arith.constant 1.000000e+00 : f32
    %412 = vector.broadcast %cst_126 : f32 to vector<4x128xf32>
    %413 = arith.addf %412, %411 : vector<4x128xf32>
    %414 = arith.divf %412, %413 : vector<4x128xf32>
    %415 = arith.mulf %406, %387 : vector<4x128xf32>
    %416 = arith.mulf %400, %408 : vector<4x128xf32>
    %417 = arith.addf %415, %416 : vector<4x128xf32>
    %418 = math.tanh %417 : vector<4x128xf32>
    %419 = arith.mulf %414, %418 : vector<4x128xf32>
    %c4_i32_127 = arith.constant 4 : i32
    %420 = arith.index_cast %c4_i32_127 : i32 to index
    %c0_128 = arith.constant 0 : index
    %c0_129 = arith.constant 0 : index
    %421 = vector.load %arg13[%420, %c0_128, %c0_129] : memref<8x4x512xf32, #tpu.memory_space<vmem>>, vector<1x4x512xf32>
    %422 = vector.shape_cast %421 : vector<1x4x512xf32> to vector<4x512xf32>
    %cst_130 = arith.constant dense<0.000000e+00> : vector<4x512xf32>
    %423 = tpu.matmul %419, %295, %cst_130 {dimension_numbers = #tpu.dot_dimension_numbers<[1], [0], [0], [1], [0, 0, 1, 1], [], []>} : vector<4x128xf32>, vector<128x512xf32>, vector<4x512xf32> -> vector<4x512xf32>
    %424 = arith.addf %422, %423 : vector<4x512xf32>
    %425 = vector.extract_strided_slice %424 {offsets = [0, 0], sizes = [4, 128], strides = [1, 1]} : vector<4x512xf32> to vector<4x128xf32>
    %426 = arith.negf %425 : vector<4x128xf32>
    %427 = math.exp %426 : vector<4x128xf32>
    %cst_131 = arith.constant 1.000000e+00 : f32
    %428 = vector.broadcast %cst_131 : f32 to vector<4x128xf32>
    %429 = arith.addf %428, %427 : vector<4x128xf32>
    %430 = arith.divf %428, %429 : vector<4x128xf32>
    %431 = vector.extract_strided_slice %424 {offsets = [0, 128], sizes = [4, 128], strides = [1, 1]} : vector<4x512xf32> to vector<4x128xf32>
    %432 = arith.negf %431 : vector<4x128xf32>
    %433 = math.exp %432 : vector<4x128xf32>
    %cst_132 = arith.constant 1.000000e+00 : f32
    %434 = vector.broadcast %cst_132 : f32 to vector<4x128xf32>
    %435 = arith.addf %434, %433 : vector<4x128xf32>
    %436 = arith.divf %434, %435 : vector<4x128xf32>
    %437 = vector.extract_strided_slice %424 {offsets = [0, 256], sizes = [4, 128], strides = [1, 1]} : vector<4x512xf32> to vector<4x128xf32>
    %438 = math.tanh %437 : vector<4x128xf32>
    %439 = vector.extract_strided_slice %424 {offsets = [0, 384], sizes = [4, 128], strides = [1, 1]} : vector<4x512xf32> to vector<4x128xf32>
    %440 = arith.negf %439 : vector<4x128xf32>
    %441 = math.exp %440 : vector<4x128xf32>
    %cst_133 = arith.constant 1.000000e+00 : f32
    %442 = vector.broadcast %cst_133 : f32 to vector<4x128xf32>
    %443 = arith.addf %442, %441 : vector<4x128xf32>
    %444 = arith.divf %442, %443 : vector<4x128xf32>
    %445 = arith.mulf %436, %417 : vector<4x128xf32>
    %446 = arith.mulf %430, %438 : vector<4x128xf32>
    %447 = arith.addf %445, %446 : vector<4x128xf32>
    %448 = math.tanh %447 : vector<4x128xf32>
    %449 = arith.mulf %444, %448 : vector<4x128xf32>
    %c5_i32_134 = arith.constant 5 : i32
    %450 = arith.index_cast %c5_i32_134 : i32 to index
    %c0_135 = arith.constant 0 : index
    %c0_136 = arith.constant 0 : index
    %451 = vector.load %arg13[%450, %c0_135, %c0_136] : memref<8x4x512xf32, #tpu.memory_space<vmem>>, vector<1x4x512xf32>
    %452 = vector.shape_cast %451 : vector<1x4x512xf32> to vector<4x512xf32>
    %cst_137 = arith.constant dense<0.000000e+00> : vector<4x512xf32>
    %453 = tpu.matmul %449, %295, %cst_137 {dimension_numbers = #tpu.dot_dimension_numbers<[1], [0], [0], [1], [0, 0, 1, 1], [], []>} : vector<4x128xf32>, vector<128x512xf32>, vector<4x512xf32> -> vector<4x512xf32>
    %454 = arith.addf %452, %453 : vector<4x512xf32>
    %455 = vector.extract_strided_slice %454 {offsets = [0, 0], sizes = [4, 128], strides = [1, 1]} : vector<4x512xf32> to vector<4x128xf32>
    %456 = arith.negf %455 : vector<4x128xf32>
    %457 = math.exp %456 : vector<4x128xf32>
    %cst_138 = arith.constant 1.000000e+00 : f32
    %458 = vector.broadcast %cst_138 : f32 to vector<4x128xf32>
    %459 = arith.addf %458, %457 : vector<4x128xf32>
    %460 = arith.divf %458, %459 : vector<4x128xf32>
    %461 = vector.extract_strided_slice %454 {offsets = [0, 128], sizes = [4, 128], strides = [1, 1]} : vector<4x512xf32> to vector<4x128xf32>
    %462 = arith.negf %461 : vector<4x128xf32>
    %463 = math.exp %462 : vector<4x128xf32>
    %cst_139 = arith.constant 1.000000e+00 : f32
    %464 = vector.broadcast %cst_139 : f32 to vector<4x128xf32>
    %465 = arith.addf %464, %463 : vector<4x128xf32>
    %466 = arith.divf %464, %465 : vector<4x128xf32>
    %467 = vector.extract_strided_slice %454 {offsets = [0, 256], sizes = [4, 128], strides = [1, 1]} : vector<4x512xf32> to vector<4x128xf32>
    %468 = math.tanh %467 : vector<4x128xf32>
    %469 = vector.extract_strided_slice %454 {offsets = [0, 384], sizes = [4, 128], strides = [1, 1]} : vector<4x512xf32> to vector<4x128xf32>
    %470 = arith.negf %469 : vector<4x128xf32>
    %471 = math.exp %470 : vector<4x128xf32>
    %cst_140 = arith.constant 1.000000e+00 : f32
    %472 = vector.broadcast %cst_140 : f32 to vector<4x128xf32>
    %473 = arith.addf %472, %471 : vector<4x128xf32>
    %474 = arith.divf %472, %473 : vector<4x128xf32>
    %475 = arith.mulf %466, %447 : vector<4x128xf32>
    %476 = arith.mulf %460, %468 : vector<4x128xf32>
    %477 = arith.addf %475, %476 : vector<4x128xf32>
    %478 = math.tanh %477 : vector<4x128xf32>
    %479 = arith.mulf %474, %478 : vector<4x128xf32>
    %c6_i32_141 = arith.constant 6 : i32
    %480 = arith.index_cast %c6_i32_141 : i32 to index
    %c0_142 = arith.constant 0 : index
    %c0_143 = arith.constant 0 : index
    %481 = vector.load %arg13[%480, %c0_142, %c0_143] : memref<8x4x512xf32, #tpu.memory_space<vmem>>, vector<1x4x512xf32>
    %482 = vector.shape_cast %481 : vector<1x4x512xf32> to vector<4x512xf32>
    %cst_144 = arith.constant dense<0.000000e+00> : vector<4x512xf32>
    %483 = tpu.matmul %479, %295, %cst_144 {dimension_numbers = #tpu.dot_dimension_numbers<[1], [0], [0], [1], [0, 0, 1, 1], [], []>} : vector<4x128xf32>, vector<128x512xf32>, vector<4x512xf32> -> vector<4x512xf32>
    %484 = arith.addf %482, %483 : vector<4x512xf32>
    %485 = vector.extract_strided_slice %484 {offsets = [0, 0], sizes = [4, 128], strides = [1, 1]} : vector<4x512xf32> to vector<4x128xf32>
    %486 = arith.negf %485 : vector<4x128xf32>
    %487 = math.exp %486 : vector<4x128xf32>
    %cst_145 = arith.constant 1.000000e+00 : f32
    %488 = vector.broadcast %cst_145 : f32 to vector<4x128xf32>
    %489 = arith.addf %488, %487 : vector<4x128xf32>
    %490 = arith.divf %488, %489 : vector<4x128xf32>
    %491 = vector.extract_strided_slice %484 {offsets = [0, 128], sizes = [4, 128], strides = [1, 1]} : vector<4x512xf32> to vector<4x128xf32>
    %492 = arith.negf %491 : vector<4x128xf32>
    %493 = math.exp %492 : vector<4x128xf32>
    %cst_146 = arith.constant 1.000000e+00 : f32
    %494 = vector.broadcast %cst_146 : f32 to vector<4x128xf32>
    %495 = arith.addf %494, %493 : vector<4x128xf32>
    %496 = arith.divf %494, %495 : vector<4x128xf32>
    %497 = vector.extract_strided_slice %484 {offsets = [0, 256], sizes = [4, 128], strides = [1, 1]} : vector<4x512xf32> to vector<4x128xf32>
    %498 = math.tanh %497 : vector<4x128xf32>
    %499 = vector.extract_strided_slice %484 {offsets = [0, 384], sizes = [4, 128], strides = [1, 1]} : vector<4x512xf32> to vector<4x128xf32>
    %500 = arith.negf %499 : vector<4x128xf32>
    %501 = math.exp %500 : vector<4x128xf32>
    %cst_147 = arith.constant 1.000000e+00 : f32
    %502 = vector.broadcast %cst_147 : f32 to vector<4x128xf32>
    %503 = arith.addf %502, %501 : vector<4x128xf32>
    %504 = arith.divf %502, %503 : vector<4x128xf32>
    %505 = arith.mulf %496, %477 : vector<4x128xf32>
    %506 = arith.mulf %490, %498 : vector<4x128xf32>
    %507 = arith.addf %505, %506 : vector<4x128xf32>
    %508 = math.tanh %507 : vector<4x128xf32>
    %509 = arith.mulf %504, %508 : vector<4x128xf32>
    %c7_i32_148 = arith.constant 7 : i32
    %510 = arith.index_cast %c7_i32_148 : i32 to index
    %c0_149 = arith.constant 0 : index
    %c0_150 = arith.constant 0 : index
    %511 = vector.load %arg13[%510, %c0_149, %c0_150] : memref<8x4x512xf32, #tpu.memory_space<vmem>>, vector<1x4x512xf32>
    %512 = vector.shape_cast %511 : vector<1x4x512xf32> to vector<4x512xf32>
    %cst_151 = arith.constant dense<0.000000e+00> : vector<4x512xf32>
    %513 = tpu.matmul %509, %295, %cst_151 {dimension_numbers = #tpu.dot_dimension_numbers<[1], [0], [0], [1], [0, 0, 1, 1], [], []>} : vector<4x128xf32>, vector<128x512xf32>, vector<4x512xf32> -> vector<4x512xf32>
    %514 = arith.addf %512, %513 : vector<4x512xf32>
    %515 = vector.extract_strided_slice %514 {offsets = [0, 0], sizes = [4, 128], strides = [1, 1]} : vector<4x512xf32> to vector<4x128xf32>
    %516 = arith.negf %515 : vector<4x128xf32>
    %517 = math.exp %516 : vector<4x128xf32>
    %cst_152 = arith.constant 1.000000e+00 : f32
    %518 = vector.broadcast %cst_152 : f32 to vector<4x128xf32>
    %519 = arith.addf %518, %517 : vector<4x128xf32>
    %520 = arith.divf %518, %519 : vector<4x128xf32>
    %521 = vector.extract_strided_slice %514 {offsets = [0, 128], sizes = [4, 128], strides = [1, 1]} : vector<4x512xf32> to vector<4x128xf32>
    %522 = arith.negf %521 : vector<4x128xf32>
    %523 = math.exp %522 : vector<4x128xf32>
    %cst_153 = arith.constant 1.000000e+00 : f32
    %524 = vector.broadcast %cst_153 : f32 to vector<4x128xf32>
    %525 = arith.addf %524, %523 : vector<4x128xf32>
    %526 = arith.divf %524, %525 : vector<4x128xf32>
    %527 = vector.extract_strided_slice %514 {offsets = [0, 256], sizes = [4, 128], strides = [1, 1]} : vector<4x512xf32> to vector<4x128xf32>
    %528 = math.tanh %527 : vector<4x128xf32>
    %529 = vector.extract_strided_slice %514 {offsets = [0, 384], sizes = [4, 128], strides = [1, 1]} : vector<4x512xf32> to vector<4x128xf32>
    %530 = arith.negf %529 : vector<4x128xf32>
    %531 = math.exp %530 : vector<4x128xf32>
    %cst_154 = arith.constant 1.000000e+00 : f32
    %532 = vector.broadcast %cst_154 : f32 to vector<4x128xf32>
    %533 = arith.addf %532, %531 : vector<4x128xf32>
    %534 = arith.divf %532, %533 : vector<4x128xf32>
    %535 = arith.mulf %526, %507 : vector<4x128xf32>
    %536 = arith.mulf %520, %528 : vector<4x128xf32>
    %537 = arith.addf %535, %536 : vector<4x128xf32>
    %538 = math.tanh %537 : vector<4x128xf32>
    %539 = arith.mulf %534, %538 : vector<4x128xf32>
    %c8_i32_155 = arith.constant 8 : i32
    %c0_156 = arith.constant 0 : index
    %c0_157 = arith.constant 0 : index
    %540 = vector.load %arg9[%c0_156, %c0_157] : memref<128x1xf32, #tpu.memory_space<vmem>>, vector<128x1xf32>
    %cst_158 = arith.constant dense<0.000000e+00> : vector<4x1xf32>
    %541 = tpu.matmul %539, %540, %cst_158 {dimension_numbers = #tpu.dot_dimension_numbers<[1], [0], [0], [1], [0, 0, 1, 1], [], []>} : vector<4x128xf32>, vector<128x1xf32>, vector<4x1xf32> -> vector<4x1xf32>
    %c0_159 = arith.constant 0 : index
    %c0_160 = arith.constant 0 : index
    %542 = vector.load %arg10[%c0_159, %c0_160] : memref<1x1xf32, #tpu.memory_space<vmem>>, vector<1x1xf32>
    %543 = vector.broadcast %542 : vector<1x1xf32> to vector<4x1xf32>
    %544 = arith.addf %541, %543 : vector<4x1xf32>
    %c0_161 = arith.constant 0 : index
    %c0_162 = arith.constant 0 : index
    %545 = vector.load %arg11[%c0_161, %c0_162] : memref<4x1xf32, #tpu.memory_space<vmem>>, vector<4x1xf32>
    tpu.vector_store %arg11[%c0_161, %c0_162], %544 {strides = array<i32>} : memref<4x1xf32, #tpu.memory_space<vmem>>, vector<4x1xf32>,
    return
  }
}

</mosaic_0001>

<bundles_post_ra>
// kernel: lstm_model_forward.1
= control target key start
LH: loop header
LB: loop body
LE: loop exit
PB: predicated region body
PF: predicated region fallthrough
CT: control target
= control target key end

     0   :  { %s6760_s0 = inlined_call_operand.vmem [shape: f32[8,4,4], index: 0, kind: input, shape index: {}]   ;;  %s6761_s1 = inlined_call_operand.vmem [shape: f32[4,512], index: 1, kind: input, shape index: {}]   ;;  %s6762_s2 = inlined_call_operand.hbm [shape: f32[128,512], index: 2, kind: input, shape index: {}]   ;;  %s6763_s3 = inlined_call_operand.vmem [shape: f32[1,512], index: 3, kind: input, shape index: {}]   ;;  %s6764_s4 = inlined_call_operand.hbm [shape: f32[128,512], index: 4, kind: input, shape index: {}]   ;;  %s6765_s5 = inlined_call_operand.hbm [shape: f32[128,512], index: 5, kind: input, shape index: {}]   ;;  %s6766_s6 = inlined_call_operand.vmem [shape: f32[1,512], index: 6, kind: input, shape index: {}]   ;;  %s6767_s7 = inlined_call_operand.vmem [shape: f32[2,4,128], index: 7, kind: input, shape index: {}]   ;;  %s6768_s8 = inlined_call_operand.vmem [shape: f32[2,4,128], index: 8, kind: input, shape index: {}]   ;;  %s6769_s9 = inlined_call_operand.vmem [shape: f32[128,1], index: 9, kind: input, shape index: {}]   ;;  %s6770_s10 = inlined_call_operand.<no memory space> [shape: f32[1,1], index: 10, kind: input, shape index: {}]   ;;  %s6771_s11 = inlined_call_operand.vmem [shape: f32[4,1], index: 11, kind: output, shape index: {}]  }
   0x1   :  { %v16_v0 = vstv %s6770_s10 }
   0x2   :  { %17 = vst [vmem:[#allocation4] sm:$0x1] %v16_v0 }
   0x3   :  { %18 = vsyncpa [#allocation6], 0 }
   0x4   :  { %19 = vsyncpa [#allocation8], 0  ;;  %s5513_s19 = smov [#allocation7]   ;;  %s5514_s21 = smov [#allocation5]  }
   0x5   :  { %s43_s20 = sshll.u32 %s5513_s19, 4  ;;  %s29_s22 = sshll.u32 %s5514_s21, 4  ;;  %s44_s20 = int_to_ptr.vmem [resolvable:$true] %s43_s20  ;;  %s5584_s22 = int_to_ptr.vmem [resolvable:$true] %s29_s22 }
   0x6   :  { %s5443_s25 = scalar_lea.hbm %s6764_s4, 8192 }
   0x7   :  { %p5444_p0 = scmp.ne.s32.totalorder %s6764_s4, %s5443_s25  ;;  %p5447_p1 = scmp.lt.u32.totalorder %s5443_s25, %s6764_s4 }
   0x9   :  { %p5449_p2 = pnand %p5447_p1, %p5444_p0 }
   0xb   :  { %5452 = shalt.err (!%p5449_p2)
}
   0xc   :  { %s5453_s29 = scalar_lea.vmem %s44_s20, 8192  ;;  %p5458_p4 = scmp.lt.s32.totalorder %s44_s20, %s44_s20 }
   0xd   :  { %p5454_p3 = scmp.ne.s32.totalorder %s44_s20, %s5453_s29  ;;  %p5459_p5 = scmp.lt.s32.totalorder %s5453_s29, %s5453_s29 }
   0xf   :  { %p5460_p6 = por %p5459_p5, %p5458_p4 }
  0x11   :  { %p5461_p7 = pnand %p5460_p6, %p5454_p3 }
  0x13   :  { %5464 = shalt.err (!%p5461_p7)
}
  0x14   :  { %s5515_s30 = smov 512   ;;  %s5516_s12 = smov 32  }
  0x15   :  { %49 = dma.hbm_to_vmem [thread:$0]  %s6764_s4, 8192, %s44_s20, [#allocation8], %s5515_s30, %s5515_s30, %s5516_s12  }
  0x16   :  { %s5465_s17 = scalar_lea.hbm %s6762_s2, 8192 }
  0x17   :  { %p5466_p8 = scmp.ne.s32.totalorder %s6762_s2, %s5465_s17  ;;  %p5469_p9 = scmp.lt.u32.totalorder %s5465_s17, %s6762_s2 }
  0x19   :  { %p5471_p10 = pnand %p5469_p9, %p5466_p8 }
  0x1b   :  { %5474 = shalt.err (!%p5471_p10)
}
  0x1c   :  { %s5475_s24 = scalar_lea.vmem %s5584_s22, 8192  ;;  %p5480_p12 = scmp.lt.s32.totalorder %s5584_s22, %s5584_s22 }
  0x1d   :  { %p5476_p11 = scmp.ne.s32.totalorder %s5584_s22, %s5475_s24  ;;  %p5481_p13 = scmp.lt.s32.totalorder %s5475_s24, %s5475_s24 }
  0x1f   :  { %p5482_p0 = por %p5481_p13, %p5480_p12 }
  0x21   :  { %p5483_p1 = pnand %p5482_p0, %p5476_p11 }
  0x23   :  { %5486 = shalt.err (!%p5483_p1)
}
  0x24   :  { %35 = dma.hbm_to_vmem [thread:$0]  %s6762_s2, 8192, %s5584_s22, [#allocation6], %s5515_s30, %s5515_s30, %s5516_s12  }
  0x25   :  { %s5517_s25 = smov [#allocation9]   ;;  %s5487_s10 = scalar_lea.hbm %s6765_s5, 8192 }
  0x26   :  { %s55_s26 = sshll.u32 %s5517_s25, 4  ;;  %p5488_p2 = scmp.ne.s32.totalorder %s6765_s5, %s5487_s10  ;;  %s56_s26 = int_to_ptr.vmem [resolvable:$true] %s55_s26 }
  0x27   :  { %p5491_p3 = scmp.lt.u32.totalorder %s5487_s10, %s6765_s5 }
  0x29   :  { %p5493_p4 = pnand %p5491_p3, %p5488_p2 }
  0x2b   :  { %5496 = shalt.err (!%p5493_p4)
}
  0x2c   :  { %s5497_s16 = scalar_lea.vmem %s56_s26, 8192  ;;  %p5502_p6 = scmp.lt.s32.totalorder %s56_s26, %s56_s26 }
  0x2d   :  { %p5498_p5 = scmp.ne.s32.totalorder %s56_s26, %s5497_s16  ;;  %p5503_p7 = scmp.lt.s32.totalorder %s5497_s16, %s5497_s16 }
  0x2f   :  { %p5504_p8 = por %p5503_p7, %p5502_p6 }
  0x31   :  { %p5505_p9 = pnand %p5504_p8, %p5498_p5 }
  0x33   :  { %5508 = shalt.err (!%p5505_p9)
}
  0x34   :  { %61 = dma.hbm_to_vmem [thread:$0]  %s6765_s5, 8192, %s56_s26, [#allocation8], %s5515_s30, %s5515_s30, %s5516_s12  }
  0x35   :  { %5509 = dma.done.wait [#allocation6], 8192  }
  0x36   :  { %5510 = vsyncadd [#allocation6], 4294959104 }
  0x37   :  { %5511 = dma.done.wait [#allocation8], 16384  }
  0x38   :  { %5512 = vsyncadd [#allocation8], 4294950912  ;;  %v6776_v1 = vmov 0.0   ;;  %v89_v2 = vld [vmem:[%s6761_s1] sm:$0xff]  ;;  %vm138_vm0 = vcmask 1043456   ;;  %v390_v3 = vld [vmem:[#allocation5 + $0x8] sm:$0xff] }
  0x39   :  { %211 = vmatprep.mubr.f32.mxu1 %v6776_v1  ;;  %521 = vmatprep.mubr.f32.mxu0 %v6776_v1  ;;  %v394_v4 = vld [vmem:[#allocation5 + $0x28] sm:$0xff]  ;;  %v127_v5 = vcombine.high %v89_v2, %v89_v2  ;;  %v389_v7 = vld [vmem:[#allocation5] sm:$0xff]  ;;  %vm129_vm1 = vcmask 31744   ;;  %v392_v34 = vld [vmem:[#allocation5 + $0x18] sm:$0xff]  ;;  %vm5520_vm2 = vmmov 0   ;;  %vm3934_vm3 = vcmask 3072  }
  0x3a   :  { %v5641_v6 = vpack.c.bf16 %v394_v4, %v390_v3  ;;  %v393_v8 = vld [vmem:[#allocation5 + $0x20] sm:$0xff]  ;;  %v398_v13 = vld [vmem:[#allocation5 + $0x48] sm:$0xff]  ;;  %v396_v35 = vld [vmem:[#allocation5 + $0x38] sm:$0xff] }
  0x3b   :  { %v5643_v9 = vpack.c.bf16 %v393_v8, %v389_v7  ;;  %v5648_v10 = vld [vmem:[%s6760_s0] sm:$0xff]   ;;  %v90_v11 = vld [vmem:[%s6761_s1 + $0x8] sm:$0xff]  ;;  %3942 = vmatprep.subr.msk.mxu1 %vm138_vm0, %v127_v5  ;;  %v5680_v27 = vld [vmem:[%s6760_s0 + $0x10] sm:$0xff]   ;;  %v5691_v37 = vpack.c.bf16 %v396_v35, %v392_v34 }
  0x3c   :  { %4058 = vmatprep.subr.bf16.mxu0 %v5641_v6  ;;  %v128_v12 = vcombine.high %v90_v11, %v90_v11  ;;  %v402_v14 = vld [vmem:[#allocation5 + $0x68] sm:$0xff]  ;;  %v397_v15 = vld [vmem:[#allocation5 + $0x40] sm:$0xff]  ;;  %3943 = vmatpush1.msk.msra.mxu1 %vm138_vm0, %v89_v2  ;;  %v5699_v38 = vld [vmem:[%s6760_s0 + $0x18] sm:$0xff]  }
  0x3d   :  { %4060 = vmatpush1.bf16.msra.mxu0 %v5643_v9  ;;  %v5657_v16 = vpack.c.bf16 %v402_v14, %v398_v13  ;;  %v401_v17 = vld [vmem:[#allocation5 + $0x60] sm:$0xff]  ;;  %3944 = vmatmul.mubr.msk.f32.vlgmr.msra.gmra.mrb[0].mxu1 %vm129_vm1, %v5648_v10  ;;  %v406_v20 = vld [vmem:[#allocation5 + $0x88] sm:$0xff]  ;;  %v391_v44 = vld [vmem:[#allocation5 + $0x10] sm:$0xff] }
  0x3e   :  { %3948 = vmatprep.subr.msk.mxu1 %vm138_vm0, %v128_v12  ;;  %v5662_v18 = vpack.c.bf16 %v401_v17, %v397_v15  ;;  %v5667_v19 = vld [vmem:[%s6760_s0 + $0x8] sm:$0xff]   ;;  %217 = vmatprep.mubr.f32.mxu1 %v6776_v1  ;;  %v395_v45 = vld [vmem:[#allocation5 + $0x30] sm:$0xff]  ;;  %v400_v47 = vld [vmem:[#allocation5 + $0x58] sm:$0xff] }
  0x3f   :  { %v410_v21 = vld [vmem:[#allocation5 + $0xa8] sm:$0xff]  ;;  %3949 = vmatpush1.msk.msra.mxu1 %vm138_vm0, %v90_v11  ;;  %4062 = vmatprep.subr.bf16.mxu0 %v5657_v16  ;;  %v405_v23 = vld [vmem:[#allocation5 + $0x80] sm:$0xff]  ;;  %v404_v48 = vld [vmem:[#allocation5 + $0x78] sm:$0xff]  ;;  %v5714_v52 = vpack.c.bf16 %v395_v45, %v391_v44 }
  0x40   :  { %v5671_v22 = vpack.c.bf16 %v410_v21, %v406_v20  ;;  %v409_v24 = vld [vmem:[#allocation5 + $0xa0] sm:$0xff]  ;;  %v414_v25 = vld [vmem:[#allocation5 + $0xc8] sm:$0xff]  ;;  %4090 = vmatprep.subr.bf16.mxu1 %v5691_v37  ;;  %v5716_v55 = vpack.c.bf16 %v404_v48, %v400_v47  ;;  %v399_v56 = vld [vmem:[#allocation5 + $0x50] sm:$0xff] }
  0x41   :  { %4064 = vmatpush1.bf16.msra.mxu0 %v5662_v18  ;;  %v5675_v26 = vpack.c.bf16 %v409_v24, %v405_v23  ;;  %v418_v28 = vld [vmem:[#allocation5 + $0xe8] sm:$0xff]  ;;  %v413_v29 = vld [vmem:[#allocation5 + $0xc0] sm:$0xff]  ;;  %3945 = vmatmul.mubr.msk.f32.gmra.mrb[2].mxu1 %vm129_vm1, %v5667_v19  ;;  %v403_v57 = vld [vmem:[#allocation5 + $0x70] sm:$0xff] }
  0x42   :  { %4066 = vmatprep.subr.bf16.mxu0 %v5671_v22  ;;  %v5685_v30 = vpack.c.bf16 %v418_v28, %v414_v25  ;;  %v417_v31 = vld [vmem:[#allocation5 + $0xe0] sm:$0xff]  ;;  %223 = vmatprep.mubr.f32.mxu1 %v6776_v1  ;;  %v422_v32 = vld [vmem:[#allocation5 + $0x108] sm:$0xff]  ;;  %v408_v59 = vld [vmem:[#allocation5 + $0x98] sm:$0xff]  ;;  %v5727_v0 = vpack.c.bf16 %v403_v57, %v399_v56 }
  0x43   :  { %v426_v33 = vld [vmem:[#allocation5 + $0x128] sm:$0xff]  ;;  %v5689_v36 = vpack.c.bf16 %v417_v31, %v413_v29  ;;  %v421_v40 = vld [vmem:[#allocation5 + $0x100] sm:$0xff]  ;;  %v412_v60 = vld [vmem:[#allocation5 + $0xb8] sm:$0xff] }
  0x44   :  { %v5701_v39 = vpack.c.bf16 %v426_v33, %v422_v32  ;;  %v425_v41 = vld [vmem:[#allocation5 + $0x120] sm:$0xff]  ;;  %v430_v42 = vld [vmem:[#allocation5 + $0x148] sm:$0xff]  ;;  %v5731_v4 = vpack.c.bf16 %v412_v60, %v408_v59  ;;  %v407_v5 = vld [vmem:[#allocation5 + $0x90] sm:$0xff]  ;;  %v93_v59 = vlaneseq }
  0x45   :  { %4068 = vmatpush1.bf16.msra.mxu0 %v5675_v26  ;;  %3946 = vmatmul.mubr.msk.f32.gmra.mrb[4].mxu1 %vm129_vm1, %v5680_v27  ;;  %v434_v43 = vld [vmem:[#allocation5 + $0x168] sm:$0xff]  ;;  %v5706_v46 = vpack.c.bf16 %v425_v41, %v421_v40  ;;  %v429_v50 = vld [vmem:[#allocation5 + $0x140] sm:$0xff]  ;;  %v411_v7 = vld [vmem:[#allocation5 + $0xb0] sm:$0xff] }
  0x46   :  { %4070 = vmatprep.subr.bf16.mxu0 %v5685_v30  ;;  %229 = vmatprep.mubr.f32.mxu1 %v6776_v1  ;;  %v5711_v49 = vpack.c.bf16 %v434_v43, %v430_v42  ;;  %v433_v51 = vld [vmem:[#allocation5 + $0x160] sm:$0xff]  ;;  %v438_v53 = vld [vmem:[#allocation5 + $0x188] sm:$0xff]  ;;  %v420_v11 = vld [vmem:[#allocation5 + $0xf8] sm:$0xff]  ;;  %v5742_v15 = vpack.c.bf16 %v411_v7, %v407_v5  ;;  %v5827_v60 = vshrl.u32 %v93_v59, 7 }
  0x47   :  { %v442_v54 = vld [vmem:[#allocation5 + $0x1a8] sm:$0xff]  ;;  %v5719_v58 = vpack.c.bf16 %v433_v51, %v429_v50  ;;  %v437_v62 = vld [vmem:[#allocation5 + $0x180] sm:$0xff]  ;;  %v415_v20 = vld [vmem:[#allocation5 + $0xd0] sm:$0xff] }
  0x48   :  { %v5724_v61 = vpack.c.bf16 %v442_v54, %v438_v53  ;;  %v441_v63 = vld [vmem:[#allocation5 + $0x1a0] sm:$0xff]  ;;  %v446_v2 = vld [vmem:[#allocation5 + $0x1c8] sm:$0xff]  ;;  %v419_v21 = vld [vmem:[#allocation5 + $0xf0] sm:$0xff]  ;;  %6792 = vst [vmem:[#allocation12_spill] sm:$0xff] %v5827_v60 }
  0x49   :  { %4072 = vmatpush1.bf16.msra.mxu0 %v5689_v36  ;;  %3947 = vmatmul.mubr.msk.f32.gmra.mrb[6].mxu1 %vm129_vm1, %v5699_v38  ;;  %v450_v3 = vld [vmem:[#allocation5 + $0x1e8] sm:$0xff]  ;;  %v5734_v8 = vpack.c.bf16 %v441_v63, %v437_v62  ;;  %v445_v13 = vld [vmem:[#allocation5 + $0x1c0] sm:$0xff]  ;;  %v424_v24 = vld [vmem:[#allocation5 + $0x118] sm:$0xff]  ;;  %v6775_v62 = vsub.s32 0, %v5827_v60 }
  0x4a   :  { %4074 = vmatprep.subr.bf16.mxu0 %v5701_v39  ;;  %300 = vmatprep.mubr.f32.mxu1 %v6776_v1  ;;  %v5737_v12 = vpack.c.bf16 %v450_v3, %v446_v2  ;;  %v449_v14 = vld [vmem:[#allocation5 + $0x1e0] sm:$0xff]  ;;  %v428_v25 = vld [vmem:[#allocation5 + $0x138] sm:$0xff]  ;;  %v423_v29 = vld [vmem:[#allocation5 + $0x110] sm:$0xff]  ;;  %v6773_v2 = vsub.s32 1, %v5827_v60 }
  0x4b   :  { %v5749_v23 = vpack.c.bf16 %v449_v14, %v445_v13  ;;  %v5759_v28 = vpack.c.bf16 %v428_v25, %v424_v24  ;;  %v427_v31 = vld [vmem:[#allocation5 + $0x130] sm:$0xff]  ;;  %v453_v32 = vld [vmem:[%s6767_s7] sm:$0xf] }
  0x4c   :  { %v432_v33 = vld [vmem:[#allocation5 + $0x158] sm:$0xff]  ;;  %v5769_v34 = vpack.c.bf16 %v427_v31, %v423_v29  ;;  %v431_v40 = vld [vmem:[#allocation5 + $0x150] sm:$0xff] }
  0x4d   :  { %4076 = vmatpush1.bf16.msra.mxu0 %v5706_v46  ;;  %3950 = vmatmul.mubr.msk.f32.vlgmr.msra.gmra.mrb[8].mxu1 %vm129_vm1, %v5648_v10  ;;  %v416_v10 = vld [vmem:[#allocation5 + $0xd8] sm:$0xff]  ;;  %v435_v41 = vld [vmem:[#allocation5 + $0x170] sm:$0xff] }
  0x4e   :  { %4078 = vmatprep.subr.bf16.mxu0 %v5711_v49  ;;  %4092 = vmatpush1.bf16.msra.mxu1 %v5714_v52  ;;  %v5746_v17 = vpack.c.bf16 %v420_v11, %v416_v10  ;;  %v440_v42 = vld [vmem:[#allocation5 + $0x198] sm:$0xff]  ;;  %v439_v45 = vld [vmem:[#allocation5 + $0x190] sm:$0xff] }
  0x4f   :  { %306 = vmatprep.mubr.f32.mxu1 %v6776_v1  ;;  %4094 = vmatprep.subr.bf16.mxu1 %v5716_v55  ;;  %v444_v43 = vld [vmem:[#allocation5 + $0x1b8] sm:$0xff]  ;;  %v443_v47 = vld [vmem:[#allocation5 + $0x1b0] sm:$0xff] }
  0x50   :  { %v5782_v44 = vpack.c.bf16 %v444_v43, %v440_v42  ;;  %v448_v48 = vld [vmem:[#allocation5 + $0x1d8] sm:$0xff]  ;;  %v5787_v51 = vpack.c.bf16 %v443_v47, %v439_v45  ;;  %v447_v54 = vld [vmem:[#allocation5 + $0x1d0] sm:$0xff]  ;;  %v6772_v43 = vsub.s32 3, %v5827_v60 }
  0x51   :  { %4080 = vmatpush1.bf16.msra.mxu0 %v5719_v58  ;;  %3951 = vmatmul.mubr.msk.f32.gmra.mrb[10].mxu1 %vm129_vm1, %v5667_v19  ;;  %v5755_v19 = vpack.c.bf16 %v419_v21, %v415_v20  ;;  %v452_v50 = vld [vmem:[#allocation5 + $0x1f8] sm:$0xff]  ;;  %v451_v56 = vld [vmem:[#allocation5 + $0x1f0] sm:$0xff] }
  0x52   :  { %4082 = vmatprep.subr.bf16.mxu0 %v5724_v61  ;;  %4096 = vmatpush1.bf16.msra.mxu1 %v5727_v0  ;;  %v5790_v53 = vpack.c.bf16 %v452_v50, %v448_v48  ;;  %v5795_v57 = vpack.c.bf16 %v451_v56, %v447_v54  ;;  %v91_v63 = vld [vmem:[%s6763_s3] sm:$0xf] }
  0x53   :  { %312 = vmatprep.mubr.f32.mxu1 %v6776_v1  ;;  %4098 = vmatprep.subr.bf16.mxu1 %v5731_v4  ;;  %v96_v3 = vrot.slane %v91_v63, %v6775_v62  ;;  %v100_v5 = vrot.slane %v91_v63, %v6773_v2 }
  0x55   :  { %4084 = vmatpush1.bf16.msra.mxu0 %v5734_v8  ;;  %3952 = vmatmul.mubr.msk.f32.gmra.mrb[12].mxu1 %vm129_vm1, %v5680_v27  ;;  %v436_v27 = vld [vmem:[#allocation5 + $0x178] sm:$0xff] }
  0x56   :  { %4086 = vmatprep.subr.bf16.mxu0 %v5737_v12  ;;  %4100 = vmatpush1.bf16.msra.mxu1 %v5742_v15  ;;  %v5773_v35 = vpack.c.bf16 %v436_v27, %v432_v33 }
  0x57   :  { %318 = vmatprep.mubr.f32.mxu1 %v6776_v1  ;;  %4102 = vmatprep.subr.bf16.mxu1 %v5746_v17 }
  0x59   :  { %4088 = vmatpush1.bf16.msra.mxu0 %v5749_v23  ;;  %3953 = vmatmul.mubr.msk.f32.gmra.mrb[14].mxu1 %vm129_vm1, %v5699_v38  ;;  %v5779_v38 = vpack.c.bf16 %v435_v41, %v431_v40  ;;  %v6774_v41 = vsub.s32 2, %v5827_v60 }
  0x5a   :  { %4122 = vmatprep.subr.bf16.mxu0 %v5641_v6  ;;  %4104 = vmatpush1.bf16.msra.mxu1 %v5755_v19 }
  0x5b   :  { %592 = vmatprep.mubr.f32.mxu1 %v6776_v1  ;;  %4106 = vmatprep.subr.bf16.mxu1 %v5759_v28  ;;  %v104_v56 = vrot.slane %v91_v63, %v6774_v41 }
  0x5c   :  { %522 = vmatmul.mubr.f32.vlgmr.msra.gmra.mrb[0].mxu0 %v453_v32 }
  0x5d   :  { %4124 = vmatpush1.bf16.msra.mxu0 %v5643_v9  ;;  %707 = vmatprep.mubr.f32.mxu0 %v6776_v1 }
  0x5e   :  { %4126 = vmatprep.subr.bf16.mxu0 %v5657_v16  ;;  %4108 = vmatpush1.bf16.msra.mxu1 %v5769_v34 }
  0x5f   :  { %4110 = vmatprep.subr.bf16.mxu1 %v5773_v35 }
  0x61   :  { %4128 = vmatpush1.bf16.msra.mxu0 %v5662_v18 }
  0x62   :  { %4130 = vmatprep.subr.bf16.mxu0 %v5671_v22  ;;  %4112 = vmatpush1.bf16.msra.mxu1 %v5779_v38 }
  0x63   :  { %4114 = vmatprep.subr.bf16.mxu1 %v5782_v44 }
  0x65   :  { %4132 = vmatpush1.bf16.msra.mxu0 %v5675_v26 }
  0x66   :  { %4134 = vmatprep.subr.bf16.mxu0 %v5685_v30  ;;  %4116 = vmatpush1.bf16.msra.mxu1 %v5787_v51 }
  0x67   :  { %4118 = vmatprep.subr.bf16.mxu1 %v5790_v53 }
  0x69   :  { %4136 = vmatpush1.bf16.msra.mxu0 %v5689_v36 }
  0x6a   :  { %4138 = vmatprep.subr.bf16.mxu0 %v5701_v39  ;;  %4120 = vmatpush1.bf16.msra.mxu1 %v5795_v57 }
  0x6b   :  { %4154 = vmatprep.subr.bf16.mxu1 %v5691_v37 }
  0x6d   :  { %4140 = vmatpush1.bf16.msra.mxu0 %v5706_v46  ;;  %593 = vmatmul.mubr.f32.vlgmr.msra.gmra.mrb[16].mxu1 %v453_v32 }
  0x6e   :  { %4142 = vmatprep.subr.bf16.mxu0 %v5711_v49  ;;  %4156 = vmatpush1.bf16.msra.mxu1 %v5714_v52 }
  0x6f   :  { %778 = vmatprep.mubr.f32.mxu1 %v6776_v1  ;;  %4158 = vmatprep.subr.bf16.mxu1 %v5716_v55 }
  0x71   :  { %4144 = vmatpush1.bf16.msra.mxu0 %v5719_v58 }
  0x72   :  { %4146 = vmatprep.subr.bf16.mxu0 %v5724_v61  ;;  %4160 = vmatpush1.bf16.msra.mxu1 %v5727_v0 }
  0x73   :  { %4162 = vmatprep.subr.bf16.mxu1 %v5731_v4 }
  0x75   :  { %4148 = vmatpush1.bf16.msra.mxu0 %v5734_v8 }
  0x76   :  { %4150 = vmatprep.subr.bf16.mxu0 %v5737_v12  ;;  %4164 = vmatpush1.bf16.msra.mxu1 %v5742_v15 }
  0x77   :  { %4166 = vmatprep.subr.bf16.mxu1 %v5746_v17 }
  0x79   :  { %4152 = vmatpush1.bf16.msra.mxu0 %v5749_v23 }
  0x7a   :  { %4186 = vmatprep.subr.bf16.mxu0 %v5641_v6  ;;  %4168 = vmatpush1.bf16.msra.mxu1 %v5755_v19 }
  0x7b   :  { %4170 = vmatprep.subr.bf16.mxu1 %v5759_v28 }
  0x7e   :  { %4172 = vmatpush1.bf16.msra.mxu1 %v5769_v34 }
  0x7f   :  { %4174 = vmatprep.subr.bf16.mxu1 %v5773_v35 }
  0x82   :  { %4176 = vmatpush1.bf16.msra.mxu1 %v5779_v38 }
  0x83   :  { %4178 = vmatprep.subr.bf16.mxu1 %v5782_v44 }
  0x86   :  { %4180 = vmatpush1.bf16.msra.mxu1 %v5787_v51 }
  0x87   :  { %4182 = vmatprep.subr.bf16.mxu1 %v5790_v53 }
  0x8a   :  { %4184 = vmatpush1.bf16.msra.mxu1 %v5795_v57 }
  0x8b   :  { %4218 = vmatprep.subr.bf16.mxu1 %v5691_v37 }
 0x110   :  { %v213_v7 = vpop.f32.mrb[0].mxu1 }
 0x111   :  { %v5838_v10 = vadd.f32 %v213_v7, %v96_v3  ;;  %v215_v11 = vpop.f32.mrb[1].mxu1  ;;  %v108_v7 = vrot.slane %v91_v63, %v6772_v43 }
 0x112   :  { %v5840_v13 = vadd.f32 %v215_v11, %v100_v5 }
 0x114   :  { %v341_v14 = vcombine.low %v5838_v10, %v5840_v13  ;;  %v219_v21 = vpop.f32.mrb[2].mxu1 }
 0x115   :  { %v5846_v24 = vadd.f32 %v219_v21, %v96_v3  ;;  %v221_v25 = vpop.f32.mrb[3].mxu1 }
 0x116   :  { %v5848_v29 = vadd.f32 %v221_v25, %v100_v5 }
 0x118   :  { %v225_v33 = vpop.f32.mrb[4].mxu1 }
 0x119   :  { %v5854_v27 = vadd.f32 %v225_v33, %v96_v3  ;;  %v227_v40 = vpop.f32.mrb[5].mxu1 }
 0x11a   :  { %v5857_v42 = vadd.f32 %v227_v40, %v100_v5 }
 0x11c   :  { %v231_v48 = vpop.f32.mrb[6].mxu1 }
 0x11d   :  { %v5864_v50 = vadd.f32 %v231_v48, %v96_v3  ;;  %v233_v54 = vpop.f32.mrb[7].mxu1 }
 0x11e   :  { %v5868_v59 = vadd.f32 %v233_v54, %v100_v5 }
 0x11f   :  { %6793 = vst [vmem:[#allocation13_spill] sm:$0xff] %v5864_v50 }
 0x120   :  { %6794 = vst [vmem:[#allocation14_spill] sm:$0xff] %v5868_v59  ;;  %v302_v25 = vpop.f32.mrb[8].mxu1 }
 0x121   :  { %v5876_v33 = vadd.f32 %v302_v25, %v104_v56  ;;  %v304_v3 = vpop.f32.mrb[9].mxu1 }
 0x122   :  { %v5878_v40 = vadd.f32 %v304_v3, %v108_v7 }
 0x124   :  { %v343_v48 = vcombine.low %v5876_v33, %v5878_v40  ;;  %v308_v54 = vpop.f32.mrb[10].mxu1 }
 0x125   :  { %v5884_v63 = vadd.f32 %v308_v54, %v104_v56  ;;  %v310_v43 = vpop.f32.mrb[11].mxu1 }
 0x126   :  { %v5886_v2 = vadd.f32 %v310_v43, %v108_v7 }
 0x128   :  { %v314_v3 = vpop.f32.mrb[12].mxu1 }
 0x129   :  { %v5892_v62 = vadd.f32 %v314_v3, %v104_v56  ;;  %v316_v21 = vpop.f32.mrb[13].mxu1 }
 0x12a   :  { %v5894_v11 = vadd.f32 %v316_v21, %v108_v7 }
 0x12c   :  { %v320_v43 = vpop.f32.mrb[14].mxu1 }
 0x12d   :  { %v5900_v45 = vadd.f32 %v320_v43, %v104_v56  ;;  %v322_v32 = vpop.f32.mrb[15].mxu1 }
 0x12e   :  { %v5902_v31 = vadd.f32 %v322_v32, %v108_v7 }
 0x12f   :  { %v523_v41 = vpop.f32.mrb[0].mxu0 }
 0x130   :  { %6795 = vst [vmem:[#allocation15_spill] sm:$0xff] %v5902_v31  ;;  %v525_v25 = vpop.f32.mrb[1].mxu0 }
 0x131   :  { %v603_v5 = vcombine.low %v523_v41, %v525_v25 }
 0x133   :  { %v607_v20 = vadd.f32 %v603_v5, %v341_v14  ;;  %v454_v14 = vld [vmem:[%s6768_s8] sm:$0xf] }
 0x135   :  { %v3954_v47 = vmul.f32 -1.442695, %v607_v20  ;;  %v616_v1 = vrot.slane %v607_v20, 4 }
 0x137   :  { %5187 = vpow2.f32 %v3954_v47  ;;  %v3955_v54 = vmul.f32 -1.442695, %v616_v1 }
 0x139   :  { %5189 = vpow2.f32 %v3955_v54 }
 0x140   :  { %v594_v43 = vpop.f32.mrb[16].mxu1 }
 0x141   :  { %v5188_v56 = vpop.eup %5187  ;;  %v596_v59 = vpop.f32.mrb[17].mxu1 }
 0x142   :  { %v612_v60 = vadd.f32 1.0, %v5188_v56  ;;  %v604_v7 = vcombine.low %v594_v43, %v596_v59 }
 0x143   :  { %v5190_v32 = vpop.eup %5189 }
 0x144   :  { %v621_v50 = vadd.f32 1.0, %v5190_v32  ;;  %5191 = vrcp.f32 %v612_v60  ;;  %v608_v41 = vadd.f32 %v604_v7, %v343_v48 }
 0x146   :  { %5193 = vrcp.f32 %v621_v50  ;;  %v626_v25 = vrot.slane %v608_v41, 4 }
 0x147   :  { %5195 = vtanh.f32 %v608_v41 }
 0x148   :  { %v3956_v3 = vmul.f32 -1.442695, %v626_v25 }
 0x14a   :  { %5197 = vpow2.f32 %v3956_v3  ;;  %v6796_v3 = vmov 0.0  }
 0x14e   :  { %v5192_v1 = vpop.eup %5191 }
 0x150   :  { %v5194_v20 = vpop.eup %5193 }
 0x151   :  { %v5196_v47 = vpop.eup %5195  ;;  %v634_v5 = vmul.f32 %v5194_v20, %v454_v14  ;;  %v6797_v20 = vcombine.high %v5838_v10, %v5840_v13 }
 0x152   :  { %v635_v54 = vmul.f32 %v5196_v47, %v5192_v1 }
 0x154   :  { %v5911_v56 = vadd.f32 %v635_v54, %v634_v5  ;;  %v5198_v59 = vpop.eup %5197  ;;  %v6798_v5 = vcombine.high %v5876_v33, %v5878_v40 }
 0x155   :  { %v631_v43 = vadd.f32 1.0, %v5198_v59 }
 0x156   :  { %5199 = vtanh.f32 %v5911_v56 }
 0x157   :  { %5201 = vrcp.f32 %v631_v43 }
 0x160   :  { %v5200_v60 = vpop.eup %5199 }
 0x161   :  { %v5202_v50 = vpop.eup %5201 }
 0x162   :  { %v638_v48 = vmul.f32 %v5202_v50, %v5200_v60 }
 0x164   :  { %639 = vst [vmem:[#allocation2] sm:$0xf] %v638_v48  ;;  %708 = vmatmul.mubr.f32.vlgmr.msra.gmra.mrb[2].mxu0 %v638_v48  ;;  %779 = vmatmul.mubr.f32.vlgmr.msra.gmra.mrb[18].mxu1 %v638_v48 }
 0x165   :  { %4188 = vmatpush1.bf16.msra.mxu0 %v5643_v9  ;;  %4220 = vmatpush1.bf16.msra.mxu1 %v5714_v52 }
 0x166   :  { %4190 = vmatprep.subr.bf16.mxu0 %v5657_v16  ;;  %4222 = vmatprep.subr.bf16.mxu1 %v5716_v55 }
 0x167   :  { %894 = vmatprep.mubr.f32.mxu0 %v6796_v3  ;;  %965 = vmatprep.mubr.f32.mxu1 %v6796_v3 }
 0x169   :  { %4192 = vmatpush1.bf16.msra.mxu0 %v5662_v18  ;;  %4224 = vmatpush1.bf16.msra.mxu1 %v5727_v0 }
 0x16a   :  { %4194 = vmatprep.subr.bf16.mxu0 %v5671_v22  ;;  %4226 = vmatprep.subr.bf16.mxu1 %v5731_v4 }
 0x16d   :  { %4196 = vmatpush1.bf16.msra.mxu0 %v5675_v26  ;;  %4228 = vmatpush1.bf16.msra.mxu1 %v5742_v15 }
 0x16e   :  { %4198 = vmatprep.subr.bf16.mxu0 %v5685_v30  ;;  %4230 = vmatprep.subr.bf16.mxu1 %v5746_v17 }
 0x171   :  { %4200 = vmatpush1.bf16.msra.mxu0 %v5689_v36  ;;  %4232 = vmatpush1.bf16.msra.mxu1 %v5755_v19 }
 0x172   :  { %4202 = vmatprep.subr.bf16.mxu0 %v5701_v39  ;;  %4234 = vmatprep.subr.bf16.mxu1 %v5759_v28 }
 0x175   :  { %4204 = vmatpush1.bf16.msra.mxu0 %v5706_v46  ;;  %4236 = vmatpush1.bf16.msra.mxu1 %v5769_v34 }
 0x176   :  { %4206 = vmatprep.subr.bf16.mxu0 %v5711_v49  ;;  %4238 = vmatprep.subr.bf16.mxu1 %v5773_v35 }
 0x179   :  { %4208 = vmatpush1.bf16.msra.mxu0 %v5719_v58  ;;  %4240 = vmatpush1.bf16.msra.mxu1 %v5779_v38 }
 0x17a   :  { %4210 = vmatprep.subr.bf16.mxu0 %v5724_v61  ;;  %4242 = vmatprep.subr.bf16.mxu1 %v5782_v44 }
 0x17d   :  { %4212 = vmatpush1.bf16.msra.mxu0 %v5734_v8  ;;  %4244 = vmatpush1.bf16.msra.mxu1 %v5787_v51 }
 0x17e   :  { %4214 = vmatprep.subr.bf16.mxu0 %v5737_v12  ;;  %4246 = vmatprep.subr.bf16.mxu1 %v5790_v53 }
 0x181   :  { %4216 = vmatpush1.bf16.msra.mxu0 %v5749_v23  ;;  %4248 = vmatpush1.bf16.msra.mxu1 %v5795_v57 }
 0x182   :  { %4250 = vmatprep.subr.bf16.mxu0 %v5641_v6  ;;  %4282 = vmatprep.subr.bf16.mxu1 %v5691_v37 }
 0x237   :  { %v709_v32 = vpop.f32.mrb[2].mxu0  ;;  %v780_v7 = vpop.f32.mrb[18].mxu1 }
 0x238   :  { %v711_v41 = vpop.f32.mrb[3].mxu0  ;;  %v782_v25 = vpop.f32.mrb[19].mxu1 }
 0x239   :  { %v789_v14 = vcombine.low %v709_v32, %v711_v41  ;;  %v790_v1 = vcombine.low %v780_v7, %v782_v25 }
 0x23b   :  { %v793_v47 = vadd.f32 %v789_v14, %v6797_v20  ;;  %v794_v54 = vadd.f32 %v790_v1, %v6798_v5 }
 0x23d   :  { %v3957_v59 = vmul.f32 -1.442695, %v793_v47  ;;  %v802_v43 = vrot.slane %v793_v47, 4  ;;  %v812_v50 = vrot.slane %v794_v54, 4 }
 0x23f   :  { %5203 = vpow2.f32 %v3957_v59  ;;  %v3958_v60 = vmul.f32 -1.442695, %v802_v43  ;;  %v3959_v48 = vmul.f32 -1.442695, %v812_v50 }
 0x241   :  { %5205 = vpow2.f32 %v3958_v60  ;;  %v6799_v60 = vcombine.low %v5846_v24, %v5848_v29 }
 0x242   :  { %5207 = vtanh.f32 %v794_v54 }
 0x243   :  { %5209 = vpow2.f32 %v3959_v48  ;;  %v6800_v48 = vcombine.low %v5884_v63, %v5886_v2 }
 0x249   :  { %v5204_v21 = vpop.eup %5203 }
 0x24a   :  { %v798_v31 = vadd.f32 1.0, %v5204_v21 }
 0x24b   :  { %v5206_v32 = vpop.eup %5205 }
 0x24c   :  { %5211 = vrcp.f32 %v798_v31  ;;  %v807_v7 = vadd.f32 1.0, %v5206_v32  ;;  %v5208_v10 = vpop.eup %5207 }
 0x24d   :  { %v5210_v13 = vpop.eup %5209 }
 0x24e   :  { %5213 = vrcp.f32 %v807_v7  ;;  %v817_v25 = vadd.f32 1.0, %v5210_v13 }
 0x250   :  { %5215 = vrcp.f32 %v817_v25 }
 0x256   :  { %v5212_v41 = vpop.eup %5211 }
 0x257   :  { %v821_v33 = vmul.f32 %v5212_v41, %v5208_v10 }
 0x258   :  { %v5214_v40 = vpop.eup %5213 }
 0x259   :  { %v820_v14 = vmul.f32 %v5214_v40, %v5911_v56 }
 0x25a   :  { %v5216_v21 = vpop.eup %5215 }
 0x25b   :  { %v5955_v1 = vadd.f32 %v821_v33, %v820_v14 }
 0x25d   :  { %5217 = vtanh.f32 %v5955_v1 }
 0x267   :  { %v5218_v20 = vpop.eup %5217 }
 0x268   :  { %v824_v47 = vmul.f32 %v5218_v20, %v5216_v21 }
 0x26a   :  { %826 = vst [vmem:[#allocation2 + $0x4] sm:$0xf] %v824_v47  ;;  %895 = vmatmul.mubr.f32.vlgmr.msra.gmra.mrb[4].mxu0 %v824_v47  ;;  %966 = vmatmul.mubr.f32.vlgmr.msra.gmra.mrb[20].mxu1 %v824_v47 }
 0x26b   :  { %4252 = vmatpush1.bf16.msra.mxu0 %v5643_v9  ;;  %4284 = vmatpush1.bf16.msra.mxu1 %v5714_v52 }
 0x26c   :  { %4254 = vmatprep.subr.bf16.mxu0 %v5657_v16  ;;  %4286 = vmatprep.subr.bf16.mxu1 %v5716_v55 }
 0x26d   :  { %1081 = vmatprep.mubr.f32.mxu0 %v6796_v3  ;;  %1152 = vmatprep.mubr.f32.mxu1 %v6796_v3 }
 0x26f   :  { %4256 = vmatpush1.bf16.msra.mxu0 %v5662_v18  ;;  %4288 = vmatpush1.bf16.msra.mxu1 %v5727_v0 }
 0x270   :  { %4258 = vmatprep.subr.bf16.mxu0 %v5671_v22  ;;  %4290 = vmatprep.subr.bf16.mxu1 %v5731_v4 }
 0x273   :  { %4260 = vmatpush1.bf16.msra.mxu0 %v5675_v26  ;;  %4292 = vmatpush1.bf16.msra.mxu1 %v5742_v15 }
 0x274   :  { %4262 = vmatprep.subr.bf16.mxu0 %v5685_v30  ;;  %4294 = vmatprep.subr.bf16.mxu1 %v5746_v17 }
 0x277   :  { %4264 = vmatpush1.bf16.msra.mxu0 %v5689_v36  ;;  %4296 = vmatpush1.bf16.msra.mxu1 %v5755_v19 }
 0x278   :  { %4266 = vmatprep.subr.bf16.mxu0 %v5701_v39  ;;  %4298 = vmatprep.subr.bf16.mxu1 %v5759_v28 }
 0x27b   :  { %4268 = vmatpush1.bf16.msra.mxu0 %v5706_v46  ;;  %4300 = vmatpush1.bf16.msra.mxu1 %v5769_v34 }
 0x27c   :  { %4270 = vmatprep.subr.bf16.mxu0 %v5711_v49  ;;  %4302 = vmatprep.subr.bf16.mxu1 %v5773_v35 }
 0x27f   :  { %4272 = vmatpush1.bf16.msra.mxu0 %v5719_v58  ;;  %4304 = vmatpush1.bf16.msra.mxu1 %v5779_v38 }
 0x280   :  { %4274 = vmatprep.subr.bf16.mxu0 %v5724_v61  ;;  %4306 = vmatprep.subr.bf16.mxu1 %v5782_v44 }
 0x283   :  { %4276 = vmatpush1.bf16.msra.mxu0 %v5734_v8  ;;  %4308 = vmatpush1.bf16.msra.mxu1 %v5787_v51 }
 0x284   :  { %4278 = vmatprep.subr.bf16.mxu0 %v5737_v12  ;;  %4310 = vmatprep.subr.bf16.mxu1 %v5790_v53 }
 0x287   :  { %4280 = vmatpush1.bf16.msra.mxu0 %v5749_v23  ;;  %4312 = vmatpush1.bf16.msra.mxu1 %v5795_v57 }
 0x288   :  { %4314 = vmatprep.subr.bf16.mxu0 %v5641_v6  ;;  %4346 = vmatprep.subr.bf16.mxu1 %v5691_v37 }
 0x33d   :  { %v896_v31 = vpop.f32.mrb[4].mxu0  ;;  %v967_v56 = vpop.f32.mrb[20].mxu1 }
 0x33e   :  { %v898_v5 = vpop.f32.mrb[5].mxu0  ;;  %v969_v54 = vpop.f32.mrb[21].mxu1 }
 0x33f   :  { %v976_v59 = vcombine.low %v896_v31, %v898_v5  ;;  %v977_v43 = vcombine.low %v967_v56, %v969_v54 }
 0x341   :  { %v980_v50 = vadd.f32 %v976_v59, %v6799_v60  ;;  %v981_v32 = vadd.f32 %v977_v43, %v6800_v48 }
 0x343   :  { %v3960_v7 = vmul.f32 -1.442695, %v980_v50  ;;  %v989_v10 = vrot.slane %v980_v50, 4  ;;  %v999_v41 = vrot.slane %v981_v32, 4 }
 0x345   :  { %5219 = vpow2.f32 %v3960_v7  ;;  %v3961_v13 = vmul.f32 -1.442695, %v989_v10  ;;  %v3962_v33 = vmul.f32 -1.442695, %v999_v41 }
 0x347   :  { %5221 = vpow2.f32 %v3961_v13 }
 0x348   :  { %5223 = vtanh.f32 %v981_v32 }
 0x349   :  { %5225 = vpow2.f32 %v3962_v33  ;;  %v6801_v33 = vcombine.high %v5846_v24, %v5848_v29 }
 0x34f   :  { %v5220_v40 = vpop.eup %5219 }
 0x350   :  { %v985_v25 = vadd.f32 1.0, %v5220_v40 }
 0x351   :  { %v5222_v14 = vpop.eup %5221 }
 0x352   :  { %5227 = vrcp.f32 %v985_v25  ;;  %v994_v21 = vadd.f32 1.0, %v5222_v14  ;;  %v5224_v20 = vpop.eup %5223  ;;  %v6802_v25 = vcombine.high %v5884_v63, %v5886_v2 }
 0x353   :  { %v5226_v47 = vpop.eup %5225 }
 0x354   :  { %5229 = vrcp.f32 %v994_v21  ;;  %v1004_v54 = vadd.f32 1.0, %v5226_v47 }
 0x356   :  { %5231 = vrcp.f32 %v1004_v54 }
 0x35c   :  { %v5228_v31 = vpop.eup %5227 }
 0x35d   :  { %v1008_v56 = vmul.f32 %v5228_v31, %v5224_v20 }
 0x35e   :  { %v5230_v5 = vpop.eup %5229 }
 0x35f   :  { %v1007_v59 = vmul.f32 %v5230_v5, %v5955_v1 }
 0x360   :  { %v5232_v60 = vpop.eup %5231 }
 0x361   :  { %v5999_v43 = vadd.f32 %v1008_v56, %v1007_v59 }
 0x363   :  { %5233 = vtanh.f32 %v5999_v43 }
 0x36d   :  { %v5234_v50 = vpop.eup %5233 }
 0x36e   :  { %v1011_v48 = vmul.f32 %v5234_v50, %v5232_v60 }
 0x370   :  { %1013 = vst [vmem:[#allocation2 + $0x8] sm:$0xf] %v1011_v48  ;;  %1082 = vmatmul.mubr.f32.vlgmr.msra.gmra.mrb[6].mxu0 %v1011_v48  ;;  %1153 = vmatmul.mubr.f32.vlgmr.msra.gmra.mrb[22].mxu1 %v1011_v48 }
 0x371   :  { %4316 = vmatpush1.bf16.msra.mxu0 %v5643_v9  ;;  %4348 = vmatpush1.bf16.msra.mxu1 %v5714_v52 }
 0x372   :  { %4318 = vmatprep.subr.bf16.mxu0 %v5657_v16  ;;  %4350 = vmatprep.subr.bf16.mxu1 %v5716_v55 }
 0x373   :  { %1268 = vmatprep.mubr.f32.mxu0 %v6796_v3  ;;  %1339 = vmatprep.mubr.f32.mxu1 %v6796_v3 }
 0x375   :  { %4320 = vmatpush1.bf16.msra.mxu0 %v5662_v18  ;;  %4352 = vmatpush1.bf16.msra.mxu1 %v5727_v0 }
 0x376   :  { %4322 = vmatprep.subr.bf16.mxu0 %v5671_v22  ;;  %4354 = vmatprep.subr.bf16.mxu1 %v5731_v4 }
 0x379   :  { %4324 = vmatpush1.bf16.msra.mxu0 %v5675_v26  ;;  %4356 = vmatpush1.bf16.msra.mxu1 %v5742_v15 }
 0x37a   :  { %4326 = vmatprep.subr.bf16.mxu0 %v5685_v30  ;;  %4358 = vmatprep.subr.bf16.mxu1 %v5746_v17 }
 0x37d   :  { %4328 = vmatpush1.bf16.msra.mxu0 %v5689_v36  ;;  %4360 = vmatpush1.bf16.msra.mxu1 %v5755_v19 }
 0x37e   :  { %4330 = vmatprep.subr.bf16.mxu0 %v5701_v39  ;;  %4362 = vmatprep.subr.bf16.mxu1 %v5759_v28 }
 0x381   :  { %4332 = vmatpush1.bf16.msra.mxu0 %v5706_v46  ;;  %4364 = vmatpush1.bf16.msra.mxu1 %v5769_v34 }
 0x382   :  { %4334 = vmatprep.subr.bf16.mxu0 %v5711_v49  ;;  %4366 = vmatprep.subr.bf16.mxu1 %v5773_v35 }
 0x385   :  { %4336 = vmatpush1.bf16.msra.mxu0 %v5719_v58  ;;  %4368 = vmatpush1.bf16.msra.mxu1 %v5779_v38 }
 0x386   :  { %4338 = vmatprep.subr.bf16.mxu0 %v5724_v61  ;;  %4370 = vmatprep.subr.bf16.mxu1 %v5782_v44 }
 0x389   :  { %4340 = vmatpush1.bf16.msra.mxu0 %v5734_v8  ;;  %4372 = vmatpush1.bf16.msra.mxu1 %v5787_v51 }
 0x38a   :  { %4342 = vmatprep.subr.bf16.mxu0 %v5737_v12  ;;  %4374 = vmatprep.subr.bf16.mxu1 %v5790_v53 }
 0x38d   :  { %4344 = vmatpush1.bf16.msra.mxu0 %v5749_v23  ;;  %4376 = vmatpush1.bf16.msra.mxu1 %v5795_v57 }
 0x38e   :  { %4378 = vmatprep.subr.bf16.mxu0 %v5641_v6  ;;  %4410 = vmatprep.subr.bf16.mxu1 %v5691_v37 }
 0x443   :  { %v1083_v1 = vpop.f32.mrb[6].mxu0  ;;  %v1154_v32 = vpop.f32.mrb[22].mxu1 }
 0x444   :  { %v1085_v7 = vpop.f32.mrb[7].mxu0  ;;  %v1156_v10 = vpop.f32.mrb[23].mxu1 }
 0x445   :  { %v1163_v13 = vcombine.low %v1083_v1, %v1085_v7  ;;  %v1164_v41 = vcombine.low %v1154_v32, %v1156_v10 }
 0x447   :  { %v1167_v40 = vadd.f32 %v1163_v13, %v6801_v33  ;;  %v1168_v14 = vadd.f32 %v1164_v41, %v6802_v25 }
 0x449   :  { %v3963_v21 = vmul.f32 -1.442695, %v1167_v40  ;;  %v1176_v20 = vrot.slane %v1167_v40, 4  ;;  %v1186_v31 = vrot.slane %v1168_v14, 4 }
 0x44b   :  { %5235 = vpow2.f32 %v3963_v21  ;;  %v3964_v47 = vmul.f32 -1.442695, %v1176_v20  ;;  %v3965_v56 = vmul.f32 -1.442695, %v1186_v31  ;;  %v6803_v21 = vcombine.low %v5854_v27, %v5857_v42 }
 0x44d   :  { %5237 = vpow2.f32 %v3964_v47  ;;  %v6804_v47 = vcombine.low %v5892_v62, %v5894_v11 }
 0x44e   :  { %5239 = vtanh.f32 %v1168_v14 }
 0x44f   :  { %5241 = vpow2.f32 %v3965_v56 }
 0x455   :  { %v5236_v5 = vpop.eup %5235 }
 0x456   :  { %v1172_v54 = vadd.f32 1.0, %v5236_v5 }
 0x457   :  { %v5238_v59 = vpop.eup %5237 }
 0x458   :  { %5243 = vrcp.f32 %v1172_v54  ;;  %v1181_v60 = vadd.f32 1.0, %v5238_v59  ;;  %v5240_v24 = vpop.eup %5239 }
 0x459   :  { %v5242_v29 = vpop.eup %5241 }
 0x45a   :  { %5245 = vrcp.f32 %v1181_v60  ;;  %v1191_v48 = vadd.f32 1.0, %v5242_v29 }
 0x45c   :  { %5247 = vrcp.f32 %v1191_v48 }
 0x462   :  { %v5244_v50 = vpop.eup %5243 }
 0x463   :  { %v1195_v2 = vmul.f32 %v5244_v50, %v5240_v24 }
 0x464   :  { %v5246_v63 = vpop.eup %5245 }
 0x465   :  { %v1194_v1 = vmul.f32 %v5246_v63, %v5999_v43 }
 0x466   :  { %v5248_v7 = vpop.eup %5247 }
 0x467   :  { %v6043_v32 = vadd.f32 %v1195_v2, %v1194_v1 }
 0x469   :  { %5249 = vtanh.f32 %v6043_v32 }
 0x473   :  { %v5250_v10 = vpop.eup %5249 }
 0x474   :  { %v1198_v13 = vmul.f32 %v5250_v10, %v5248_v7 }
 0x476   :  { %1200 = vst [vmem:[#allocation2 + $0xc] sm:$0xf] %v1198_v13  ;;  %1269 = vmatmul.mubr.f32.vlgmr.msra.gmra.mrb[8].mxu0 %v1198_v13  ;;  %1340 = vmatmul.mubr.f32.vlgmr.msra.gmra.mrb[24].mxu1 %v1198_v13 }
 0x477   :  { %4380 = vmatpush1.bf16.msra.mxu0 %v5643_v9  ;;  %4412 = vmatpush1.bf16.msra.mxu1 %v5714_v52 }
 0x478   :  { %4382 = vmatprep.subr.bf16.mxu0 %v5657_v16  ;;  %4414 = vmatprep.subr.bf16.mxu1 %v5716_v55 }
 0x479   :  { %1455 = vmatprep.mubr.f32.mxu0 %v6796_v3  ;;  %1526 = vmatprep.mubr.f32.mxu1 %v6796_v3 }
 0x47b   :  { %4384 = vmatpush1.bf16.msra.mxu0 %v5662_v18  ;;  %4416 = vmatpush1.bf16.msra.mxu1 %v5727_v0 }
 0x47c   :  { %4386 = vmatprep.subr.bf16.mxu0 %v5671_v22  ;;  %4418 = vmatprep.subr.bf16.mxu1 %v5731_v4 }
 0x47f   :  { %4388 = vmatpush1.bf16.msra.mxu0 %v5675_v26  ;;  %4420 = vmatpush1.bf16.msra.mxu1 %v5742_v15 }
 0x480   :  { %4390 = vmatprep.subr.bf16.mxu0 %v5685_v30  ;;  %4422 = vmatprep.subr.bf16.mxu1 %v5746_v17 }
 0x483   :  { %4392 = vmatpush1.bf16.msra.mxu0 %v5689_v36  ;;  %4424 = vmatpush1.bf16.msra.mxu1 %v5755_v19 }
 0x484   :  { %4394 = vmatprep.subr.bf16.mxu0 %v5701_v39  ;;  %4426 = vmatprep.subr.bf16.mxu1 %v5759_v28 }
 0x487   :  { %4396 = vmatpush1.bf16.msra.mxu0 %v5706_v46  ;;  %4428 = vmatpush1.bf16.msra.mxu1 %v5769_v34 }
 0x488   :  { %4398 = vmatprep.subr.bf16.mxu0 %v5711_v49  ;;  %4430 = vmatprep.subr.bf16.mxu1 %v5773_v35 }
 0x48b   :  { %4400 = vmatpush1.bf16.msra.mxu0 %v5719_v58  ;;  %4432 = vmatpush1.bf16.msra.mxu1 %v5779_v38 }
 0x48c   :  { %4402 = vmatprep.subr.bf16.mxu0 %v5724_v61  ;;  %4434 = vmatprep.subr.bf16.mxu1 %v5782_v44 }
 0x48f   :  { %4404 = vmatpush1.bf16.msra.mxu0 %v5734_v8  ;;  %4436 = vmatpush1.bf16.msra.mxu1 %v5787_v51 }
 0x490   :  { %4406 = vmatprep.subr.bf16.mxu0 %v5737_v12  ;;  %4438 = vmatprep.subr.bf16.mxu1 %v5790_v53 }
 0x493   :  { %4408 = vmatpush1.bf16.msra.mxu0 %v5749_v23  ;;  %4440 = vmatpush1.bf16.msra.mxu1 %v5795_v57 }
 0x494   :  { %4442 = vmatprep.subr.bf16.mxu0 %v5641_v6  ;;  %4474 = vmatprep.subr.bf16.mxu1 %v5691_v37 }
 0x549   :  { %v1270_v43 = vpop.f32.mrb[8].mxu0  ;;  %v1341_v41 = vpop.f32.mrb[24].mxu1 }
 0x54a   :  { %v1272_v33 = vpop.f32.mrb[9].mxu0  ;;  %v1343_v40 = vpop.f32.mrb[25].mxu1 }
 0x54b   :  { %v1350_v25 = vcombine.low %v1270_v43, %v1272_v33  ;;  %v1351_v14 = vcombine.low %v1341_v41, %v1343_v40 }
 0x54d   :  { %v1354_v20 = vadd.f32 %v1350_v25, %v6803_v21  ;;  %v1355_v31 = vadd.f32 %v1351_v14, %v6804_v47 }
 0x54f   :  { %v3966_v56 = vmul.f32 -1.442695, %v1354_v20  ;;  %v1363_v5 = vrot.slane %v1354_v20, 4  ;;  %v1373_v59 = vrot.slane %v1355_v31, 4 }
 0x551   :  { %5251 = vpow2.f32 %v3966_v56  ;;  %v3967_v54 = vmul.f32 -1.442695, %v1363_v5  ;;  %v3968_v60 = vmul.f32 -1.442695, %v1373_v59  ;;  %v6805_v56 = vcombine.high %v5854_v27, %v5857_v42 }
 0x553   :  { %5253 = vpow2.f32 %v3967_v54  ;;  %v6806_v54 = vcombine.high %v5892_v62, %v5894_v11 }
 0x554   :  { %5255 = vtanh.f32 %v1355_v31 }
 0x555   :  { %5257 = vpow2.f32 %v3968_v60 }
 0x55b   :  { %v5252_v24 = vpop.eup %5251 }
 0x55c   :  { %v1359_v29 = vadd.f32 1.0, %v5252_v24 }
 0x55d   :  { %v5254_v50 = vpop.eup %5253 }
 0x55e   :  { %5259 = vrcp.f32 %v1359_v29  ;;  %v1368_v2 = vadd.f32 1.0, %v5254_v50  ;;  %v5256_v63 = vpop.eup %5255 }
 0x55f   :  { %v5258_v48 = vpop.eup %5257 }
 0x560   :  { %5261 = vrcp.f32 %v1368_v2  ;;  %v1378_v13 = vadd.f32 1.0, %v5258_v48 }
 0x562   :  { %5263 = vrcp.f32 %v1378_v13 }
 0x568   :  { %v5260_v1 = vpop.eup %5259 }
 0x569   :  { %v1382_v7 = vmul.f32 %v5260_v1, %v5256_v63 }
 0x56a   :  { %v5262_v10 = vpop.eup %5261 }
 0x56b   :  { %v1381_v43 = vmul.f32 %v5262_v10, %v6043_v32 }
 0x56c   :  { %v5264_v33 = vpop.eup %5263 }
 0x56d   :  { %v6087_v41 = vadd.f32 %v1382_v7, %v1381_v43 }
 0x56f   :  { %5265 = vtanh.f32 %v6087_v41 }
 0x579   :  { %v5266_v40 = vpop.eup %5265 }
 0x57a   :  { %v1385_v25 = vmul.f32 %v5266_v40, %v5264_v33 }
 0x57c   :  { %1387 = vst [vmem:[#allocation2 + $0x10] sm:$0xf] %v1385_v25  ;;  %1456 = vmatmul.mubr.f32.vlgmr.msra.gmra.mrb[10].mxu0 %v1385_v25  ;;  %1527 = vmatmul.mubr.f32.vlgmr.msra.gmra.mrb[26].mxu1 %v1385_v25 }
 0x57d   :  { %4444 = vmatpush1.bf16.msra.mxu0 %v5643_v9  ;;  %4476 = vmatpush1.bf16.msra.mxu1 %v5714_v52 }
 0x57e   :  { %4446 = vmatprep.subr.bf16.mxu0 %v5657_v16  ;;  %4478 = vmatprep.subr.bf16.mxu1 %v5716_v55 }
 0x57f   :  { %1642 = vmatprep.mubr.f32.mxu0 %v6796_v3  ;;  %1713 = vmatprep.mubr.f32.mxu1 %v6796_v3 }
 0x581   :  { %4448 = vmatpush1.bf16.msra.mxu0 %v5662_v18  ;;  %4480 = vmatpush1.bf16.msra.mxu1 %v5727_v0 }
 0x582   :  { %4450 = vmatprep.subr.bf16.mxu0 %v5671_v22  ;;  %4482 = vmatprep.subr.bf16.mxu1 %v5731_v4 }
 0x585   :  { %4452 = vmatpush1.bf16.msra.mxu0 %v5675_v26  ;;  %4484 = vmatpush1.bf16.msra.mxu1 %v5742_v15 }
 0x586   :  { %4454 = vmatprep.subr.bf16.mxu0 %v5685_v30  ;;  %4486 = vmatprep.subr.bf16.mxu1 %v5746_v17 }
 0x589   :  { %4456 = vmatpush1.bf16.msra.mxu0 %v5689_v36  ;;  %4488 = vmatpush1.bf16.msra.mxu1 %v5755_v19 }
 0x58a   :  { %4458 = vmatprep.subr.bf16.mxu0 %v5701_v39  ;;  %4490 = vmatprep.subr.bf16.mxu1 %v5759_v28 }
 0x58d   :  { %4460 = vmatpush1.bf16.msra.mxu0 %v5706_v46  ;;  %4492 = vmatpush1.bf16.msra.mxu1 %v5769_v34 }
 0x58e   :  { %4462 = vmatprep.subr.bf16.mxu0 %v5711_v49  ;;  %4494 = vmatprep.subr.bf16.mxu1 %v5773_v35 }
 0x591   :  { %4464 = vmatpush1.bf16.msra.mxu0 %v5719_v58  ;;  %4496 = vmatpush1.bf16.msra.mxu1 %v5779_v38 }
 0x592   :  { %4466 = vmatprep.subr.bf16.mxu0 %v5724_v61  ;;  %4498 = vmatprep.subr.bf16.mxu1 %v5782_v44 }
 0x595   :  { %4468 = vmatpush1.bf16.msra.mxu0 %v5734_v8  ;;  %4500 = vmatpush1.bf16.msra.mxu1 %v5787_v51 }
 0x596   :  { %4470 = vmatprep.subr.bf16.mxu0 %v5737_v12  ;;  %4502 = vmatprep.subr.bf16.mxu1 %v5790_v53 }
 0x599   :  { %4472 = vmatpush1.bf16.msra.mxu0 %v5749_v23  ;;  %4504 = vmatpush1.bf16.msra.mxu1 %v5795_v57 }
 0x59a   :  { %4506 = vmatprep.subr.bf16.mxu0 %v5641_v6  ;;  %4538 = vmatprep.subr.bf16.mxu1 %v5691_v37 }
 0x64f   :  { %v1457_v32 = vpop.f32.mrb[10].mxu0  ;;  %v1528_v14 = vpop.f32.mrb[26].mxu1 }
 0x650   :  { %v1459_v21 = vpop.f32.mrb[11].mxu0  ;;  %v1530_v20 = vpop.f32.mrb[27].mxu1 }
 0x651   :  { %v1537_v47 = vcombine.low %v1457_v32, %v1459_v21  ;;  %v1538_v31 = vcombine.low %v1528_v14, %v1530_v20 }
 0x653   :  { %v1541_v5 = vadd.f32 %v1537_v47, %v6805_v56  ;;  %v1542_v59 = vadd.f32 %v1538_v31, %v6806_v54  ;;  %v1957_v47 = vld [vmem:[#allocation7] sm:$0xff]  ;;  %v1959_v56 = vld [vmem:[#allocation7 + $0x10] sm:$0xff]  ;;  %v1966_v54 = vld [vmem:[#allocation7 + $0x48] sm:$0xff] }
 0x654   :  { %v1961_v31 = vld [vmem:[#allocation7 + $0x20] sm:$0xff] }
 0x655   :  { %v3969_v60 = vmul.f32 -1.442695, %v1541_v5  ;;  %v1550_v24 = vrot.slane %v1541_v5, 4  ;;  %v1560_v37 = vrot.slane %v1542_v59, 4  ;;  %v1963_v5 = vld [vmem:[#allocation7 + $0x30] sm:$0xff] }
 0x657   :  { %5267 = vpow2.f32 %v3969_v60  ;;  %v3970_v6 = vmul.f32 -1.442695, %v1550_v24  ;;  %v3971_v29 = vmul.f32 -1.442695, %v1560_v37  ;;  %v1968_v60 = vld [vmem:[#allocation7 + $0x58] sm:$0xff] }
 0x658   :  { %v1972_v24 = vld [vmem:[#allocation7 + $0x78] sm:$0xff] }
 0x659   :  { %5269 = vpow2.f32 %v3970_v6 }
 0x65a   :  { %5271 = vtanh.f32 %v1542_v59  ;;  %v1970_v59 = vld [vmem:[#allocation7 + $0x68] sm:$0xff] }
 0x65b   :  { %5273 = vpow2.f32 %v3971_v29  ;;  %v4571_v29 = vpack.c.bf16 %v1961_v31, %v1957_v47  ;;  %v2004_v47 = vld [vmem:[#allocation7 + $0x178] sm:$0xff] }
 0x661   :  { %v5268_v50 = vpop.eup %5267 }
 0x662   :  { %v1546_v2 = vadd.f32 1.0, %v5268_v50  ;;  %v4603_v50 = vpack.c.bf16 %v1963_v5, %v1959_v56  ;;  %v1997_v5 = vld [vmem:[#allocation7 + $0x140] sm:$0xff] }
 0x663   :  { %v5270_v63 = vpop.eup %5269 }
 0x664   :  { %5275 = vrcp.f32 %v1546_v2  ;;  %v1555_v48 = vadd.f32 1.0, %v5270_v63  ;;  %v5272_v27 = vpop.eup %5271  ;;  %v1965_v2 = vld [vmem:[#allocation7 + $0x40] sm:$0xff] }
 0x665   :  { %v5274_v42 = vpop.eup %5273  ;;  %v1969_v63 = vld [vmem:[#allocation7 + $0x60] sm:$0xff] }
 0x666   :  { %5277 = vrcp.f32 %v1555_v48  ;;  %v1565_v7 = vadd.f32 1.0, %v5274_v42  ;;  %v4605_v42 = vpack.c.bf16 %v1972_v24, %v1968_v60  ;;  %v1999_v24 = vld [vmem:[#allocation7 + $0x150] sm:$0xff] }
 0x668   :  { %5279 = vrcp.f32 %v1565_v7  ;;  %v1978_v7 = vld [vmem:[#allocation7 + $0xa8] sm:$0xff] }
 0x66e   :  { %v5276_v1 = vpop.eup %5275 }
 0x66f   :  { %v1569_v62 = vmul.f32 %v5276_v1, %v5272_v27  ;;  %v4573_v27 = vpack.c.bf16 %v1970_v59, %v1966_v54  ;;  %v1967_v1 = vld [vmem:[#allocation7 + $0x50] sm:$0xff]  ;;  %v2001_v54 = vld [vmem:[#allocation7 + $0x160] sm:$0xff] }
 0x670   :  { %v5278_v11 = vpop.eup %5277 }
 0x671   :  { %v1568_v10 = vmul.f32 %v5278_v11, %v6087_v41  ;;  %v1974_v11 = vld [vmem:[#allocation7 + $0x88] sm:$0xff] }
 0x672   :  { %v5280_v43 = vpop.eup %5279 }
 0x673   :  { %v6131_v13 = vadd.f32 %v1569_v62, %v1568_v10  ;;  %v1971_v62 = vld [vmem:[#allocation7 + $0x70] sm:$0xff]  ;;  %v1976_v10 = vld [vmem:[#allocation7 + $0x98] sm:$0xff] }
 0x675   :  { %5281 = vtanh.f32 %v6131_v13 }
 0x67f   :  { %v5282_v33 = vpop.eup %5281 }
 0x680   :  { %v1572_v40 = vmul.f32 %v5282_v33, %v5280_v43  ;;  %v4575_v43 = vpack.c.bf16 %v1969_v63, %v1965_v2  ;;  %v4607_v33 = vpack.c.bf16 %v1971_v62, %v1967_v1  ;;  %v2012_v2 = vld [vmem:[#allocation7 + $0x1b8] sm:$0xff]  ;;  %v4591_v63 = vpack.c.bf16 %v2001_v54, %v1997_v5  ;;  %v2318_v54 = vld [vmem:[#allocation9 + $0x88] sm:$0xff] }
 0x682   :  { %1574 = vst [vmem:[#allocation2 + $0x14] sm:$0xf] %v1572_v40  ;;  %1643 = vmatmul.mubr.f32.vlgmr.msra.gmra.mrb[12].mxu0 %v1572_v40  ;;  %1714 = vmatmul.mubr.f32.vlgmr.msra.gmra.mrb[28].mxu1 %v1572_v40  ;;  %v1973_v40 = vld [vmem:[#allocation7 + $0x80] sm:$0xff] }
 0x683   :  { %4508 = vmatpush1.bf16.msra.mxu0 %v5643_v9  ;;  %4540 = vmatpush1.bf16.msra.mxu1 %v5714_v52  ;;  %v1958_v9 = vld [vmem:[#allocation7 + $0x8] sm:$0xff] }
 0x684   :  { %4510 = vmatprep.subr.bf16.mxu0 %v5657_v16  ;;  %4542 = vmatprep.subr.bf16.mxu1 %v5716_v55  ;;  %v1962_v16 = vld [vmem:[#allocation7 + $0x28] sm:$0xff] }
 0x685   :  { %1829 = vmatprep.mubr.f32.mxu0 %v6796_v3  ;;  %1900 = vmatprep.mubr.f32.mxu1 %v6796_v3 }
 0x687   :  { %4512 = vmatpush1.bf16.msra.mxu0 %v5662_v18  ;;  %4544 = vmatpush1.bf16.msra.mxu1 %v5727_v0  ;;  %v1960_v18 = vld [vmem:[#allocation7 + $0x18] sm:$0xff] }
 0x688   :  { %4514 = vmatprep.subr.bf16.mxu0 %v5671_v22  ;;  %4546 = vmatprep.subr.bf16.mxu1 %v5731_v4  ;;  %v4569_v22 = vpack.c.bf16 %v1962_v16, %v1958_v9  ;;  %v1977_v9 = vld [vmem:[#allocation7 + $0xa0] sm:$0xff]  ;;  %v4577_v16 = vpack.c.bf16 %v1978_v7, %v1974_v11  ;;  %v2007_v11 = vld [vmem:[#allocation7 + $0x190] sm:$0xff] }
 0x689   :  { %v2011_v7 = vld [vmem:[#allocation7 + $0x1b0] sm:$0xff] }
 0x68b   :  { %4516 = vmatpush1.bf16.msra.mxu0 %v5675_v26  ;;  %4548 = vmatpush1.bf16.msra.mxu1 %v5742_v15  ;;  %v1964_v26 = vld [vmem:[#allocation7 + $0x38] sm:$0xff] }
 0x68c   :  { %4518 = vmatprep.subr.bf16.mxu0 %v5685_v30  ;;  %4550 = vmatprep.subr.bf16.mxu1 %v5746_v17  ;;  %v4601_v30 = vpack.c.bf16 %v1964_v26, %v1960_v18  ;;  %v1979_v26 = vld [vmem:[#allocation7 + $0xb0] sm:$0xff] }
 0x68f   :  { %4520 = vmatpush1.bf16.msra.mxu0 %v5689_v36  ;;  %4552 = vmatpush1.bf16.msra.mxu1 %v5755_v19 }
 0x690   :  { %4522 = vmatprep.subr.bf16.mxu0 %v5701_v39  ;;  %4554 = vmatprep.subr.bf16.mxu1 %v5759_v28 }
 0x693   :  { %4524 = vmatpush1.bf16.msra.mxu0 %v5706_v46  ;;  %4556 = vmatpush1.bf16.msra.mxu1 %v5769_v34 }
 0x694   :  { %4526 = vmatprep.subr.bf16.mxu0 %v5711_v49  ;;  %4558 = vmatprep.subr.bf16.mxu1 %v5773_v35 }
 0x697   :  { %4528 = vmatpush1.bf16.msra.mxu0 %v5719_v58  ;;  %4560 = vmatpush1.bf16.msra.mxu1 %v5779_v38  ;;  %v6807_v58 = vld [vmem:[#allocation13_spill] sm:$0xff] }
 0x698   :  { %4530 = vmatprep.subr.bf16.mxu0 %v5724_v61  ;;  %4562 = vmatprep.subr.bf16.mxu1 %v5782_v44  ;;  %v6808_v61 = vld [vmem:[#allocation14_spill] sm:$0xff] }
 0x699   :  { %v6809_v0 = vcombine.low %v6807_v58, %v6808_v61 }
 0x69b   :  { %4532 = vmatpush1.bf16.msra.mxu0 %v5734_v8  ;;  %4564 = vmatpush1.bf16.msra.mxu1 %v5787_v51  ;;  %v6810_v8 = vld [vmem:[#allocation15_spill] sm:$0xff] }
 0x69c   :  { %4534 = vmatprep.subr.bf16.mxu0 %v5737_v12  ;;  %4566 = vmatprep.subr.bf16.mxu1 %v5790_v53  ;;  %v6811_v12 = vcombine.low %v5900_v45, %v6810_v8 }
 0x69f   :  { %4536 = vmatpush1.bf16.msra.mxu0 %v5749_v23  ;;  %4568 = vmatpush1.bf16.msra.mxu1 %v5795_v57 }
 0x6a0   :  { %4570 = vmatprep.subr.bf16.mxu0 %v4569_v22  ;;  %4602 = vmatprep.subr.bf16.mxu1 %v4601_v30  ;;  %v1975_v22 = vld [vmem:[#allocation7 + $0x90] sm:$0xff]  ;;  %v1982_v30 = vld [vmem:[#allocation7 + $0xc8] sm:$0xff] }
 0x755   :  { %v1644_v36 = vpop.f32.mrb[12].mxu0  ;;  %v1715_v39 = vpop.f32.mrb[28].mxu1 }
 0x756   :  { %v1646_v46 = vpop.f32.mrb[13].mxu0  ;;  %v1717_v49 = vpop.f32.mrb[29].mxu1 }
 0x757   :  { %v1724_v52 = vcombine.low %v1644_v36, %v1646_v46  ;;  %v1725_v55 = vcombine.low %v1715_v39, %v1717_v49  ;;  %v1986_v36 = vld [vmem:[#allocation7 + $0xe8] sm:$0xff]  ;;  %v1984_v39 = vld [vmem:[#allocation7 + $0xd8] sm:$0xff]  ;;  %v4579_v49 = vpack.c.bf16 %v1977_v9, %v1973_v40  ;;  %v4627_v9 = vpack.c.bf16 %v2011_v7, %v2007_v11 }
 0x758   :  { %v1988_v46 = vld [vmem:[#allocation7 + $0xf8] sm:$0xff] }
 0x759   :  { %v1728_v4 = vadd.f32 %v1724_v52, %v6809_v0  ;;  %v1729_v15 = vadd.f32 %v1725_v55, %v6811_v12  ;;  %v4611_v52 = vpack.c.bf16 %v1979_v26, %v1975_v22  ;;  %v1981_v55 = vld [vmem:[#allocation7 + $0xc0] sm:$0xff]  ;;  %v4581_v12 = vpack.c.bf16 %v1986_v36, %v1982_v30  ;;  %v2015_v30 = vld [vmem:[#allocation7 + $0x1d0] sm:$0xff]  ;;  %v2332_v7 = vld [vmem:[#allocation9 + $0xf8] sm:$0xff] }
 0x75a   :  { %v1985_v0 = vld [vmem:[#allocation7 + $0xe0] sm:$0xff]  ;;  %v2019_v36 = vld [vmem:[#allocation7 + $0x1f0] sm:$0xff] }
 0x75b   :  { %v3972_v17 = vmul.f32 -1.442695, %v1728_v4  ;;  %v1737_v23 = vrot.slane %v1728_v4, 4  ;;  %v1747_v28 = vrot.slane %v1729_v15, 4  ;;  %v1983_v4 = vld [vmem:[#allocation7 + $0xd0] sm:$0xff]  ;;  %v2017_v26 = vld [vmem:[#allocation7 + $0x1e0] sm:$0xff] }
 0x75d   :  { %5283 = vpow2.f32 %v3972_v17  ;;  %v3973_v19 = vmul.f32 -1.442695, %v1737_v23  ;;  %v3974_v34 = vmul.f32 -1.442695, %v1747_v28  ;;  %v1987_v17 = vld [vmem:[#allocation7 + $0xf0] sm:$0xff]  ;;  %v1990_v23 = vld [vmem:[#allocation7 + $0x108] sm:$0xff] }
 0x75e   :  { %v1992_v28 = vld [vmem:[#allocation7 + $0x118] sm:$0xff] }
 0x75f   :  { %5285 = vpow2.f32 %v3973_v19  ;;  %v1994_v19 = vld [vmem:[#allocation7 + $0x128] sm:$0xff] }
 0x760   :  { %5287 = vtanh.f32 %v1729_v15  ;;  %v4613_v15 = vpack.c.bf16 %v1988_v46, %v1984_v39  ;;  %v4631_v46 = vpack.c.bf16 %v2019_v36, %v2015_v30  ;;  %v2340_v36 = vld [vmem:[#allocation9 + $0x138] sm:$0xff] }
 0x761   :  { %5289 = vpow2.f32 %v3974_v34  ;;  %v1996_v34 = vld [vmem:[#allocation7 + $0x138] sm:$0xff] }
 0x767   :  { %v5284_v35 = vpop.eup %5283 }
 0x768   :  { %v1733_v38 = vadd.f32 1.0, %v5284_v35  ;;  %v4583_v35 = vpack.c.bf16 %v1985_v0, %v1981_v55  ;;  %v5185_v55 = vld [vmem:[#allocation2 + $0x10] sm:$0xff]  }
 0x769   :  { %v5286_v44 = vpop.eup %5285  ;;  %v2302_v0 = vld [vmem:[#allocation9 + $0x8] sm:$0xff] }
 0x76a   :  { %5291 = vrcp.f32 %v1733_v38  ;;  %v1742_v51 = vadd.f32 1.0, %v5286_v44  ;;  %v5288_v53 = vpop.eup %5287  ;;  %v4615_v38 = vpack.c.bf16 %v1987_v17, %v1983_v4  ;;  %v1989_v44 = vld [vmem:[#allocation7 + $0x100] sm:$0xff]  ;;  %v2306_v4 = vld [vmem:[#allocation9 + $0x28] sm:$0xff]  ;;  %v2308_v17 = vld [vmem:[#allocation9 + $0x38] sm:$0xff] }
 0x76b   :  { %v5290_v57 = vpop.eup %5289 }
 0x76c   :  { %5293 = vrcp.f32 %v1742_v51  ;;  %v1752_v14 = vadd.f32 1.0, %v5290_v57  ;;  %v1993_v51 = vld [vmem:[#allocation7 + $0x120] sm:$0xff]  ;;  %v4617_v57 = vpack.c.bf16 %v1996_v34, %v1992_v28 }
 0x76d   :  { %v4587_v31 = vpack.c.bf16 %v1993_v51, %v1989_v44  ;;  %v2310_v51 = vld [vmem:[#allocation9 + $0x48] sm:$0xff] }
 0x76e   :  { %5295 = vrcp.f32 %v1752_v14  ;;  %v2002_v14 = vld [vmem:[#allocation7 + $0x168] sm:$0xff] }
 0x774   :  { %v5292_v41 = vpop.eup %5291 }
 0x775   :  { %v1756_v25 = vmul.f32 %v5292_v41, %v5288_v53  ;;  %v4585_v53 = vpack.c.bf16 %v1994_v19, %v1990_v23  ;;  %v1991_v41 = vld [vmem:[#allocation7 + $0x110] sm:$0xff]  ;;  %v2301_v23 = vld [vmem:[#allocation9] sm:$0xff] }
 0x776   :  { %v5294_v32 = vpop.eup %5293  ;;  %v2305_v19 = vld [vmem:[#allocation9 + $0x20] sm:$0xff] }
 0x777   :  { %v1755_v21 = vmul.f32 %v5294_v32, %v6131_v13  ;;  %v1980_v13 = vld [vmem:[#allocation7 + $0xb8] sm:$0xff]  ;;  %v1998_v32 = vld [vmem:[#allocation7 + $0x148] sm:$0xff]  ;;  %v6188_v34 = vpack.c.bf16 %v2305_v19, %v2301_v23 }
 0x778   :  { %v5296_v6 = vpop.eup %5295  ;;  %v4609_v18 = vpack.c.bf16 %v1980_v13, %v1976_v10  ;;  %v4589_v59 = vpack.c.bf16 %v2002_v14, %v1998_v32  ;;  %v2014_v10 = vld [vmem:[#allocation7 + $0x1c8] sm:$0xff]  ;;  %v2309_v32 = vld [vmem:[#allocation9 + $0x40] sm:$0xff]  ;;  %v2344_v23 = vld [vmem:[#allocation9 + $0x158] sm:$0xff] }
 0x779   :  { %v6173_v20 = vadd.f32 %v1756_v25, %v1755_v21  ;;  %v1995_v25 = vld [vmem:[#allocation7 + $0x130] sm:$0xff]  ;;  %v2000_v21 = vld [vmem:[#allocation7 + $0x158] sm:$0xff]  ;;  %v2018_v13 = vld [vmem:[#allocation7 + $0x1e8] sm:$0xff] }
 0x77a   :  { %v4619_v56 = vpack.c.bf16 %v1995_v25, %v1991_v41  ;;  %v4621_v60 = vpack.c.bf16 %v2004_v47, %v2000_v21  ;;  %v2316_v25 = vld [vmem:[#allocation9 + $0x78] sm:$0xff]  ;;  %v2313_v14 = vld [vmem:[#allocation9 + $0x60] sm:$0xff] }
 0x77b   :  { %5297 = vtanh.f32 %v6173_v20  ;;  %v6200_v47 = vpack.c.bf16 %v2313_v14, %v2309_v32  ;;  %v2347_v32 = vld [vmem:[#allocation9 + $0x170] sm:$0xff]  ;;  %v2350_v14 = vld [vmem:[#allocation9 + $0x188] sm:$0xff] }
 0x785   :  { %v5298_v37 = vpop.eup %5297 }
 0x786   :  { %v1759_v48 = vmul.f32 %v5298_v37, %v5296_v6  ;;  %v2003_v6 = vld [vmem:[#allocation7 + $0x170] sm:$0xff]  ;;  %v2006_v37 = vld [vmem:[#allocation7 + $0x188] sm:$0xff] }
 0x788   :  { %1761 = vst [vmem:[#allocation2 + $0x18] sm:$0xf] %v1759_v48  ;;  %1830 = vmatmul.mubr.f32.vlgmr.msra.gmra.mrb[14].mxu0 %v1759_v48  ;;  %1901 = vmatmul.mubr.f32.vlgmr.msra.gmra.mrb[30].mxu1 %v1759_v48  ;;  %v4623_v48 = vpack.c.bf16 %v2003_v6, %v1999_v24  ;;  %v2324_v6 = vld [vmem:[#allocation9 + $0xb8] sm:$0xff] }
 0x789   :  { %4572 = vmatpush1.bf16.msra.mxu0 %v4571_v29  ;;  %4604 = vmatpush1.bf16.msra.mxu1 %v4603_v50  ;;  %v2010_v29 = vld [vmem:[#allocation7 + $0x1a8] sm:$0xff]  ;;  %v2008_v50 = vld [vmem:[#allocation7 + $0x198] sm:$0xff] }
 0x78a   :  { %4574 = vmatprep.subr.bf16.mxu0 %v4573_v27  ;;  %4606 = vmatprep.subr.bf16.mxu1 %v4605_v42  ;;  %v2005_v27 = vld [vmem:[#allocation7 + $0x180] sm:$0xff]  ;;  %v4593_v1 = vpack.c.bf16 %v2010_v29, %v2006_v37  ;;  %v4625_v62 = vpack.c.bf16 %v2012_v2, %v2008_v50 }
 0x78b   :  { %2123 = vmatprep.mubr.f32.mxu0 %v6796_v3  ;;  %2212 = vmatprep.mubr.f32.mxu1 %v6796_v3  ;;  %v2009_v42 = vld [vmem:[#allocation7 + $0x1a0] sm:$0xff] }
 0x78c   :  { %v4595_v40 = vpack.c.bf16 %v2009_v42, %v2005_v27  ;;  %v2317_v37 = vld [vmem:[#allocation9 + $0x80] sm:$0xff]  ;;  %v2326_v42 = vld [vmem:[#allocation9 + $0xc8] sm:$0xff] }
 0x78d   :  { %4576 = vmatpush1.bf16.msra.mxu0 %v4575_v43  ;;  %4608 = vmatpush1.bf16.msra.mxu1 %v4607_v33  ;;  %v2016_v43 = vld [vmem:[#allocation7 + $0x1d8] sm:$0xff]  ;;  %v2321_v29 = vld [vmem:[#allocation9 + $0xa0] sm:$0xff] }
 0x78e   :  { %4578 = vmatprep.subr.bf16.mxu0 %v4577_v16  ;;  %4610 = vmatprep.subr.bf16.mxu1 %v4609_v18  ;;  %v2020_v33 = vld [vmem:[#allocation7 + $0x1f8] sm:$0xff]  ;;  %v2013_v16 = vld [vmem:[#allocation7 + $0x1c0] sm:$0xff]  ;;  %v4597_v18 = vpack.c.bf16 %v2018_v13, %v2014_v10  ;;  %v6212_v2 = vpack.c.bf16 %v2321_v29, %v2317_v37 }
 0x78f   :  { %v4629_v22 = vpack.c.bf16 %v2020_v33, %v2016_v43  ;;  %v4599_v39 = vpack.c.bf16 %v2017_v26, %v2013_v16  ;;  %v2325_v10 = vld [vmem:[#allocation9 + $0xc0] sm:$0xff]  ;;  %v2336_v26 = vld [vmem:[#allocation9 + $0x118] sm:$0xff] }
 0x790   :  { %v2329_v13 = vld [vmem:[#allocation9 + $0xe0] sm:$0xff] }
 0x791   :  { %4580 = vmatpush1.bf16.msra.mxu0 %v4579_v49  ;;  %4612 = vmatpush1.bf16.msra.mxu1 %v4611_v52  ;;  %v5183_v49 = vld [vmem:[#allocation2] sm:$0xff]   ;;  %v5184_v52 = vld [vmem:[#allocation2 + $0x8] sm:$0xff]   ;;  %v6224_v33 = vpack.c.bf16 %v2329_v13, %v2325_v10 }
 0x792   :  { %4582 = vmatprep.subr.bf16.mxu0 %v4581_v12  ;;  %4614 = vmatprep.subr.bf16.mxu1 %v4613_v15  ;;  %v2304_v12 = vld [vmem:[#allocation9 + $0x18] sm:$0xff]  ;;  %v6184_v15 = vpack.c.bf16 %v2306_v4, %v2302_v0  ;;  %v2339_v0 = vld [vmem:[#allocation9 + $0x130] sm:$0xff]  ;;  %v2349_v37 = vld [vmem:[#allocation9 + $0x180] sm:$0xff] }
 0x793   :  { %v6186_v28 = vpack.c.bf16 %v2308_v17, %v2304_v12  ;;  %v2342_v12 = vld [vmem:[#allocation9 + $0x148] sm:$0xff]  ;;  %v2353_v29 = vld [vmem:[#allocation9 + $0x1a0] sm:$0xff]  ;;  %v2360_v10 = vld [vmem:[#allocation9 + $0x1d8] sm:$0xff] }
 0x794   :  { %v2346_v17 = vld [vmem:[#allocation9 + $0x168] sm:$0xff] }
 0x795   :  { %4584 = vmatpush1.bf16.msra.mxu0 %v4583_v35  ;;  %4616 = vmatpush1.bf16.msra.mxu1 %v4615_v38  ;;  %v2303_v35 = vld [vmem:[#allocation9 + $0x10] sm:$0xff]  ;;  %v6244_v19 = vpack.c.bf16 %v2346_v17, %v2342_v12 }
 0x796   :  { %4586 = vmatprep.subr.bf16.mxu0 %v4585_v53  ;;  %4618 = vmatprep.subr.bf16.mxu1 %v4617_v57  ;;  %v2307_v38 = vld [vmem:[#allocation9 + $0x30] sm:$0xff]  ;;  %v2314_v53 = vld [vmem:[#allocation9 + $0x68] sm:$0xff]  ;;  %v2312_v57 = vld [vmem:[#allocation9 + $0x58] sm:$0xff] }
 0x797   :  { %v6191_v44 = vpack.c.bf16 %v2307_v38, %v2303_v35  ;;  %v6196_v41 = vpack.c.bf16 %v2314_v53, %v2310_v51  ;;  %v6198_v21 = vpack.c.bf16 %v2316_v25, %v2312_v57  ;;  %v2348_v35 = vld [vmem:[#allocation9 + $0x178] sm:$0xff]  ;;  %v2341_v38 = vld [vmem:[#allocation9 + $0x140] sm:$0xff]  ;;  %v2343_v25 = vld [vmem:[#allocation9 + $0x150] sm:$0xff] }
 0x798   :  { %v2345_v51 = vld [vmem:[#allocation9 + $0x160] sm:$0xff]  ;;  %v6246_v53 = vpack.c.bf16 %v2348_v35, %v2344_v23 }
 0x799   :  { %4588 = vmatpush1.bf16.msra.mxu0 %v4587_v31  ;;  %4620 = vmatpush1.bf16.msra.mxu1 %v4619_v56  ;;  %v2311_v31 = vld [vmem:[#allocation9 + $0x50] sm:$0xff]  ;;  %v6248_v57 = vpack.c.bf16 %v2345_v51, %v2341_v38  ;;  %v6812_v38 = vcombine.high %v6807_v58, %v6808_v61  ;;  %v6814_v61 = vld [vmem:[#allocation12_spill] sm:$0xff] }
 0x79a   :  { %4590 = vmatprep.subr.bf16.mxu0 %v4589_v59  ;;  %4622 = vmatprep.subr.bf16.mxu1 %v4621_v60  ;;  %v2315_v56 = vld [vmem:[#allocation9 + $0x70] sm:$0xff]  ;;  %v2322_v59 = vld [vmem:[#allocation9 + $0xa8] sm:$0xff]  ;;  %v2320_v60 = vld [vmem:[#allocation9 + $0x98] sm:$0xff] }
 0x79b   :  { %v6203_v5 = vpack.c.bf16 %v2315_v56, %v2311_v31  ;;  %v6208_v24 = vpack.c.bf16 %v2322_v59, %v2318_v54  ;;  %v6210_v50 = vpack.c.bf16 %v2324_v6, %v2320_v60  ;;  %v6251_v31 = vpack.c.bf16 %v2347_v32, %v2343_v25  ;;  %v2354_v56 = vld [vmem:[#allocation9 + $0x1a8] sm:$0xff]  ;;  %v2352_v54 = vld [vmem:[#allocation9 + $0x198] sm:$0xff] }
 0x79c   :  { %v2356_v59 = vld [vmem:[#allocation9 + $0x1b8] sm:$0xff]  ;;  %v6255_v60 = vpack.c.bf16 %v2354_v56, %v2350_v14  ;;  %v6813_v25 = vcombine.high %v5900_v45, %v6810_v8  ;;  %v6815_v8 = vsub.s32 0, %v6814_v61 }
 0x79d   :  { %4592 = vmatpush1.bf16.msra.mxu0 %v4591_v63  ;;  %4624 = vmatpush1.bf16.msra.mxu1 %v4623_v48  ;;  %v2319_v63 = vld [vmem:[#allocation9 + $0x90] sm:$0xff]  ;;  %v6257_v6 = vpack.c.bf16 %v2356_v59, %v2352_v54  ;;  %v2021_v45 = vld [vmem:[%s6766_s6] sm:$0xf] }
 0x79e   :  { %4594 = vmatprep.subr.bf16.mxu0 %v4593_v1  ;;  %4626 = vmatprep.subr.bf16.mxu1 %v4625_v62  ;;  %v2323_v48 = vld [vmem:[#allocation9 + $0xb0] sm:$0xff]  ;;  %v2330_v1 = vld [vmem:[#allocation9 + $0xe8] sm:$0xff]  ;;  %v2328_v62 = vld [vmem:[#allocation9 + $0xd8] sm:$0xff] }
 0x79f   :  { %v6215_v27 = vpack.c.bf16 %v2323_v48, %v2319_v63  ;;  %v6220_v11 = vpack.c.bf16 %v2330_v1, %v2326_v42  ;;  %v6222_v43 = vpack.c.bf16 %v2332_v7, %v2328_v62  ;;  %v2351_v63 = vld [vmem:[#allocation9 + $0x190] sm:$0xff]  ;;  %v6260_v48 = vpack.c.bf16 %v2353_v29, %v2349_v37  ;;  %v2358_v62 = vld [vmem:[#allocation9 + $0x1c8] sm:$0xff] }
 0x7a0   :  { %v2355_v42 = vld [vmem:[#allocation9 + $0x1b0] sm:$0xff]  ;;  %v2362_v7 = vld [vmem:[#allocation9 + $0x1e8] sm:$0xff] }
 0x7a1   :  { %4596 = vmatpush1.bf16.msra.mxu0 %v4595_v40  ;;  %4628 = vmatpush1.bf16.msra.mxu1 %v4627_v9  ;;  %v2327_v40 = vld [vmem:[#allocation9 + $0xd0] sm:$0xff]  ;;  %v6264_v1 = vpack.c.bf16 %v2355_v42, %v2351_v63  ;;  %v6268_v13 = vpack.c.bf16 %v2362_v7, %v2358_v62  ;;  %v6293_v7 = vrot.slane %v2021_v45, %v6815_v8 }
 0x7a2   :  { %4598 = vmatprep.subr.bf16.mxu0 %v4597_v18  ;;  %4630 = vmatprep.subr.bf16.mxu1 %v4629_v22  ;;  %v2331_v9 = vld [vmem:[#allocation9 + $0xf0] sm:$0xff]  ;;  %v2334_v18 = vld [vmem:[#allocation9 + $0x108] sm:$0xff] }
 0x7a3   :  { %v6227_v16 = vpack.c.bf16 %v2331_v9, %v2327_v40  ;;  %v2338_v22 = vld [vmem:[#allocation9 + $0x128] sm:$0xff]  ;;  %v2364_v40 = vld [vmem:[#allocation9 + $0x1f8] sm:$0xff]  ;;  %v2357_v9 = vld [vmem:[#allocation9 + $0x1c0] sm:$0xff] }
 0x7a4   :  { %v6232_v30 = vpack.c.bf16 %v2338_v22, %v2334_v18  ;;  %v2361_v18 = vld [vmem:[#allocation9 + $0x1e0] sm:$0xff]  ;;  %v6270_v22 = vpack.c.bf16 %v2364_v40, %v2360_v10  ;;  %v6816_v10 = vsub.s32 2, %v6814_v61 }
 0x7a5   :  { %4600 = vmatpush1.bf16.msra.mxu0 %v4599_v39  ;;  %4632 = vmatpush1.bf16.msra.mxu1 %v4631_v46  ;;  %v2333_v39 = vld [vmem:[#allocation9 + $0x100] sm:$0xff] }
 0x7a6   :  { %4634 = vmatprep.subr.bf16.mxu0 %v6184_v15  ;;  %4666 = vmatprep.subr.bf16.mxu1 %v6186_v28  ;;  %v2337_v46 = vld [vmem:[#allocation9 + $0x120] sm:$0xff]  ;;  %v6297_v40 = vrot.slane %v2021_v45, %v6816_v10 }
 0x7a8   :  { %2124 = vmatmul.mubr.f32.vlgmr.msra.gmra.mrb[16].mxu0 %v5183_v49  ;;  %2213 = vmatmul.mubr.f32.vlgmr.msra.gmra.mrb[32].mxu1 %v5183_v49  ;;  %v6234_v49 = vpack.c.bf16 %v2340_v36, %v2336_v26  ;;  %v6272_v26 = vpack.c.bf16 %v2361_v18, %v2357_v9  ;;  %v2359_v36 = vld [vmem:[#allocation9 + $0x1d0] sm:$0xff]  ;;  %v6817_v18 = vsub.s32 1, %v6814_v61 }
 0x7a9   :  { %2129 = vmatprep.mubr.f32.mxu0 %v6796_v3  ;;  %2218 = vmatprep.mubr.f32.mxu1 %v6796_v3 }
 0x7aa   :  { %4636 = vmatpush1.bf16.msra.mxu0 %v6188_v34  ;;  %4668 = vmatpush1.bf16.msra.mxu1 %v6191_v44 }
 0x7ab   :  { %4638 = vmatprep.subr.bf16.mxu0 %v6196_v41  ;;  %4670 = vmatprep.subr.bf16.mxu1 %v6198_v21 }
 0x7ac   :  { %2130 = vmatmul.mubr.f32.gmra.mrb[18].mxu0 %v5184_v52  ;;  %2219 = vmatmul.mubr.f32.gmra.mrb[34].mxu1 %v5184_v52  ;;  %v6236_v52 = vpack.c.bf16 %v2337_v46, %v2333_v39  ;;  %v2363_v39 = vld [vmem:[#allocation9 + $0x1f0] sm:$0xff] }
 0x7ad   :  { %2135 = vmatprep.mubr.f32.mxu0 %v6796_v3  ;;  %2224 = vmatprep.mubr.f32.mxu1 %v6796_v3  ;;  %v6275_v46 = vpack.c.bf16 %v2363_v39, %v2359_v36  ;;  %v6301_v36 = vrot.slane %v2021_v45, %v6817_v18  ;;  %v6818_v39 = vsub.s32 3, %v6814_v61 }
 0x7ae   :  { %4640 = vmatpush1.bf16.msra.mxu0 %v6200_v47  ;;  %4672 = vmatpush1.bf16.msra.mxu1 %v6203_v5 }
 0x7af   :  { %4642 = vmatprep.subr.bf16.mxu0 %v6208_v24  ;;  %4674 = vmatprep.subr.bf16.mxu1 %v6210_v50 }
 0x7b0   :  { %2136 = vmatmul.mubr.f32.gmra.mrb[20].mxu0 %v5185_v55  ;;  %2225 = vmatmul.mubr.f32.gmra.mrb[36].mxu1 %v5185_v55  ;;  %v2335_v55 = vld [vmem:[#allocation9 + $0x110] sm:$0xff] }
 0x7b1   :  { %2141 = vmatprep.mubr.f32.mxu0 %v6796_v3  ;;  %2230 = vmatprep.mubr.f32.mxu1 %v6796_v3  ;;  %v6239_v4 = vpack.c.bf16 %v2339_v0, %v2335_v55 }
 0x7b2   :  { %4644 = vmatpush1.bf16.msra.mxu0 %v6212_v2  ;;  %4676 = vmatpush1.bf16.msra.mxu1 %v6215_v27 }
 0x7b3   :  { %4646 = vmatprep.subr.bf16.mxu0 %v6220_v11  ;;  %4678 = vmatprep.subr.bf16.mxu1 %v6222_v43 }
 0x7b6   :  { %4648 = vmatpush1.bf16.msra.mxu0 %v6224_v33  ;;  %4680 = vmatpush1.bf16.msra.mxu1 %v6227_v16 }
 0x7b7   :  { %4650 = vmatprep.subr.bf16.mxu0 %v6232_v30  ;;  %4682 = vmatprep.subr.bf16.mxu1 %v6234_v49 }
 0x7ba   :  { %4652 = vmatpush1.bf16.msra.mxu0 %v6236_v52  ;;  %4684 = vmatpush1.bf16.msra.mxu1 %v6239_v4 }
 0x7bb   :  { %4654 = vmatprep.subr.bf16.mxu0 %v6244_v19  ;;  %4686 = vmatprep.subr.bf16.mxu1 %v6246_v53 }
 0x7be   :  { %4656 = vmatpush1.bf16.msra.mxu0 %v6248_v57  ;;  %4688 = vmatpush1.bf16.msra.mxu1 %v6251_v31 }
 0x7bf   :  { %4658 = vmatprep.subr.bf16.mxu0 %v6255_v60  ;;  %4690 = vmatprep.subr.bf16.mxu1 %v6257_v6 }
 0x7c2   :  { %4660 = vmatpush1.bf16.msra.mxu0 %v6260_v48  ;;  %4692 = vmatpush1.bf16.msra.mxu1 %v6264_v1 }
 0x7c3   :  { %4662 = vmatprep.subr.bf16.mxu0 %v6268_v13  ;;  %4694 = vmatprep.subr.bf16.mxu1 %v6270_v22 }
 0x7c6   :  { %4664 = vmatpush1.bf16.msra.mxu0 %v6272_v26  ;;  %4696 = vmatpush1.bf16.msra.mxu1 %v6275_v46 }
 0x7c7   :  { %4698 = vmatprep.subr.bf16.mxu0 %v6184_v15  ;;  %4730 = vmatprep.subr.bf16.mxu1 %v6186_v28 }
 0x85b   :  { %v1831_v55 = vpop.f32.mrb[14].mxu0  ;;  %v1902_v0 = vpop.f32.mrb[30].mxu1 }
 0x85c   :  { %v1833_v12 = vpop.f32.mrb[15].mxu0  ;;  %v1904_v17 = vpop.f32.mrb[31].mxu1 }
 0x85d   :  { %v1911_v23 = vcombine.low %v1831_v55, %v1833_v12  ;;  %v1912_v35 = vcombine.low %v1902_v0, %v1904_v17  ;;  %v6305_v55 = vrot.slane %v2021_v45, %v6818_v39 }
 0x85f   :  { %v1915_v51 = vadd.f32 %v1911_v23, %v6812_v38  ;;  %v1916_v32 = vadd.f32 %v1912_v35, %v6813_v25 }
 0x861   :  { %v3975_v14 = vmul.f32 -1.442695, %v1915_v51  ;;  %v1924_v56 = vrot.slane %v1915_v51, 4  ;;  %v1934_v59 = vrot.slane %v1916_v32, 4 }
 0x863   :  { %5299 = vpow2.f32 %v3975_v14  ;;  %v3976_v54 = vmul.f32 -1.442695, %v1924_v56  ;;  %v3977_v37 = vmul.f32 -1.442695, %v1934_v59 }
 0x865   :  { %5301 = vpow2.f32 %v3976_v54 }
 0x866   :  { %5303 = vtanh.f32 %v1916_v32 }
 0x867   :  { %5305 = vpow2.f32 %v3977_v37 }
 0x86d   :  { %v5300_v29 = vpop.eup %5299 }
 0x86e   :  { %v1920_v63 = vadd.f32 1.0, %v5300_v29 }
 0x86f   :  { %v5302_v42 = vpop.eup %5301 }
 0x870   :  { %5307 = vrcp.f32 %v1920_v63  ;;  %v1929_v62 = vadd.f32 1.0, %v5302_v42  ;;  %v5304_v58 = vpop.eup %5303 }
 0x871   :  { %v5306_v9 = vpop.eup %5305 }
 0x872   :  { %5309 = vrcp.f32 %v1929_v62  ;;  %v1939_v38 = vadd.f32 1.0, %v5306_v9 }
 0x874   :  { %5311 = vrcp.f32 %v1939_v38 }
 0x87a   :  { %v5308_v0 = vpop.eup %5307 }
 0x87b   :  { %v1943_v12 = vmul.f32 %v5308_v0, %v5304_v58  ;;  %v2125_v17 = vpop.f32.mrb[16].mxu0  ;;  %v2214_v23 = vpop.f32.mrb[32].mxu1 }
 0x87c   :  { %v5310_v35 = vpop.eup %5309  ;;  %v6308_v51 = vadd.f32 %v2125_v17, %v6293_v7  ;;  %v6311_v25 = vadd.f32 %v2214_v23, %v6297_v40  ;;  %v2127_v32 = vpop.f32.mrb[17].mxu0 }
 0x87d   :  { %v2216_v14 = vpop.f32.mrb[33].mxu1  ;;  %v1942_v56 = vmul.f32 %v5310_v35, %v6173_v20  ;;  %v6315_v54 = vadd.f32 %v2127_v32, %v6301_v36 }
 0x87e   :  { %v6318_v59 = vadd.f32 %v2216_v14, %v6305_v55 }
 0x87f   :  { %v1944_v37 = vadd.f32 %v1943_v12, %v1942_v56  ;;  %v2253_v29 = vcombine.low %v6308_v51, %v6315_v54  ;;  %v2131_v62 = vpop.f32.mrb[18].mxu0  ;;  %v2220_v45 = vpop.f32.mrb[34].mxu1 }
 0x880   :  { %v2255_v42 = vcombine.low %v6311_v25, %v6318_v59  ;;  %v6329_v58 = vadd.f32 %v2131_v62, %v6293_v7  ;;  %v6332_v61 = vadd.f32 %v2220_v45, %v6297_v40  ;;  %v2133_v8 = vpop.f32.mrb[19].mxu0  ;;  %v2222_v10 = vpop.f32.mrb[35].mxu1 }
 0x881   :  { %5313 = vtanh.f32 %v1944_v37  ;;  %v6335_v9 = vadd.f32 %v2133_v8, %v6301_v36  ;;  %v6338_v18 = vadd.f32 %v2222_v10, %v6305_v55 }
 0x883   :  { %v2137_v23 = vpop.f32.mrb[20].mxu0  ;;  %v2226_v35 = vpop.f32.mrb[36].mxu1 }
 0x884   :  { %v6349_v38 = vadd.f32 %v2137_v23, %v6293_v7  ;;  %v6352_v32 = vadd.f32 %v2226_v35, %v6297_v40  ;;  %v2139_v14 = vpop.f32.mrb[21].mxu0  ;;  %v2228_v56 = vpop.f32.mrb[37].mxu1 }
 0x885   :  { %v6355_v37 = vadd.f32 %v2139_v14, %v6301_v36  ;;  %v6358_v62 = vadd.f32 %v2228_v56, %v6305_v55  ;;  %v5312_v35 = vpop.eup %5311  ;;  %v3978_v56 = vld [vmem:[%s6767_s7 + $0x4] sm:$0xf] }
 0x88b   :  { %v5314_v17 = vpop.eup %5313 }
 0x88c   :  { %v1946_v0 = vmul.f32 %v5314_v17, %v5312_v35 }
 0x88e   :  { %1948 = vst [vmem:[#allocation2 + $0x1c] sm:$0xf] %v1946_v0 }
 0x895   :  { %v5186_v14 = vld [vmem:[#allocation2 + $0x18] sm:$0xff]  }
 0x896   :  { %2142 = vmatmul.mubr.f32.gmra.mrb[22].mxu0 %v5186_v14  ;;  %2231 = vmatmul.mubr.f32.gmra.mrb[38].mxu1 %v5186_v14 }
 0x897   :  { %2435 = vmatprep.mubr.f32.mxu0 %v6796_v3  ;;  %2506 = vmatprep.mubr.f32.mxu1 %v6796_v3 }
 0x89a   :  { %2436 = vmatmul.mubr.f32.vlgmr.msra.gmra.mrb[24].mxu0 %v3978_v56  ;;  %2507 = vmatmul.mubr.f32.vlgmr.msra.gmra.mrb[40].mxu1 %v3978_v56 }
 0x89b   :  { %4700 = vmatpush1.bf16.msra.mxu0 %v6188_v34  ;;  %4732 = vmatpush1.bf16.msra.mxu1 %v6191_v44 }
 0x89c   :  { %4702 = vmatprep.subr.bf16.mxu0 %v6196_v41  ;;  %4734 = vmatprep.subr.bf16.mxu1 %v6198_v21 }
 0x89d   :  { %2619 = vmatprep.mubr.f32.mxu0 %v6796_v3  ;;  %2690 = vmatprep.mubr.f32.mxu1 %v6796_v3 }
 0x89f   :  { %4704 = vmatpush1.bf16.msra.mxu0 %v6200_v47  ;;  %4736 = vmatpush1.bf16.msra.mxu1 %v6203_v5 }
 0x8a0   :  { %4706 = vmatprep.subr.bf16.mxu0 %v6208_v24  ;;  %4738 = vmatprep.subr.bf16.mxu1 %v6210_v50 }
 0x8a3   :  { %4708 = vmatpush1.bf16.msra.mxu0 %v6212_v2  ;;  %4740 = vmatpush1.bf16.msra.mxu1 %v6215_v27 }
 0x8a4   :  { %4710 = vmatprep.subr.bf16.mxu0 %v6220_v11  ;;  %4742 = vmatprep.subr.bf16.mxu1 %v6222_v43 }
 0x8a7   :  { %4712 = vmatpush1.bf16.msra.mxu0 %v6224_v33  ;;  %4744 = vmatpush1.bf16.msra.mxu1 %v6227_v16 }
 0x8a8   :  { %4714 = vmatprep.subr.bf16.mxu0 %v6232_v30  ;;  %4746 = vmatprep.subr.bf16.mxu1 %v6234_v49 }
 0x8ab   :  { %4716 = vmatpush1.bf16.msra.mxu0 %v6236_v52  ;;  %4748 = vmatpush1.bf16.msra.mxu1 %v6239_v4 }
 0x8ac   :  { %4718 = vmatprep.subr.bf16.mxu0 %v6244_v19  ;;  %4750 = vmatprep.subr.bf16.mxu1 %v6246_v53 }
 0x8af   :  { %4720 = vmatpush1.bf16.msra.mxu0 %v6248_v57  ;;  %4752 = vmatpush1.bf16.msra.mxu1 %v6251_v31 }
 0x8b0   :  { %4722 = vmatprep.subr.bf16.mxu0 %v6255_v60  ;;  %4754 = vmatprep.subr.bf16.mxu1 %v6257_v6 }
 0x8b3   :  { %4724 = vmatpush1.bf16.msra.mxu0 %v6260_v48  ;;  %4756 = vmatpush1.bf16.msra.mxu1 %v6264_v1 }
 0x8b4   :  { %4726 = vmatprep.subr.bf16.mxu0 %v6268_v13  ;;  %4758 = vmatprep.subr.bf16.mxu1 %v6270_v22 }
 0x8b7   :  { %4728 = vmatpush1.bf16.msra.mxu0 %v6272_v26  ;;  %4760 = vmatpush1.bf16.msra.mxu1 %v6275_v46 }
 0x8b8   :  { %4762 = vmatprep.subr.bf16.mxu0 %v6184_v15  ;;  %4794 = vmatprep.subr.bf16.mxu1 %v6186_v28 }
 0x969   :  { %v2143_v0 = vpop.f32.mrb[22].mxu0  ;;  %v2232_v17 = vpop.f32.mrb[38].mxu1 }
 0x96a   :  { %v6408_v35 = vadd.f32 %v2143_v0, %v6293_v7  ;;  %v6411_v14 = vadd.f32 %v2232_v17, %v6297_v40  ;;  %v2145_v56 = vpop.f32.mrb[23].mxu0  ;;  %v2234_v23 = vpop.f32.mrb[39].mxu1 }
 0x96b   :  { %v6414_v8 = vadd.f32 %v2145_v56, %v6301_v36  ;;  %v6417_v10 = vadd.f32 %v2234_v23, %v6305_v55 }
 0x96c   :  { %6819 = vst [vmem:[#allocation13_spill] sm:$0xff] %v6411_v14 }
 0x96d   :  { %6820 = vst [vmem:[#allocation14_spill] sm:$0xff] %v6414_v8  ;;  %6821 = vst [vmem:[#allocation15_spill] sm:$0xff] %v6417_v10  ;;  %v2437_v0 = vpop.f32.mrb[24].mxu0  ;;  %v2508_v17 = vpop.f32.mrb[40].mxu1 }
 0x96e   :  { %v2439_v39 = vpop.f32.mrb[25].mxu0  ;;  %v2510_v36 = vpop.f32.mrb[41].mxu1 }
 0x96f   :  { %v2517_v56 = vcombine.low %v2437_v0, %v2439_v39  ;;  %v2518_v20 = vcombine.low %v2508_v17, %v2510_v36 }
 0x971   :  { %v2521_v55 = vadd.f32 %v2517_v56, %v2253_v29  ;;  %v2522_v23 = vadd.f32 %v2518_v20, %v2255_v42  ;;  %v3979_v42 = vld [vmem:[%s6768_s8 + $0x4] sm:$0xf] }
 0x973   :  { %v3980_v12 = vmul.f32 -1.442695, %v2521_v55  ;;  %v2530_v45 = vrot.slane %v2521_v55, 4  ;;  %v2540_v40 = vrot.slane %v2522_v23, 4 }
 0x975   :  { %5315 = vpow2.f32 %v3980_v12  ;;  %v3981_v7 = vmul.f32 -1.442695, %v2530_v45  ;;  %v3982_v63 = vmul.f32 -1.442695, %v2540_v40 }
 0x977   :  { %5317 = vpow2.f32 %v3981_v7 }
 0x978   :  { %5319 = vtanh.f32 %v2522_v23 }
 0x979   :  { %5321 = vpow2.f32 %v3982_v63 }
 0x97f   :  { %v5316_v10 = vpop.eup %5315 }
 0x980   :  { %v2526_v14 = vadd.f32 1.0, %v5316_v10 }
 0x981   :  { %v5318_v39 = vpop.eup %5317 }
 0x982   :  { %5323 = vrcp.f32 %v2526_v14  ;;  %v2535_v0 = vadd.f32 1.0, %v5318_v39  ;;  %v5320_v29 = vpop.eup %5319 }
 0x983   :  { %v5322_v17 = vpop.eup %5321 }
 0x984   :  { %5325 = vrcp.f32 %v2535_v0  ;;  %v2545_v45 = vadd.f32 1.0, %v5322_v17  ;;  %v6822_v17 = vcombine.high %v6308_v51, %v6315_v54 }
 0x986   :  { %5327 = vrcp.f32 %v2545_v45 }
 0x98c   :  { %v5324_v36 = vpop.eup %5323 }
 0x98d   :  { %v2549_v20 = vmul.f32 %v5324_v36, %v5320_v29 }
 0x98e   :  { %v5326_v12 = vpop.eup %5325 }
 0x98f   :  { %v2548_v7 = vmul.f32 %v5326_v12, %v3979_v42  ;;  %v6823_v42 = vcombine.high %v6311_v25, %v6318_v59 }
 0x990   :  { %v5328_v63 = vpop.eup %5327 }
 0x991   :  { %v6436_v40 = vadd.f32 %v2549_v20, %v2548_v7 }
 0x993   :  { %5329 = vtanh.f32 %v6436_v40 }
 0x99d   :  { %v5330_v10 = vpop.eup %5329 }
 0x99e   :  { %v2552_v14 = vmul.f32 %v5330_v10, %v5328_v63 }
 0x9a0   :  { %2620 = vmatmul.mubr.f32.vlgmr.msra.gmra.mrb[26].mxu0 %v2552_v14  ;;  %2691 = vmatmul.mubr.f32.vlgmr.msra.gmra.mrb[42].mxu1 %v2552_v14 }
 0x9a1   :  { %4764 = vmatpush1.bf16.msra.mxu0 %v6188_v34  ;;  %4796 = vmatpush1.bf16.msra.mxu1 %v6191_v44 }
 0x9a2   :  { %4766 = vmatprep.subr.bf16.mxu0 %v6196_v41  ;;  %4798 = vmatprep.subr.bf16.mxu1 %v6198_v21 }
 0x9a3   :  { %2803 = vmatprep.mubr.f32.mxu0 %v6796_v3  ;;  %2874 = vmatprep.mubr.f32.mxu1 %v6796_v3 }
 0x9a5   :  { %4768 = vmatpush1.bf16.msra.mxu0 %v6200_v47  ;;  %4800 = vmatpush1.bf16.msra.mxu1 %v6203_v5 }
 0x9a6   :  { %4770 = vmatprep.subr.bf16.mxu0 %v6208_v24  ;;  %4802 = vmatprep.subr.bf16.mxu1 %v6210_v50 }
 0x9a9   :  { %4772 = vmatpush1.bf16.msra.mxu0 %v6212_v2  ;;  %4804 = vmatpush1.bf16.msra.mxu1 %v6215_v27 }
 0x9aa   :  { %4774 = vmatprep.subr.bf16.mxu0 %v6220_v11  ;;  %4806 = vmatprep.subr.bf16.mxu1 %v6222_v43 }
 0x9ad   :  { %4776 = vmatpush1.bf16.msra.mxu0 %v6224_v33  ;;  %4808 = vmatpush1.bf16.msra.mxu1 %v6227_v16 }
 0x9ae   :  { %4778 = vmatprep.subr.bf16.mxu0 %v6232_v30  ;;  %4810 = vmatprep.subr.bf16.mxu1 %v6234_v49 }
 0x9b1   :  { %4780 = vmatpush1.bf16.msra.mxu0 %v6236_v52  ;;  %4812 = vmatpush1.bf16.msra.mxu1 %v6239_v4 }
 0x9b2   :  { %4782 = vmatprep.subr.bf16.mxu0 %v6244_v19  ;;  %4814 = vmatprep.subr.bf16.mxu1 %v6246_v53 }
 0x9b5   :  { %4784 = vmatpush1.bf16.msra.mxu0 %v6248_v57  ;;  %4816 = vmatpush1.bf16.msra.mxu1 %v6251_v31 }
 0x9b6   :  { %4786 = vmatprep.subr.bf16.mxu0 %v6255_v60  ;;  %4818 = vmatprep.subr.bf16.mxu1 %v6257_v6 }
 0x9b9   :  { %4788 = vmatpush1.bf16.msra.mxu0 %v6260_v48  ;;  %4820 = vmatpush1.bf16.msra.mxu1 %v6264_v1 }
 0x9ba   :  { %4790 = vmatprep.subr.bf16.mxu0 %v6268_v13  ;;  %4822 = vmatprep.subr.bf16.mxu1 %v6270_v22 }
 0x9bd   :  { %4792 = vmatpush1.bf16.msra.mxu0 %v6272_v26  ;;  %4824 = vmatpush1.bf16.msra.mxu1 %v6275_v46 }
 0x9be   :  { %4826 = vmatprep.subr.bf16.mxu0 %v6184_v15  ;;  %4858 = vmatprep.subr.bf16.mxu1 %v6186_v28 }
 0xa73   :  { %v2621_v56 = vpop.f32.mrb[26].mxu0  ;;  %v2692_v55 = vpop.f32.mrb[42].mxu1 }
 0xa74   :  { %v2623_v23 = vpop.f32.mrb[27].mxu0  ;;  %v2694_v39 = vpop.f32.mrb[43].mxu1 }
 0xa75   :  { %v2701_v0 = vcombine.low %v2621_v56, %v2623_v23  ;;  %v2702_v29 = vcombine.low %v2692_v55, %v2694_v39 }
 0xa77   :  { %v2705_v36 = vadd.f32 %v2701_v0, %v6822_v17  ;;  %v2706_v20 = vadd.f32 %v2702_v29, %v6823_v42 }
 0xa79   :  { %v3983_v12 = vmul.f32 -1.442695, %v2705_v36  ;;  %v2714_v45 = vrot.slane %v2705_v36, 4  ;;  %v2724_v63 = vrot.slane %v2706_v20, 4 }
 0xa7b   :  { %5331 = vpow2.f32 %v3983_v12  ;;  %v3984_v7 = vmul.f32 -1.442695, %v2714_v45  ;;  %v3985_v10 = vmul.f32 -1.442695, %v2724_v63  ;;  %v6824_v63 = vcombine.low %v6329_v58, %v6335_v9 }
 0xa7d   :  { %5333 = vpow2.f32 %v3984_v7 }
 0xa7e   :  { %5335 = vtanh.f32 %v2706_v20 }
 0xa7f   :  { %5337 = vpow2.f32 %v3985_v10 }
 0xa85   :  { %v5332_v14 = vpop.eup %5331 }
 0xa86   :  { %v2710_v8 = vadd.f32 1.0, %v5332_v14  ;;  %v6825_v14 = vcombine.low %v6332_v61, %v6338_v18 }
 0xa87   :  { %v5334_v56 = vpop.eup %5333 }
 0xa88   :  { %5339 = vrcp.f32 %v2710_v8  ;;  %v2719_v55 = vadd.f32 1.0, %v5334_v56  ;;  %v5336_v51 = vpop.eup %5335 }
 0xa89   :  { %v5338_v54 = vpop.eup %5337 }
 0xa8a   :  { %5341 = vrcp.f32 %v2719_v55  ;;  %v2729_v39 = vadd.f32 1.0, %v5338_v54 }
 0xa8c   :  { %5343 = vrcp.f32 %v2729_v39 }
 0xa92   :  { %v5340_v23 = vpop.eup %5339 }
 0xa93   :  { %v2733_v25 = vmul.f32 %v5340_v23, %v5336_v51 }
 0xa94   :  { %v5342_v59 = vpop.eup %5341 }
 0xa95   :  { %v2732_v0 = vmul.f32 %v5342_v59, %v6436_v40 }
 0xa96   :  { %v5344_v17 = vpop.eup %5343 }
 0xa97   :  { %v6480_v29 = vadd.f32 %v2733_v25, %v2732_v0 }
 0xa99   :  { %5345 = vtanh.f32 %v6480_v29 }
 0xaa3   :  { %v5346_v36 = vpop.eup %5345 }
 0xaa4   :  { %v2736_v42 = vmul.f32 %v5346_v36, %v5344_v17 }
 0xaa6   :  { %2804 = vmatmul.mubr.f32.vlgmr.msra.gmra.mrb[28].mxu0 %v2736_v42  ;;  %2875 = vmatmul.mubr.f32.vlgmr.msra.gmra.mrb[44].mxu1 %v2736_v42 }
 0xaa7   :  { %4828 = vmatpush1.bf16.msra.mxu0 %v6188_v34  ;;  %4860 = vmatpush1.bf16.msra.mxu1 %v6191_v44 }
 0xaa8   :  { %4830 = vmatprep.subr.bf16.mxu0 %v6196_v41  ;;  %4862 = vmatprep.subr.bf16.mxu1 %v6198_v21 }
 0xaa9   :  { %2987 = vmatprep.mubr.f32.mxu0 %v6796_v3  ;;  %3058 = vmatprep.mubr.f32.mxu1 %v6796_v3 }
 0xaab   :  { %4832 = vmatpush1.bf16.msra.mxu0 %v6200_v47  ;;  %4864 = vmatpush1.bf16.msra.mxu1 %v6203_v5 }
 0xaac   :  { %4834 = vmatprep.subr.bf16.mxu0 %v6208_v24  ;;  %4866 = vmatprep.subr.bf16.mxu1 %v6210_v50 }
 0xaaf   :  { %4836 = vmatpush1.bf16.msra.mxu0 %v6212_v2  ;;  %4868 = vmatpush1.bf16.msra.mxu1 %v6215_v27 }
 0xab0   :  { %4838 = vmatprep.subr.bf16.mxu0 %v6220_v11  ;;  %4870 = vmatprep.subr.bf16.mxu1 %v6222_v43 }
 0xab3   :  { %4840 = vmatpush1.bf16.msra.mxu0 %v6224_v33  ;;  %4872 = vmatpush1.bf16.msra.mxu1 %v6227_v16 }
 0xab4   :  { %4842 = vmatprep.subr.bf16.mxu0 %v6232_v30  ;;  %4874 = vmatprep.subr.bf16.mxu1 %v6234_v49 }
 0xab7   :  { %4844 = vmatpush1.bf16.msra.mxu0 %v6236_v52  ;;  %4876 = vmatpush1.bf16.msra.mxu1 %v6239_v4 }
 0xab8   :  { %4846 = vmatprep.subr.bf16.mxu0 %v6244_v19  ;;  %4878 = vmatprep.subr.bf16.mxu1 %v6246_v53 }
 0xabb   :  { %4848 = vmatpush1.bf16.msra.mxu0 %v6248_v57  ;;  %4880 = vmatpush1.bf16.msra.mxu1 %v6251_v31 }
 0xabc   :  { %4850 = vmatprep.subr.bf16.mxu0 %v6255_v60  ;;  %4882 = vmatprep.subr.bf16.mxu1 %v6257_v6 }
 0xabf   :  { %4852 = vmatpush1.bf16.msra.mxu0 %v6260_v48  ;;  %4884 = vmatpush1.bf16.msra.mxu1 %v6264_v1 }
 0xac0   :  { %4854 = vmatprep.subr.bf16.mxu0 %v6268_v13  ;;  %4886 = vmatprep.subr.bf16.mxu1 %v6270_v22 }
 0xac3   :  { %4856 = vmatpush1.bf16.msra.mxu0 %v6272_v26  ;;  %4888 = vmatpush1.bf16.msra.mxu1 %v6275_v46 }
 0xac4   :  { %4890 = vmatprep.subr.bf16.mxu0 %v6184_v15  ;;  %4922 = vmatprep.subr.bf16.mxu1 %v6186_v28 }
 0xb79   :  { %v2805_v8 = vpop.f32.mrb[28].mxu0  ;;  %v2876_v40 = vpop.f32.mrb[44].mxu1 }
 0xb7a   :  { %v2807_v20 = vpop.f32.mrb[29].mxu0  ;;  %v2878_v12 = vpop.f32.mrb[45].mxu1 }
 0xb7b   :  { %v2885_v45 = vcombine.low %v2805_v8, %v2807_v20  ;;  %v2886_v7 = vcombine.low %v2876_v40, %v2878_v12 }
 0xb7d   :  { %v2889_v10 = vadd.f32 %v2885_v45, %v6824_v63  ;;  %v2890_v56 = vadd.f32 %v2886_v7, %v6825_v14 }
 0xb7f   :  { %v3986_v55 = vmul.f32 -1.442695, %v2889_v10  ;;  %v2898_v51 = vrot.slane %v2889_v10, 4  ;;  %v2908_v23 = vrot.slane %v2890_v56, 4 }
 0xb81   :  { %5347 = vpow2.f32 %v3986_v55  ;;  %v3987_v54 = vmul.f32 -1.442695, %v2898_v51  ;;  %v3988_v25 = vmul.f32 -1.442695, %v2908_v23 }
 0xb83   :  { %5349 = vpow2.f32 %v3987_v54 }
 0xb84   :  { %5351 = vtanh.f32 %v2890_v56 }
 0xb85   :  { %5353 = vpow2.f32 %v3988_v25  ;;  %v6826_v25 = vcombine.high %v6329_v58, %v6335_v9 }
 0xb8b   :  { %v5348_v59 = vpop.eup %5347 }
 0xb8c   :  { %v2894_v39 = vadd.f32 1.0, %v5348_v59 }
 0xb8d   :  { %v5350_v0 = vpop.eup %5349 }
 0xb8e   :  { %5355 = vrcp.f32 %v2894_v39  ;;  %v2903_v17 = vadd.f32 1.0, %v5350_v0  ;;  %v5352_v36 = vpop.eup %5351  ;;  %v6827_v39 = vcombine.high %v6332_v61, %v6338_v18 }
 0xb8f   :  { %v5354_v42 = vpop.eup %5353 }
 0xb90   :  { %5357 = vrcp.f32 %v2903_v17  ;;  %v2913_v12 = vadd.f32 1.0, %v5354_v42 }
 0xb92   :  { %5359 = vrcp.f32 %v2913_v12 }
 0xb98   :  { %v5356_v8 = vpop.eup %5355 }
 0xb99   :  { %v2917_v40 = vmul.f32 %v5356_v8, %v5352_v36 }
 0xb9a   :  { %v5358_v20 = vpop.eup %5357 }
 0xb9b   :  { %v2916_v45 = vmul.f32 %v5358_v20, %v6480_v29 }
 0xb9c   :  { %v5360_v63 = vpop.eup %5359 }
 0xb9d   :  { %v6524_v7 = vadd.f32 %v2917_v40, %v2916_v45 }
 0xb9f   :  { %5361 = vtanh.f32 %v6524_v7 }
 0xba9   :  { %v5362_v10 = vpop.eup %5361 }
 0xbaa   :  { %v2920_v14 = vmul.f32 %v5362_v10, %v5360_v63 }
 0xbac   :  { %2988 = vmatmul.mubr.f32.vlgmr.msra.gmra.mrb[30].mxu0 %v2920_v14  ;;  %3059 = vmatmul.mubr.f32.vlgmr.msra.gmra.mrb[46].mxu1 %v2920_v14 }
 0xbad   :  { %4892 = vmatpush1.bf16.msra.mxu0 %v6188_v34  ;;  %4924 = vmatpush1.bf16.msra.mxu1 %v6191_v44 }
 0xbae   :  { %4894 = vmatprep.subr.bf16.mxu0 %v6196_v41  ;;  %4926 = vmatprep.subr.bf16.mxu1 %v6198_v21 }
 0xbaf   :  { %3171 = vmatprep.mubr.f32.mxu0 %v6796_v3  ;;  %3242 = vmatprep.mubr.f32.mxu1 %v6796_v3 }
 0xbb1   :  { %4896 = vmatpush1.bf16.msra.mxu0 %v6200_v47  ;;  %4928 = vmatpush1.bf16.msra.mxu1 %v6203_v5 }
 0xbb2   :  { %4898 = vmatprep.subr.bf16.mxu0 %v6208_v24  ;;  %4930 = vmatprep.subr.bf16.mxu1 %v6210_v50 }
 0xbb5   :  { %4900 = vmatpush1.bf16.msra.mxu0 %v6212_v2  ;;  %4932 = vmatpush1.bf16.msra.mxu1 %v6215_v27 }
 0xbb6   :  { %4902 = vmatprep.subr.bf16.mxu0 %v6220_v11  ;;  %4934 = vmatprep.subr.bf16.mxu1 %v6222_v43 }
 0xbb9   :  { %4904 = vmatpush1.bf16.msra.mxu0 %v6224_v33  ;;  %4936 = vmatpush1.bf16.msra.mxu1 %v6227_v16 }
 0xbba   :  { %4906 = vmatprep.subr.bf16.mxu0 %v6232_v30  ;;  %4938 = vmatprep.subr.bf16.mxu1 %v6234_v49 }
 0xbbd   :  { %4908 = vmatpush1.bf16.msra.mxu0 %v6236_v52  ;;  %4940 = vmatpush1.bf16.msra.mxu1 %v6239_v4 }
 0xbbe   :  { %4910 = vmatprep.subr.bf16.mxu0 %v6244_v19  ;;  %4942 = vmatprep.subr.bf16.mxu1 %v6246_v53 }
 0xbc1   :  { %4912 = vmatpush1.bf16.msra.mxu0 %v6248_v57  ;;  %4944 = vmatpush1.bf16.msra.mxu1 %v6251_v31 }
 0xbc2   :  { %4914 = vmatprep.subr.bf16.mxu0 %v6255_v60  ;;  %4946 = vmatprep.subr.bf16.mxu1 %v6257_v6 }
 0xbc5   :  { %4916 = vmatpush1.bf16.msra.mxu0 %v6260_v48  ;;  %4948 = vmatpush1.bf16.msra.mxu1 %v6264_v1 }
 0xbc6   :  { %4918 = vmatprep.subr.bf16.mxu0 %v6268_v13  ;;  %4950 = vmatprep.subr.bf16.mxu1 %v6270_v22 }
 0xbc9   :  { %4920 = vmatpush1.bf16.msra.mxu0 %v6272_v26  ;;  %4952 = vmatpush1.bf16.msra.mxu1 %v6275_v46 }
 0xbca   :  { %4954 = vmatprep.subr.bf16.mxu0 %v6184_v15  ;;  %4986 = vmatprep.subr.bf16.mxu1 %v6186_v28 }
 0xc7f   :  { %v2989_v29 = vpop.f32.mrb[30].mxu0  ;;  %v3060_v56 = vpop.f32.mrb[46].mxu1 }
 0xc80   :  { %v2991_v55 = vpop.f32.mrb[31].mxu0  ;;  %v3062_v51 = vpop.f32.mrb[47].mxu1 }
 0xc81   :  { %v3069_v54 = vcombine.low %v2989_v29, %v2991_v55  ;;  %v3070_v23 = vcombine.low %v3060_v56, %v3062_v51 }
 0xc83   :  { %v3073_v59 = vadd.f32 %v3069_v54, %v6826_v25  ;;  %v3074_v0 = vadd.f32 %v3070_v23, %v6827_v39 }
 0xc85   :  { %v3989_v17 = vmul.f32 -1.442695, %v3073_v59  ;;  %v3082_v36 = vrot.slane %v3073_v59, 4  ;;  %v3092_v8 = vrot.slane %v3074_v0, 4 }
 0xc87   :  { %5363 = vpow2.f32 %v3989_v17  ;;  %v3990_v42 = vmul.f32 -1.442695, %v3082_v36  ;;  %v3991_v40 = vmul.f32 -1.442695, %v3092_v8  ;;  %v6828_v17 = vcombine.low %v6349_v38, %v6355_v37 }
 0xc89   :  { %5365 = vpow2.f32 %v3990_v42  ;;  %v6829_v42 = vcombine.low %v6352_v32, %v6358_v62 }
 0xc8a   :  { %5367 = vtanh.f32 %v3074_v0 }
 0xc8b   :  { %5369 = vpow2.f32 %v3991_v40 }
 0xc91   :  { %v5364_v20 = vpop.eup %5363 }
 0xc92   :  { %v3078_v12 = vadd.f32 1.0, %v5364_v20 }
 0xc93   :  { %v5366_v45 = vpop.eup %5365 }
 0xc94   :  { %5371 = vrcp.f32 %v3078_v12  ;;  %v3087_v63 = vadd.f32 1.0, %v5366_v45  ;;  %v5368_v58 = vpop.eup %5367 }
 0xc95   :  { %v5370_v9 = vpop.eup %5369 }
 0xc96   :  { %5373 = vrcp.f32 %v3087_v63  ;;  %v3097_v14 = vadd.f32 1.0, %v5370_v9 }
 0xc98   :  { %5375 = vrcp.f32 %v3097_v14 }
 0xc9e   :  { %v5372_v10 = vpop.eup %5371 }
 0xc9f   :  { %v3101_v61 = vmul.f32 %v5372_v10, %v5368_v58 }
 0xca0   :  { %v5374_v18 = vpop.eup %5373 }
 0xca1   :  { %v3100_v29 = vmul.f32 %v5374_v18, %v6524_v7 }
 0xca2   :  { %v5376_v55 = vpop.eup %5375 }
 0xca3   :  { %v6568_v56 = vadd.f32 %v3101_v61, %v3100_v29 }
 0xca5   :  { %5377 = vtanh.f32 %v6568_v56 }
 0xcaf   :  { %v5378_v51 = vpop.eup %5377 }
 0xcb0   :  { %v3104_v54 = vmul.f32 %v5378_v51, %v5376_v55 }
 0xcb2   :  { %3172 = vmatmul.mubr.f32.vlgmr.msra.gmra.mrb[32].mxu0 %v3104_v54  ;;  %3243 = vmatmul.mubr.f32.vlgmr.msra.gmra.mrb[48].mxu1 %v3104_v54 }
 0xcb3   :  { %4956 = vmatpush1.bf16.msra.mxu0 %v6188_v34  ;;  %4988 = vmatpush1.bf16.msra.mxu1 %v6191_v44 }
 0xcb4   :  { %4958 = vmatprep.subr.bf16.mxu0 %v6196_v41  ;;  %4990 = vmatprep.subr.bf16.mxu1 %v6198_v21 }
 0xcb5   :  { %3355 = vmatprep.mubr.f32.mxu0 %v6796_v3  ;;  %3426 = vmatprep.mubr.f32.mxu1 %v6796_v3 }
 0xcb7   :  { %4960 = vmatpush1.bf16.msra.mxu0 %v6200_v47  ;;  %4992 = vmatpush1.bf16.msra.mxu1 %v6203_v5 }
 0xcb8   :  { %4962 = vmatprep.subr.bf16.mxu0 %v6208_v24  ;;  %4994 = vmatprep.subr.bf16.mxu1 %v6210_v50 }
 0xcbb   :  { %4964 = vmatpush1.bf16.msra.mxu0 %v6212_v2  ;;  %4996 = vmatpush1.bf16.msra.mxu1 %v6215_v27 }
 0xcbc   :  { %4966 = vmatprep.subr.bf16.mxu0 %v6220_v11  ;;  %4998 = vmatprep.subr.bf16.mxu1 %v6222_v43 }
 0xcbf   :  { %4968 = vmatpush1.bf16.msra.mxu0 %v6224_v33  ;;  %5000 = vmatpush1.bf16.msra.mxu1 %v6227_v16 }
 0xcc0   :  { %4970 = vmatprep.subr.bf16.mxu0 %v6232_v30  ;;  %5002 = vmatprep.subr.bf16.mxu1 %v6234_v49 }
 0xcc3   :  { %4972 = vmatpush1.bf16.msra.mxu0 %v6236_v52  ;;  %5004 = vmatpush1.bf16.msra.mxu1 %v6239_v4 }
 0xcc4   :  { %4974 = vmatprep.subr.bf16.mxu0 %v6244_v19  ;;  %5006 = vmatprep.subr.bf16.mxu1 %v6246_v53 }
 0xcc7   :  { %4976 = vmatpush1.bf16.msra.mxu0 %v6248_v57  ;;  %5008 = vmatpush1.bf16.msra.mxu1 %v6251_v31 }
 0xcc8   :  { %4978 = vmatprep.subr.bf16.mxu0 %v6255_v60  ;;  %5010 = vmatprep.subr.bf16.mxu1 %v6257_v6 }
 0xccb   :  { %4980 = vmatpush1.bf16.msra.mxu0 %v6260_v48  ;;  %5012 = vmatpush1.bf16.msra.mxu1 %v6264_v1 }
 0xccc   :  { %4982 = vmatprep.subr.bf16.mxu0 %v6268_v13  ;;  %5014 = vmatprep.subr.bf16.mxu1 %v6270_v22 }
 0xccf   :  { %4984 = vmatpush1.bf16.msra.mxu0 %v6272_v26  ;;  %5016 = vmatpush1.bf16.msra.mxu1 %v6275_v46 }
 0xcd0   :  { %5018 = vmatprep.subr.bf16.mxu0 %v6184_v15  ;;  %5050 = vmatprep.subr.bf16.mxu1 %v6186_v28 }
 0xd85   :  { %v3173_v7 = vpop.f32.mrb[32].mxu0  ;;  %v3244_v23 = vpop.f32.mrb[48].mxu1 }
 0xd86   :  { %v3175_v25 = vpop.f32.mrb[33].mxu0  ;;  %v3246_v59 = vpop.f32.mrb[49].mxu1 }
 0xd87   :  { %v3253_v39 = vcombine.low %v3173_v7, %v3175_v25  ;;  %v3254_v0 = vcombine.low %v3244_v23, %v3246_v59 }
 0xd89   :  { %v3257_v36 = vadd.f32 %v3253_v39, %v6828_v17  ;;  %v3258_v8 = vadd.f32 %v3254_v0, %v6829_v42 }
 0xd8b   :  { %v3992_v40 = vmul.f32 -1.442695, %v3257_v36  ;;  %v3266_v20 = vrot.slane %v3257_v36, 4  ;;  %v3276_v45 = vrot.slane %v3258_v8, 4 }
 0xd8d   :  { %5379 = vpow2.f32 %v3992_v40  ;;  %v3993_v12 = vmul.f32 -1.442695, %v3266_v20  ;;  %v3994_v63 = vmul.f32 -1.442695, %v3276_v45  ;;  %v6830_v40 = vcombine.high %v6349_v38, %v6355_v37 }
 0xd8f   :  { %5381 = vpow2.f32 %v3993_v12  ;;  %v6831_v12 = vcombine.high %v6352_v32, %v6358_v62 }
 0xd90   :  { %5383 = vtanh.f32 %v3258_v8 }
 0xd91   :  { %5385 = vpow2.f32 %v3994_v63 }
 0xd97   :  { %v5380_v58 = vpop.eup %5379 }
 0xd98   :  { %v3262_v9 = vadd.f32 1.0, %v5380_v58 }
 0xd99   :  { %v5382_v10 = vpop.eup %5381 }
 0xd9a   :  { %5387 = vrcp.f32 %v3262_v9  ;;  %v3271_v61 = vadd.f32 1.0, %v5382_v10  ;;  %v5384_v18 = vpop.eup %5383 }
 0xd9b   :  { %v5386_v14 = vpop.eup %5385 }
 0xd9c   :  { %5389 = vrcp.f32 %v3271_v61  ;;  %v3281_v54 = vadd.f32 1.0, %v5386_v14 }
 0xd9e   :  { %5391 = vrcp.f32 %v3281_v54 }
 0xda4   :  { %v5388_v29 = vpop.eup %5387 }
 0xda5   :  { %v3285_v55 = vmul.f32 %v5388_v29, %v5384_v18 }
 0xda6   :  { %v5390_v51 = vpop.eup %5389 }
 0xda7   :  { %v3284_v7 = vmul.f32 %v5390_v51, %v6568_v56 }
 0xda8   :  { %v5392_v25 = vpop.eup %5391 }
 0xda9   :  { %v6612_v23 = vadd.f32 %v3285_v55, %v3284_v7 }
 0xdab   :  { %5393 = vtanh.f32 %v6612_v23 }
 0xdb5   :  { %v5394_v59 = vpop.eup %5393 }
 0xdb6   :  { %v3288_v39 = vmul.f32 %v5394_v59, %v5392_v25 }
 0xdb8   :  { %3356 = vmatmul.mubr.f32.vlgmr.msra.gmra.mrb[34].mxu0 %v3288_v39  ;;  %3427 = vmatmul.mubr.f32.vlgmr.msra.gmra.mrb[50].mxu1 %v3288_v39 }
 0xdb9   :  { %5020 = vmatpush1.bf16.msra.mxu0 %v6188_v34  ;;  %5052 = vmatpush1.bf16.msra.mxu1 %v6191_v44 }
 0xdba   :  { %5022 = vmatprep.subr.bf16.mxu0 %v6196_v41  ;;  %5054 = vmatprep.subr.bf16.mxu1 %v6198_v21 }
 0xdbb   :  { %3539 = vmatprep.mubr.f32.mxu0 %v6796_v3  ;;  %3610 = vmatprep.mubr.f32.mxu1 %v6796_v3 }
 0xdbd   :  { %5024 = vmatpush1.bf16.msra.mxu0 %v6200_v47  ;;  %5056 = vmatpush1.bf16.msra.mxu1 %v6203_v5 }
 0xdbe   :  { %5026 = vmatprep.subr.bf16.mxu0 %v6208_v24  ;;  %5058 = vmatprep.subr.bf16.mxu1 %v6210_v50 }
 0xdc1   :  { %5028 = vmatpush1.bf16.msra.mxu0 %v6212_v2  ;;  %5060 = vmatpush1.bf16.msra.mxu1 %v6215_v27 }
 0xdc2   :  { %5030 = vmatprep.subr.bf16.mxu0 %v6220_v11  ;;  %5062 = vmatprep.subr.bf16.mxu1 %v6222_v43 }
 0xdc5   :  { %5032 = vmatpush1.bf16.msra.mxu0 %v6224_v33  ;;  %5064 = vmatpush1.bf16.msra.mxu1 %v6227_v16 }
 0xdc6   :  { %5034 = vmatprep.subr.bf16.mxu0 %v6232_v30  ;;  %5066 = vmatprep.subr.bf16.mxu1 %v6234_v49 }
 0xdc9   :  { %5036 = vmatpush1.bf16.msra.mxu0 %v6236_v52  ;;  %5068 = vmatpush1.bf16.msra.mxu1 %v6239_v4 }
 0xdca   :  { %5038 = vmatprep.subr.bf16.mxu0 %v6244_v19  ;;  %5070 = vmatprep.subr.bf16.mxu1 %v6246_v53 }
 0xdcd   :  { %5040 = vmatpush1.bf16.msra.mxu0 %v6248_v57  ;;  %5072 = vmatpush1.bf16.msra.mxu1 %v6251_v31 }
 0xdce   :  { %5042 = vmatprep.subr.bf16.mxu0 %v6255_v60  ;;  %5074 = vmatprep.subr.bf16.mxu1 %v6257_v6 }
 0xdd1   :  { %5044 = vmatpush1.bf16.msra.mxu0 %v6260_v48  ;;  %5076 = vmatpush1.bf16.msra.mxu1 %v6264_v1 }
 0xdd2   :  { %5046 = vmatprep.subr.bf16.mxu0 %v6268_v13  ;;  %5078 = vmatprep.subr.bf16.mxu1 %v6270_v22 }
 0xdd5   :  { %5048 = vmatpush1.bf16.msra.mxu0 %v6272_v26  ;;  %5080 = vmatpush1.bf16.msra.mxu1 %v6275_v46 }
 0xdd6   :  { %5082 = vmatprep.subr.bf16.mxu0 %v6184_v15  ;;  %5114 = vmatprep.subr.bf16.mxu1 %v6186_v28 }
 0xe8b   :  { %v3357_v56 = vpop.f32.mrb[34].mxu0  ;;  %v3428_v0 = vpop.f32.mrb[50].mxu1 }
 0xe8c   :  { %v3359_v17 = vpop.f32.mrb[35].mxu0  ;;  %v3430_v36 = vpop.f32.mrb[51].mxu1 }
 0xe8d   :  { %v3437_v42 = vcombine.low %v3357_v56, %v3359_v17  ;;  %v3438_v8 = vcombine.low %v3428_v0, %v3430_v36  ;;  %v3841_v0 = vld [vmem:[%s6769_s9] sm:$0xff]  ;;  %v3842_v17 = vld [vmem:[%s6769_s9 + $0x8] sm:$0xff] }
 0xe8e   :  { %v5146_v36 = vpack.c.bf16 %v3842_v17, %v3841_v0 }
 0xe8f   :  { %v3441_v20 = vadd.f32 %v3437_v42, %v6830_v40  ;;  %v3442_v45 = vadd.f32 %v3438_v8, %v6831_v12  ;;  %v5519_v42 = vmov 0.0|0.0   ;;  %v3843_v8 = vld [vmem:[%s6769_s9 + $0x10] sm:$0xff]  ;;  %v3844_v40 = vld [vmem:[%s6769_s9 + $0x18] sm:$0xff]  ;;  %v3845_v12 = vld [vmem:[%s6769_s9 + $0x20] sm:$0xff] }
 0xe91   :  { %v3995_v63 = vmul.f32 -1.442695, %v3441_v20  ;;  %v3450_v58 = vrot.slane %v3441_v20, 4  ;;  %v3460_v28 = vrot.slane %v3442_v45, 4  ;;  %v5149_v20 = vpack.c.bf16 %v3844_v40, %v3843_v8 }
 0xe93   :  { %5395 = vpow2.f32 %v3995_v63  ;;  %v3996_v15 = vmul.f32 -1.442695, %v3450_v58  ;;  %v3997_v9 = vmul.f32 -1.442695, %v3460_v28  ;;  %v3847_v58 = vld [vmem:[%s6769_s9 + $0x30] sm:$0xff] }
 0xe95   :  { %5397 = vpow2.f32 %v3996_v15  ;;  %v3848_v15 = vld [vmem:[%s6769_s9 + $0x38] sm:$0xff] }
 0xe96   :  { %5399 = vtanh.f32 %v3442_v45  ;;  %v3846_v45 = vld [vmem:[%s6769_s9 + $0x28] sm:$0xff]  ;;  %v5155_v28 = vpack.c.bf16 %v3848_v15, %v3847_v58 }
 0xe97   :  { %5401 = vpow2.f32 %v3997_v9  ;;  %v5152_v63 = vpack.c.bf16 %v3846_v45, %v3845_v12  ;;  %v3849_v9 = vld [vmem:[%s6769_s9 + $0x40] sm:$0xff] }
 0xe9d   :  { %v5396_v10 = vpop.eup %5395 }
 0xe9e   :  { %v3446_v61 = vadd.f32 1.0, %v5396_v10  ;;  %v3850_v10 = vld [vmem:[%s6769_s9 + $0x48] sm:$0xff] }
 0xe9f   :  { %v5398_v18 = vpop.eup %5397 }
 0xea0   :  { %5403 = vrcp.f32 %v3446_v61  ;;  %v3455_v14 = vadd.f32 1.0, %v5398_v18  ;;  %v5400_v38 = vpop.eup %5399  ;;  %v5158_v61 = vpack.c.bf16 %v3850_v10, %v3849_v9  ;;  %v3851_v18 = vld [vmem:[%s6769_s9 + $0x50] sm:$0xff] }
 0xea1   :  { %v5402_v37 = vpop.eup %5401 }
 0xea2   :  { %5405 = vrcp.f32 %v3455_v14  ;;  %v3465_v55 = vadd.f32 1.0, %v5402_v37  ;;  %v3852_v14 = vld [vmem:[%s6769_s9 + $0x58] sm:$0xff]  ;;  %v3853_v37 = vld [vmem:[%s6769_s9 + $0x60] sm:$0xff] }
 0xea4   :  { %5407 = vrcp.f32 %v3465_v55  ;;  %v3856_v55 = vld [vmem:[%s6769_s9 + $0x78] sm:$0xff] }
 0xeaa   :  { %v5404_v29 = vpop.eup %5403 }
 0xeab   :  { %v3469_v32 = vmul.f32 %v5404_v29, %v5400_v38  ;;  %v5161_v38 = vpack.c.bf16 %v3852_v14, %v3851_v18  ;;  %v3854_v29 = vld [vmem:[%s6769_s9 + $0x68] sm:$0xff] }
 0xeac   :  { %v5406_v62 = vpop.eup %5405 }
 0xead   :  { %v3468_v51 = vmul.f32 %v5406_v62, %v6612_v23  ;;  %v3855_v62 = vld [vmem:[%s6769_s9 + $0x70] sm:$0xff] }
 0xeae   :  { %v5408_v7 = vpop.eup %5407 }
 0xeaf   :  { %v6656_v54 = vadd.f32 %v3469_v32, %v3468_v51  ;;  %v5164_v32 = vpack.c.bf16 %v3854_v29, %v3853_v37  ;;  %v5167_v51 = vpack.c.bf16 %v3856_v55, %v3855_v62 }
 0xeb1   :  { %5409 = vtanh.f32 %v6656_v54 }
 0xebb   :  { %v5410_v25 = vpop.eup %5409 }
 0xebc   :  { %v3472_v59 = vmul.f32 %v5410_v25, %v5408_v7 }
 0xebe   :  { %3540 = vmatmul.mubr.f32.vlgmr.msra.gmra.mrb[36].mxu0 %v3472_v59  ;;  %3611 = vmatmul.mubr.f32.vlgmr.msra.gmra.mrb[52].mxu1 %v3472_v59 }
 0xebf   :  { %5084 = vmatpush1.bf16.msra.mxu0 %v6188_v34  ;;  %5116 = vmatpush1.bf16.msra.mxu1 %v6191_v44 }
 0xec0   :  { %5086 = vmatprep.subr.bf16.mxu0 %v6196_v41  ;;  %5118 = vmatprep.subr.bf16.mxu1 %v6198_v21 }
 0xec1   :  { %3723 = vmatprep.mubr.f32.mxu0 %v6796_v3  ;;  %3794 = vmatprep.mubr.f32.mxu1 %v6796_v3 }
 0xec3   :  { %5088 = vmatpush1.bf16.msra.mxu0 %v6200_v47  ;;  %5120 = vmatpush1.bf16.msra.mxu1 %v6203_v5 }
 0xec4   :  { %5090 = vmatprep.subr.bf16.mxu0 %v6208_v24  ;;  %5122 = vmatprep.subr.bf16.mxu1 %v6210_v50  ;;  %v6832_v24 = vld [vmem:[#allocation14_spill] sm:$0xff] }
 0xec5   :  { %v6833_v50 = vcombine.low %v6408_v35, %v6832_v24 }
 0xec7   :  { %5092 = vmatpush1.bf16.msra.mxu0 %v6212_v2  ;;  %5124 = vmatpush1.bf16.msra.mxu1 %v6215_v27  ;;  %v6834_v27 = vld [vmem:[#allocation13_spill] sm:$0xff] }
 0xec8   :  { %5094 = vmatprep.subr.bf16.mxu0 %v6220_v11  ;;  %5126 = vmatprep.subr.bf16.mxu1 %v6222_v43  ;;  %v6835_v11 = vld [vmem:[#allocation15_spill] sm:$0xff] }
 0xec9   :  { %v6836_v43 = vcombine.low %v6834_v27, %v6835_v11 }
 0xecb   :  { %5096 = vmatpush1.bf16.msra.mxu0 %v6224_v33  ;;  %5128 = vmatpush1.bf16.msra.mxu1 %v6227_v16 }
 0xecc   :  { %5098 = vmatprep.subr.bf16.mxu0 %v6232_v30  ;;  %5130 = vmatprep.subr.bf16.mxu1 %v6234_v49 }
 0xecf   :  { %5100 = vmatpush1.bf16.msra.mxu0 %v6236_v52  ;;  %5132 = vmatpush1.bf16.msra.mxu1 %v6239_v4 }
 0xed0   :  { %5102 = vmatprep.subr.bf16.mxu0 %v6244_v19  ;;  %5134 = vmatprep.subr.bf16.mxu1 %v6246_v53 }
 0xed3   :  { %5104 = vmatpush1.bf16.msra.mxu0 %v6248_v57  ;;  %5136 = vmatpush1.bf16.msra.mxu1 %v6251_v31 }
 0xed4   :  { %5106 = vmatprep.subr.bf16.mxu0 %v6255_v60  ;;  %5138 = vmatprep.subr.bf16.mxu1 %v6257_v6 }
 0xed7   :  { %5108 = vmatpush1.bf16.msra.mxu0 %v6260_v48  ;;  %5140 = vmatpush1.bf16.msra.mxu1 %v6264_v1 }
 0xed8   :  { %5110 = vmatprep.subr.bf16.mxu0 %v6268_v13  ;;  %5142 = vmatprep.subr.bf16.mxu1 %v6270_v22 }
 0xedb   :  { %5112 = vmatpush1.bf16.msra.mxu0 %v6272_v26  ;;  %5144 = vmatpush1.bf16.msra.mxu1 %v6275_v46 }
 0xedc   :  { %5145 = vmatprep.subr.bf16.mxu0 %v5519_v42 }
 0xf91   :  { %v3541_v34 = vpop.f32.mrb[36].mxu0  ;;  %v3612_v44 = vpop.f32.mrb[52].mxu1 }
 0xf92   :  { %v3543_v41 = vpop.f32.mrb[37].mxu0  ;;  %v3614_v21 = vpop.f32.mrb[53].mxu1 }
 0xf93   :  { %v3621_v47 = vcombine.low %v3541_v34, %v3543_v41  ;;  %v3622_v5 = vcombine.low %v3612_v44, %v3614_v21  ;;  %v6837_v44 = vcombine.high %v6408_v35, %v6832_v24  ;;  %v6838_v21 = vcombine.high %v6834_v27, %v6835_v11 }
 0xf95   :  { %v3625_v2 = vadd.f32 %v3621_v47, %v6833_v50  ;;  %v3626_v33 = vadd.f32 %v3622_v5, %v6836_v43 }
 0xf97   :  { %v3998_v16 = vmul.f32 -1.442695, %v3625_v2  ;;  %v3634_v30 = vrot.slane %v3625_v2, 4  ;;  %v3644_v52 = vrot.slane %v3626_v33, 4 }
 0xf99   :  { %5411 = vpow2.f32 %v3998_v16  ;;  %v3999_v49 = vmul.f32 -1.442695, %v3634_v30  ;;  %v4000_v4 = vmul.f32 -1.442695, %v3644_v52 }
 0xf9b   :  { %5413 = vpow2.f32 %v3999_v49 }
 0xf9c   :  { %5415 = vtanh.f32 %v3626_v33 }
 0xf9d   :  { %5417 = vpow2.f32 %v4000_v4 }
 0xfa3   :  { %v5412_v19 = vpop.eup %5411 }
 0xfa4   :  { %v3630_v53 = vadd.f32 1.0, %v5412_v19 }
 0xfa5   :  { %v5414_v57 = vpop.eup %5413 }
 0xfa6   :  { %5419 = vrcp.f32 %v3630_v53  ;;  %v3639_v31 = vadd.f32 1.0, %v5414_v57  ;;  %v5416_v60 = vpop.eup %5415 }
 0xfa7   :  { %v5418_v6 = vpop.eup %5417 }
 0xfa8   :  { %5421 = vrcp.f32 %v3639_v31  ;;  %v3649_v22 = vadd.f32 1.0, %v5418_v6 }
 0xfaa   :  { %5423 = vrcp.f32 %v3649_v22 }
 0xfb0   :  { %v5420_v48 = vpop.eup %5419 }
 0xfb1   :  { %v3653_v1 = vmul.f32 %v5420_v48, %v5416_v60  ;;  %v4004_v48 = vld [vmem:[#allocation4] ss:$0 sm:$0xff] }
 0xfb2   :  { %v5422_v13 = vpop.eup %5421 }
 0xfb3   :  { %v3652_v26 = vmul.f32 %v5422_v13, %v6656_v54 }
 0xfb4   :  { %v5424_v23 = vpop.eup %5423 }
 0xfb5   :  { %v6698_v46 = vadd.f32 %v3653_v1, %v3652_v26 }
 0xfb7   :  { %5425 = vtanh.f32 %v6698_v46 }
 0xfc1   :  { %v5426_v39 = vpop.eup %5425 }
 0xfc2   :  { %v3656_v56 = vmul.f32 %v5426_v39, %v5424_v23 }
 0xfc4   :  { %3724 = vmatmul.mubr.f32.vlgmr.msra.gmra.mrb[38].mxu0 %v3656_v56  ;;  %3795 = vmatmul.mubr.f32.vlgmr.msra.gmra.mrb[54].mxu1 %v3656_v56 }
 0xfc5   :  { %5147 = vmatpush3.bf16.msra.mxu0 %v5146_v36  ;;  %4054 = vmatprep.mubr.msk.f32.mxu0 %vm5520_vm2, %v6796_v3 }
 0xfc6   :  { %5148 = vmatprep.subr.bf16.mxu0 %v5519_v42 }
 0xfc9   :  { %5150 = vmatpush3.bf16.msra.mxu0 %v5149_v20 }
 0xfca   :  { %5151 = vmatprep.subr.bf16.mxu0 %v5519_v42 }
 0xfcd   :  { %5153 = vmatpush3.bf16.msra.mxu0 %v5152_v63 }
 0xfce   :  { %5154 = vmatprep.subr.bf16.mxu0 %v5519_v42 }
 0xfd1   :  { %5156 = vmatpush3.bf16.msra.mxu0 %v5155_v28 }
 0xfd2   :  { %5157 = vmatprep.subr.bf16.mxu0 %v5519_v42 }
 0xfd5   :  { %5159 = vmatpush3.bf16.msra.mxu0 %v5158_v61 }
 0xfd6   :  { %5160 = vmatprep.subr.bf16.mxu0 %v5519_v42 }
 0xfd9   :  { %5162 = vmatpush3.bf16.msra.mxu0 %v5161_v38 }
 0xfda   :  { %5163 = vmatprep.subr.bf16.mxu0 %v5519_v42 }
 0xfdd   :  { %5165 = vmatpush3.bf16.msra.mxu0 %v5164_v32 }
 0xfde   :  { %5166 = vmatprep.subr.bf16.mxu0 %v5519_v42 }
 0xfe1   :  { %5168 = vmatpush3.bf16.msra.mxu0 %v5167_v51 }
0x1097   :  { %v3725_v54 = vpop.f32.mrb[38].mxu0  ;;  %v3796_v7 = vpop.f32.mrb[54].mxu1 }
0x1098   :  { %v3727_v25 = vpop.f32.mrb[39].mxu0  ;;  %v3798_v59 = vpop.f32.mrb[55].mxu1 }
0x1099   :  { %v3805_v3 = vcombine.low %v3725_v54, %v3727_v25  ;;  %v3806_v34 = vcombine.low %v3796_v7, %v3798_v59 }
0x109b   :  { %v3809_v41 = vadd.f32 %v3805_v3, %v6837_v44  ;;  %v3810_v47 = vadd.f32 %v3806_v34, %v6838_v21 }
0x109d   :  { %v4001_v5 = vmul.f32 -1.442695, %v3809_v41  ;;  %v3818_v50 = vrot.slane %v3809_v41, 4  ;;  %v3828_v43 = vrot.slane %v3810_v47, 4 }
0x109f   :  { %5427 = vpow2.f32 %v4001_v5  ;;  %v4002_v2 = vmul.f32 -1.442695, %v3818_v50  ;;  %v4003_v33 = vmul.f32 -1.442695, %v3828_v43 }
0x10a1   :  { %5429 = vpow2.f32 %v4002_v2 }
0x10a2   :  { %5431 = vtanh.f32 %v3810_v47 }
0x10a3   :  { %5433 = vpow2.f32 %v4003_v33 }
0x10a9   :  { %v5428_v16 = vpop.eup %5427 }
0x10aa   :  { %v3814_v30 = vadd.f32 1.0, %v5428_v16 }
0x10ab   :  { %v5430_v49 = vpop.eup %5429 }
0x10ac   :  { %5435 = vrcp.f32 %v3814_v30  ;;  %v3823_v52 = vadd.f32 1.0, %v5430_v49  ;;  %v5432_v35 = vpop.eup %5431 }
0x10ad   :  { %v5434_v24 = vpop.eup %5433 }
0x10ae   :  { %5437 = vrcp.f32 %v3823_v52  ;;  %v3833_v19 = vadd.f32 1.0, %v5434_v24 }
0x10b0   :  { %5439 = vrcp.f32 %v3833_v19 }
0x10b6   :  { %v5436_v4 = vpop.eup %5435 }
0x10b7   :  { %v3837_v27 = vmul.f32 %v5436_v4, %v5432_v35 }
0x10b8   :  { %v5438_v11 = vpop.eup %5437 }
0x10b9   :  { %v3836_v53 = vmul.f32 %v5438_v11, %v6698_v46 }
0x10ba   :  { %v5440_v31 = vpop.eup %5439 }
0x10bb   :  { %v3838_v57 = vadd.f32 %v3837_v27, %v3836_v53 }
0x10bd   :  { %5441 = vtanh.f32 %v3838_v57 }
0x10c7   :  { %v5442_v60 = vpop.eup %5441 }
0x10c8   :  { %v3840_v6 = vmul.f32 %v5442_v60, %v5440_v31 }
0x10ca   :  { %4055 = vmatmul.mubr.f32.vlgmr.msra.gmra.mrb[40].mxu0 %v3840_v6 }
0x119d   :  { %v3930_v1 = vpop.f32.mrb[40].mxu0 }
0x119e   :  { %v3931_v13 = vadd.f32 %v4004_v48, %v3930_v1  ;;  %v4056_v22 = vpop.f32.mrb[41].mxu0 }
0x11a0   :  { %3935 = vst.msk [vmem:[%s6771_s11] sm:$0xf] %vm3934_vm3, %v3931_v13 }
0x11a1   :  { %3940 = vsyncpa [#allocation6], 1 }
0x11a2   :  { %3941 = vsyncpa [#allocation8], 1 }

</bundles_post_ra>
